<compile_context>
chip_gen: v5e
topology: v5e:2x2
jax: 0.10.0
libtpu: 0.0.40
codegen_flags: <defaults>
</compile_context>

<pallas_src>
import jax
import jax.numpy as jnp
from jax.experimental import pallas as pl
from jax.experimental.pallas import tpu as pltpu


# ===================================================================================
# In-kernel building blocks (operate on (C, L) f32 slabs resident in vregs / VMEM)
# ===================================================================================

def _row_masks(W, l):
    """Validity masks for dx=-1 / dx=+1 taps (hoisted: computed once per resolution)."""
    col = jax.lax.broadcasted_iota(jnp.int32, (1, l), 1) % W
    return col >= 1, col <= W - 2


def _gn_silu(x, gamma, beta, groups, eps):
    """GroupNorm (two-pass mean/var) + SiLU on a (C, L) f32 slab.  VPU/XLU only."""
    c, l = x.shape
    gs = c // groups
    denom = 1.0 / float(gs * l)
    parts = []
    for g in range(groups):
        xg = x[g * gs:(g + 1) * gs, :]
        s1 = jnp.sum(jnp.sum(xg, axis=1, keepdims=True), axis=0, keepdims=True)
        mean = s1 * denom
        d = xg - mean
        s2 = jnp.sum(jnp.sum(d * d, axis=1, keepdims=True), axis=0, keepdims=True)
        var = s2 * denom
        parts.append(d * jax.lax.rsqrt(var + eps))
    xn = parts[0] if groups == 1 else jnp.concatenate(parts, axis=0)
    y = xn * gamma + beta
    return y * jax.nn.sigmoid(y)


def _conv3x3(x, w, bias, pad_ref, stk_ref, W, padw, masks):
    """3x3 'same' conv on a flattened (Cin, H*W) slab via a single MXU matmul.

    Writes the 9 shifted taps into a stacked (9*Cin, L) VMEM slab (reads of a padded
    scratch whose borders are zero), then issues one K = 9*Cin matmul against the
    host-packed (Cout, 9*Cin) weight.  No HBM im2col is materialized.
    """
    cin, l = x.shape
    ok_left, ok_right = masks
    pad_ref[:cin, padw:padw + l] = x
    for t in range(9):
        dy, dx = t // 3 - 1, t % 3 - 1
        off = padw + dy * W + dx
        sl = pad_ref[:cin, off:off + l]
        if dx == -1:
            sl = jnp.where(ok_left, sl, 0.0)
        elif dx == 1:
            sl = jnp.where(ok_right, sl, 0.0)
        stk_ref[t * cin:(t + 1) * cin, :] = sl
    out = jnp.dot(w, stk_ref[:9 * cin, :], preferred_element_type=jnp.float32)
    if bias is not None:
        out = out + bias
    return out


def _resblock(x, g1, b1, w1, c1, g2, b2, w2, c2,
              pad_ref, stk_ref, W, padw, masks, groups, eps):
    """GN+SiLU -> conv3x3 -> GN+SiLU -> conv3x3 -> +x, all intermediates on-chip."""
    h = _gn_silu(x, g1, b1, groups, eps)
    h = _conv3x3(h, w1, c1, pad_ref, stk_ref, W, padw, masks)
    h = _gn_silu(h, g2, b2, groups, eps)
    h = _conv3x3(h, w2, c2, pad_ref, stk_ref, W, padw, masks)
    return h + x


def _down_fused(h, x_in, wfold, bias, s_sub, pad_ref, stk_ref, W, padw):
    """PixelUnshuffle + 1x1 down conv (on h) + SpaceToChannel mean shortcut (on x_in) + add.

    Stacked 2x2 / stride-2 conv: 4 shifted copies of h and 4 of x_in fill an (8*C, L)
    slab; one matmul with the host-folded (Cnext, 8*C) weight gives (Cnext, L); the
    constant 0/1 subsample matrix s_sub (L, L/4) then picks the stride-2 spatial grid
    on the MXU (no in-kernel gather, no wrap masks needed).
    """
    c, l = h.shape
    shifts = (0, 1, W, W + 1)                      # tap order (i,j) in {0,1}^2 -> i*2+j
    pad_ref[:c, padw:padw + l] = h
    for k, off in enumerate(shifts):
        stk_ref[k * c:(k + 1) * c, :] = pad_ref[:c, padw + off:padw + off + l]
    pad_ref[:c, padw:padw + l] = x_in
    for k, off in enumerate(shifts):
        stk_ref[(4 + k) * c:(5 + k) * c, :] = pad_ref[:c, padw + off:padw + off + l]
    z = jnp.dot(wfold, stk_ref[:8 * c, :], preferred_element_type=jnp.float32)
    return jnp.dot(z, s_sub, preferred_element_type=jnp.float32) + bias


# ===================================================================================
# The single fused encoder kernel
# ===================================================================================

def _make_encoder_kernel(plan):
    nw = plan["num_weights"]
    padw = plan["padw"]
    eps = plan["eps"]

    def kernel(*refs):
        x_ref = refs[0]
        w_refs = refs[1:1 + nw]
        o_ref = refs[1 + nw]
        scr = refs[2 + nw:]                         # [pad_r, stk_r] per resolution

        it = iter(w_refs)

        def nxt():
            return next(it)[...]

        # Zero only the left/right borders of each padded conv scratch; the interiors
        # are always fully rewritten before they are read.
        for r, l_r in enumerate(plan["res_L"]):
            p = scr[2 * r]
            rows = p.shape[0]
            p[:, 0:padw] = jnp.zeros((rows, padw), jnp.float32)
            p[:, padw + l_r:padw + l_r + padw] = jnp.zeros((rows, padw), jnp.float32)

        H, W = plan["H0"], plan["W0"]
        masks = _row_masks(W, H * W)
        x = x_ref[0].astype(jnp.float32)            # (Cin_pad, H*W), extra rows are zero

        # conv_in: 3x3, stride 1, pad 1, no bias
        x = _conv3x3(x, nxt(), None, scr[0], scr[1], W, padw, masks)

        # x = DownBlock(x) + SpaceToChannel(x) per stage (fully fused)
        for si, st in enumerate(plan["stages"]):
            pad_ref, stk_ref = scr[2 * si], scr[2 * si + 1]
            h = x
            for _ in range(st["n_res"]):
                h = _resblock(h, nxt(), nxt(), nxt(), nxt(), nxt(), nxt(), nxt(), nxt(),
                              pad_ref, stk_ref, W, padw, masks, st["groups"], eps)
            x = _down_fused(h, x, nxt(), nxt(), nxt(), pad_ref, stk_ref, W, padw)
            H, W = H // 2, W // 2
            masks = _row_masks(W, H * W)

        # x = final(x) + x
        pad_ref, stk_ref = scr[-2], scr[-1]
        xin = x
        for _ in range(plan["n_final"]):
            x = _resblock(x, nxt(), nxt(), nxt(), nxt(), nxt(), nxt(), nxt(), nxt(),
                          pad_ref, stk_ref, W, padw, masks, plan["final_groups"], eps)
        x = x + xin

        # head: conv_out (1x1, no bias) + Reduce('(rep c)->c', mean), folded into one matmul
        o_ref[0] = jnp.dot(nxt(), x, preferred_element_type=jnp.float32).astype(o_ref.dtype)

    return kernel


def _flatten_params(params):
    flat = [params["conv_in_w"]]
    for st in params["stages"]:
        for rb in st["res"]:
            flat += [rb["g1"], rb["b1"], rb["w1"], rb["cb1"],
                     rb["g2"], rb["b2"], rb["w2"], rb["cb2"]]
        flat += [st["down_wfold"], st["down_b"], st["subsample"]]
    for rb in params["final"]:
        flat += [rb["g1"], rb["b1"], rb["w1"], rb["cb1"],
                 rb["g2"], rb["b2"], rb["w2"], rb["cb2"]]
    flat.append(params["head_w"])
    return flat


def encoder_forward(params, x_nchw, cfg):
    """Whole-encoder forward as a SINGLE pallas_call; grid=(batch,) 'parallel'."""
    n, cin, H, W = x_nchw.shape
    x = x_nchw.reshape(n, cin, H * W).astype(jnp.float32)

    cin_pad = params["cin_pad"]
    if cin_pad != cin:
        x = jnp.pad(x, ((0, 0), (0, cin_pad - cin), (0, 0)))   # zero channels (tiny)

    bps = cfg.encoder_blocks_per_stage
    n_down = len(bps) - 1
    padw = ((W + 1 + 127) // 128) * 128      # >= W+1 so dy=-1 taps stay in the zero border
    assert padw >= W + 1

    stages_meta, res_L, scratch_shapes = [], [], []
    ch, Hc, Wc = cfg.ch_0, H, W
    for si in range(n_down):
        next_ch = min(ch * 2, cfg.ch_max)
        stages_meta.append(dict(n_res=bps[si], groups=_num_groups(ch)))
        L = Hc * Wc
        res_L.append(L)
        rows = max(ch, cin_pad) if si == 0 else ch
        krows = max(9 * rows, 8 * ch)
        scratch_shapes += [pltpu.VMEM((rows, padw + L + padw), jnp.float32),
                           pltpu.VMEM((krows, L), jnp.float32)]
        ch, Hc, Wc = next_ch, Hc // 2, Wc // 2
    Lf = Hc * Wc
    res_L.append(Lf)
    scratch_shapes += [pltpu.VMEM((cfg.ch_max, padw + Lf + padw), jnp.float32),
                       pltpu.VMEM((9 * cfg.ch_max, Lf), jnp.float32)]

    weights = _flatten_params(params)
    plan = dict(num_weights=len(weights), padw=padw, eps=1e-5, H0=H, W0=W,
                stages=stages_meta, n_final=bps[-1],
                final_groups=_num_groups(cfg.ch_max), res_L=res_L)

    clat = cfg.latent_channels
    in_specs = [pl.BlockSpec((1, cin_pad, H * W), lambda i: (i, 0, 0))]
    for w in weights:
        in_specs.append(pl.BlockSpec(w.shape, (lambda i, nd=w.ndim: (0,) * nd)))

    out = pl.pallas_call(
        _make_encoder_kernel(plan),
        out_shape=jax.ShapeDtypeStruct((n, clat, Lf), jnp.float32),
        grid=(n,),
        in_specs=in_specs,
        out_specs=pl.BlockSpec((1, clat, Lf), lambda i: (i, 0, 0)),
        scratch_shapes=scratch_shapes,
        compiler_params=pltpu.CompilerParams(dimension_semantics=("parallel",)),
    )(x, *weights)
    return out.reshape(n, clat, Hc, Wc)


# ===================================================================================
# Host-side parameter packing / folding (weights land in the layouts the kernel eats)
# ===================================================================================

def _num_groups(ch):
    # TODO(synk): exact GroupNorm group count of the reference ResBlock is not in the snippet.
    return max(1, ch // 8)


def _pack_conv3x3(w_oihw, cin_pad=None):
    """torch (Cout, Cin, 3, 3) -> kernel (Cout, 9*Cin), column = (kh*3+kw)*Cin + ci."""
    if cin_pad is not None and cin_pad != w_oihw.shape[1]:
        w_oihw = jnp.pad(w_oihw, ((0, 0), (0, cin_pad - w_oihw.shape[1]), (0, 0), (0, 0)))
    cout, cin = w_oihw.shape[:2]
    return jnp.transpose(w_oihw, (0, 2, 3, 1)).reshape(cout, 9 * cin)


def _make_subsample(H, W):
    """Constant 0/1 matrix (H*W, H*W/4) selecting the stride-2 spatial grid (top-left tap)."""
    W2 = W // 2
    L, L4 = H * W, (H // 2) * W2
    q = jnp.arange(L)[:, None]
    p2 = jnp.arange(L4)[None, :]
    src = (p2 // W2) * (2 * W) + (p2 % W2) * 2
    return (q == src).astype(jnp.float32)


def _fold_down_weights(w_1x1, ch, next_ch):
    """Fold DownBlock 1x1 conv + SpaceToChannel mean into one (next_ch, 8*ch) matrix.

    Columns are tap-major ((i*2+j)*ch + c) to match the stacked 2x2 slab; w_1x1 uses torch
    PixelUnshuffle channel order (c*4 + i*2 + j).  The last 4*ch columns implement
    Reduce('(r c) -> c', mean) on the unshuffled shortcut input (parameter-free).
    """
    rep = (4 * ch) // next_ch
    k = jnp.arange(4 * ch)
    tap_major_src = (k % ch) * 4 + (k // ch)
    w_taps = w_1x1[:, tap_major_src]
    r_nat = (k[None, :] % next_ch == jnp.arange(next_ch)[:, None]).astype(jnp.float32) / rep
    r_taps = r_nat[:, tap_major_src]
    return jnp.concatenate([w_taps, r_taps], axis=1)


def _fold_head_weights(w_out, ch, clat):
    """conv_out (1x1, no bias) + Reduce('(rep c) -> c', mean) folded into (clat, ch)."""
    rep = ch // clat
    m = (jnp.arange(ch)[None, :] % clat == jnp.arange(clat)[:, None]).astype(jnp.float32) / rep
    return w_out + m


def init_conv3x3(key, cin, cout, bias=True, cin_pad=None):
    kw, kb = jax.random.split(key)
    w_nat = jax.random.normal(kw, (cout, cin, 3, 3), jnp.float32) * (1.0 / ((9 * cin) ** 0.5))
    b = 0.01 * jax.random.normal(kb, (cout, 1), jnp.float32) if bias else None
    return w_nat, _pack_conv3x3(w_nat, cin_pad), b


def init_resblock(key, ch):
    k1, k2 = jax.random.split(key)
    w1n, w1p, b1 = init_conv3x3(k1, ch, ch)
    w2n, w2p, b2 = init_conv3x3(k2, ch, ch)
    return {"g1": jnp.ones((ch, 1), jnp.float32), "b1": jnp.zeros((ch, 1), jnp.float32),
            "w1": w1p, "w1_nat": w1n, "cb1": b1,
            "g2": jnp.ones((ch, 1), jnp.float32), "b2": jnp.zeros((ch, 1), jnp.float32),
            "w2": w2p, "w2_nat": w2n, "cb2": b2,
            "groups": _num_groups(ch)}


class EncoderConfig:
    sample_size = (16, 16)                 # square -> LandscapeToSquare is identity
    latent_channels = 4
    ch_0 = 8
    ch_max = 16
    encoder_blocks_per_stage = (1, 1, 1)   # two downsample stages: 16 -> 8 -> 4


def init_encoder(key, cfg):
    H, W = cfg.sample_size
    cin_pad = 8                                           # pad RGB->8 so slab rows stay 8-aligned
    ks = jax.random.split(key, 4)
    w_in_nat, w_in_pack, _ = init_conv3x3(ks[0], 3, cfg.ch_0, bias=False, cin_pad=cin_pad)
    params = {"conv_in_w": w_in_pack, "conv_in_w_nat": w_in_nat, "cin_pad": cin_pad}

    bps = cfg.encoder_blocks_per_stage
    stage_keys = jax.random.split(ks[1], max(1, len(bps) - 1))
    stages = []
    ch, Hc, Wc = cfg.ch_0, H, W
    for i, block_count in enumerate(bps[:-1]):
        next_ch = min(ch * 2, cfg.ch_max)
        rk = jax.random.split(stage_keys[i], block_count + 1)
        res = [init_resblock(rk[j], ch) for j in range(block_count)]
        kw, kb = jax.random.split(rk[-1])
        w1x1 = jax.random.normal(kw, (next_ch, 4 * ch), jnp.float32) * ((4 * ch) ** -0.5)
        b1x1 = 0.01 * jax.random.normal(kb, (next_ch, 1), jnp.float32)
        stages.append({"res": res,
                       "down_w_nat": w1x1, "down_b": b1x1,
                       "down_wfold": _fold_down_weights(w1x1, ch, next_ch),
                       "subsample": _make_subsample(Hc, Wc)})
        ch, Hc, Wc = next_ch, Hc // 2, Wc // 2
    params["stages"] = stages

    fkeys = jax.random.split(ks[2], bps[-1])
    params["final"] = [init_resblock(k, cfg.ch_max) for k in fkeys]

    w_out = jax.random.normal(ks[3], (cfg.latent_channels, cfg.ch_max), jnp.float32) \
        * (cfg.ch_max ** -0.5)
    params["w_out_nat"] = w_out
    params["head_w"] = _fold_head_weights(w_out, cfg.ch_max, cfg.latent_channels)
    return params


# ===================================================================================
# Pure-JAX reference (correctness check only)
# ===================================================================================

def _ref_gn_silu(x, gamma, beta, groups, eps=1e-5):
    n, c, h, w = x.shape
    xg = x.reshape(n, groups, c // groups, h, w)
    mean = xg.mean(axis=(2, 3, 4), keepdims=True)
    var = jnp.mean((xg - mean) ** 2, axis=(2, 3, 4), keepdims=True)
    xn = ((xg - mean) * jax.lax.rsqrt(var + eps)).reshape(n, c, h, w)
    y = xn * gamma.reshape(1, c, 1, 1) + beta.reshape(1, c, 1, 1)
    return y * jax.nn.sigmoid(y)


def _ref_conv3x3(x, w_nat, b):
    y = jax.lax.conv_general_dilated(x, w_nat, (1, 1), ((1, 1), (1, 1)),
                                     dimension_numbers=("NCHW", "OIHW", "NCHW"),
                                     precision=jax.lax.Precision.HIGHEST)
    return y if b is None else y + b.reshape(1, -1, 1, 1)


def _ref_unshuffle(x):
    n, c, h, w = x.shape
    x = x.reshape(n, c, h // 2, 2, w // 2, 2)
    return jnp.transpose(x, (0, 1, 3, 5, 2, 4)).reshape(n, 4 * c, h // 2, w // 2)


def _ref_resblock(x, rb):
    g = rb["groups"]
    t = _ref_gn_silu(x, rb["g1"][:, 0], rb["b1"][:, 0], g)
    t = _ref_conv3x3(t, rb["w1_nat"], rb["cb1"])
    t = _ref_gn_silu(t, rb["g2"][:, 0], rb["b2"][:, 0], g)
    t = _ref_conv3x3(t, rb["w2_nat"], rb["cb2"])
    return x + t


def encoder_reference(params, x):
    x = _ref_conv3x3(x, params["conv_in_w_nat"], None)
    for st in params["stages"]:
        h = x
        for rb in st["res"]:
            h = _ref_resblock(h, rb)
        uh = _ref_unshuffle(h)
        down = jnp.einsum("oc,nchw->nohw", st["down_w_nat"], uh,
                          precision=jax.lax.Precision.HIGHEST) \
            + st["down_b"].reshape(1, -1, 1, 1)
        ux = _ref_unshuffle(x)
        cnext = down.shape[1]
        rep = ux.shape[1] // cnext
        res = ux.reshape(ux.shape[0], rep, cnext, *ux.shape[2:]).mean(axis=1)
        x = down + res
    xin = x
    for rb in params["final"]:
        x = _ref_resblock(x, rb)
    x = x + xin
    clat = params["w_out_nat"].shape[0]
    rep = x.shape[1] // clat
    res = x.reshape(x.shape[0], rep, clat, *x.shape[2:]).mean(axis=1)
    return jnp.einsum("oc,nchw->nohw", params["w_out_nat"], x,
                      precision=jax.lax.Precision.HIGHEST) + res


# ===================================================================================

if __name__ == "__main__":
    cfg = EncoderConfig()
    key = jax.random.PRNGKey(0)
    kp, kx = jax.random.split(key)
    params = init_encoder(kp, cfg)

    H, W = cfg.sample_size
    x = jax.random.normal(kx, (2, 3, H, W), jnp.float32)

    fwd = jax.jit(lambda inp: encoder_forward(params, inp, cfg))
    out = fwd(x)
    jax.block_until_ready(out)

    n_down = len(cfg.encoder_blocks_per_stage) - 1
    exp_hw = H // (2 ** n_down)
    assert out.shape == (2, cfg.latent_channels, exp_hw, exp_hw), out.shape
    assert bool(jnp.all(jnp.isfinite(out)))

    ref = jax.jit(lambda inp: encoder_reference(params, inp))(x)
    max_err = float(jnp.max(jnp.abs(out - ref)))
    assert max_err < 1e-2, f"kernel/reference mismatch: max |diff| = {max_err}"

    print("KERNEL_OK")
</pallas_src>

<mosaic_0001>
module attributes {stable_mosaic.version = 11 : i64} {
  func.func @kernel(%arg0: i32, %arg1: memref<1x8x256xf32, #tpu.memory_space<vmem>>, %arg2: memref<8x72xf32, #tpu.memory_space<vmem>>, %arg3: memref<8x1xf32, #tpu.memory_space<vmem>>, %arg4: memref<8x1xf32, #tpu.memory_space<vmem>>, %arg5: memref<8x72xf32, #tpu.memory_space<vmem>>, %arg6: memref<8x1xf32, #tpu.memory_space<vmem>>, %arg7: memref<8x1xf32, #tpu.memory_space<vmem>>, %arg8: memref<8x1xf32, #tpu.memory_space<vmem>>, %arg9: memref<8x72xf32, #tpu.memory_space<vmem>>, %arg10: memref<8x1xf32, #tpu.memory_space<vmem>>, %arg11: memref<16x64xf32, #tpu.memory_space<vmem>>, %arg12: memref<16x1xf32, #tpu.memory_space<vmem>>, %arg13: memref<256x64xf32, #tpu.memory_space<vmem>>, %arg14: memref<16x1xf32, #tpu.memory_space<vmem>>, %arg15: memref<16x1xf32, #tpu.memory_space<vmem>>, %arg16: memref<16x144xf32, #tpu.memory_space<vmem>>, %arg17: memref<16x1xf32, #tpu.memory_space<vmem>>, %arg18: memref<16x1xf32, #tpu.memory_space<vmem>>, %arg19: memref<16x1xf32, #tpu.memory_space<vmem>>, %arg20: memref<16x144xf32, #tpu.memory_space<vmem>>, %arg21: memref<16x1xf32, #tpu.memory_space<vmem>>, %arg22: memref<16x128xf32, #tpu.memory_space<vmem>>, %arg23: memref<16x1xf32, #tpu.memory_space<vmem>>, %arg24: memref<64x16xf32, #tpu.memory_space<vmem>>, %arg25: memref<16x1xf32, #tpu.memory_space<vmem>>, %arg26: memref<16x1xf32, #tpu.memory_space<vmem>>, %arg27: memref<16x144xf32, #tpu.memory_space<vmem>>, %arg28: memref<16x1xf32, #tpu.memory_space<vmem>>, %arg29: memref<16x1xf32, #tpu.memory_space<vmem>>, %arg30: memref<16x1xf32, #tpu.memory_space<vmem>>, %arg31: memref<16x144xf32, #tpu.memory_space<vmem>>, %arg32: memref<16x1xf32, #tpu.memory_space<vmem>>, %arg33: memref<4x16xf32, #tpu.memory_space<vmem>>, %arg34: memref<1x4x16xf32, #tpu.memory_space<vmem>>, %arg35: memref<8x512xf32, #tpu.memory_space<vmem>>, %arg36: memref<72x256xf32, #tpu.memory_space<vmem>>, %arg37: memref<16x320xf32, #tpu.memory_space<vmem>>, %arg38: memref<144x64xf32, #tpu.memory_space<vmem>>, %arg39: memref<16x272xf32, #tpu.memory_space<vmem>>, %arg40: memref<144x16xf32, #tpu.memory_space<vmem>>) attributes {dimension_semantics = [#tpu.dimension_semantics<parallel>], iteration_bounds = array<i64: 2>, scalar_prefetch = 0 : i64, scratch_operands = 6 : i64, tpu.core_type = #tpu.core_type<tc>, window_params = [{transform_indices = @transform_0, window_bounds = array<i64: 1, 8, 256>}, {pipeline_mode = #tpu.pipeline_mode<synchronous>, transform_indices = @transform_1, window_bounds = array<i64: 8, 72>}, {pipeline_mode = #tpu.pipeline_mode<synchronous>, transform_indices = @transform_2, window_bounds = array<i64: 8, 1>}, {pipeline_mode = #tpu.pipeline_mode<synchronous>, transform_indices = @transform_3, window_bounds = array<i64: 8, 1>}, {pipeline_mode = #tpu.pipeline_mode<synchronous>, transform_indices = @transform_4, window_bounds = array<i64: 8, 72>}, {pipeline_mode = #tpu.pipeline_mode<synchronous>, transform_indices = @transform_5, window_bounds = array<i64: 8, 1>}, {pipeline_mode = #tpu.pipeline_mode<synchronous>, transform_indices = @transform_6, window_bounds = array<i64: 8, 1>}, {pipeline_mode = #tpu.pipeline_mode<synchronous>, transform_indices = @transform_7, window_bounds = array<i64: 8, 1>}, {pipeline_mode = #tpu.pipeline_mode<synchronous>, transform_indices = @transform_8, window_bounds = array<i64: 8, 72>}, {pipeline_mode = #tpu.pipeline_mode<synchronous>, transform_indices = @transform_9, window_bounds = array<i64: 8, 1>}, {pipeline_mode = #tpu.pipeline_mode<synchronous>, transform_indices = @transform_10, window_bounds = array<i64: 16, 64>}, {pipeline_mode = #tpu.pipeline_mode<synchronous>, transform_indices = @transform_11, window_bounds = array<i64: 16, 1>}, {pipeline_mode = #tpu.pipeline_mode<synchronous>, transform_indices = @transform_12, window_bounds = array<i64: 256, 64>}, {pipeline_mode = #tpu.pipeline_mode<synchronous>, transform_indices = @transform_13, window_bounds = array<i64: 16, 1>}, {pipeline_mode = #tpu.pipeline_mode<synchronous>, transform_indices = @transform_14, window_bounds = array<i64: 16, 1>}, {pipeline_mode = #tpu.pipeline_mode<synchronous>, transform_indices = @transform_15, window_bounds = array<i64: 16, 144>}, {pipeline_mode = #tpu.pipeline_mode<synchronous>, transform_indices = @transform_16, window_bounds = array<i64: 16, 1>}, {pipeline_mode = #tpu.pipeline_mode<synchronous>, transform_indices = @transform_17, window_bounds = array<i64: 16, 1>}, {pipeline_mode = #tpu.pipeline_mode<synchronous>, transform_indices = @transform_18, window_bounds = array<i64: 16, 1>}, {pipeline_mode = #tpu.pipeline_mode<synchronous>, transform_indices = @transform_19, window_bounds = array<i64: 16, 144>}, {pipeline_mode = #tpu.pipeline_mode<synchronous>, transform_indices = @transform_20, window_bounds = array<i64: 16, 1>}, {pipeline_mode = #tpu.pipeline_mode<synchronous>, transform_indices = @transform_21, window_bounds = array<i64: 16, 128>}, {pipeline_mode = #tpu.pipeline_mode<synchronous>, transform_indices = @transform_22, window_bounds = array<i64: 16, 1>}, {pipeline_mode = #tpu.pipeline_mode<synchronous>, transform_indices = @transform_23, window_bounds = array<i64: 64, 16>}, {pipeline_mode = #tpu.pipeline_mode<synchronous>, transform_indices = @transform_24, window_bounds = array<i64: 16, 1>}, {pipeline_mode = #tpu.pipeline_mode<synchronous>, transform_indices = @transform_25, window_bounds = array<i64: 16, 1>}, {pipeline_mode = #tpu.pipeline_mode<synchronous>, transform_indices = @transform_26, window_bounds = array<i64: 16, 144>}, {pipeline_mode = #tpu.pipeline_mode<synchronous>, transform_indices = @transform_27, window_bounds = array<i64: 16, 1>}, {pipeline_mode = #tpu.pipeline_mode<synchronous>, transform_indices = @transform_28, window_bounds = array<i64: 16, 1>}, {pipeline_mode = #tpu.pipeline_mode<synchronous>, transform_indices = @transform_29, window_bounds = array<i64: 16, 1>}, {pipeline_mode = #tpu.pipeline_mode<synchronous>, transform_indices = @transform_30, window_bounds = array<i64: 16, 144>}, {pipeline_mode = #tpu.pipeline_mode<synchronous>, transform_indices = @transform_31, window_bounds = array<i64: 16, 1>}, {pipeline_mode = #tpu.pipeline_mode<synchronous>, transform_indices = @transform_32, window_bounds = array<i64: 4, 16>}, {transform_indices = @transform_33, window_bounds = array<i64: 1, 4, 16>}]} {
    %cst = arith.constant 0.000000e+00 : f32
    %0 = vector.broadcast %cst : f32 to vector<8x128xf32>
    %c0 = arith.constant 0 : index
    %c0_0 = arith.constant 0 : index
    %1 = vector.load %arg35[%c0, %c0_0] : memref<8x512xf32, #tpu.memory_space<vmem>>, vector<8x128xf32>
    tpu.vector_store %arg35[%c0, %c0_0], %0 {strides = array<i32>} : memref<8x512xf32, #tpu.memory_space<vmem>>, vector<8x128xf32>,
    %cst_1 = arith.constant 0.000000e+00 : f32
    %2 = vector.broadcast %cst_1 : f32 to vector<8x128xf32>
    %c0_2 = arith.constant 0 : index
    %c384 = arith.constant 384 : index
    %3 = vector.load %arg35[%c0_2, %c384] : memref<8x512xf32, #tpu.memory_space<vmem>>, vector<8x128xf32>
    tpu.vector_store %arg35[%c0_2, %c384], %2 {strides = array<i32>} : memref<8x512xf32, #tpu.memory_space<vmem>>, vector<8x128xf32>,
    %cst_3 = arith.constant 0.000000e+00 : f32
    %4 = vector.broadcast %cst_3 : f32 to vector<16x128xf32>
    %c0_4 = arith.constant 0 : index
    %c0_5 = arith.constant 0 : index
    %5 = vector.load %arg37[%c0_4, %c0_5] : memref<16x320xf32, #tpu.memory_space<vmem>>, vector<16x128xf32>
    tpu.vector_store %arg37[%c0_4, %c0_5], %4 {strides = array<i32>} : memref<16x320xf32, #tpu.memory_space<vmem>>, vector<16x128xf32>,
    %cst_6 = arith.constant 0.000000e+00 : f32
    %6 = vector.broadcast %cst_6 : f32 to vector<16x128xf32>
    %c0_7 = arith.constant 0 : index
    %c192 = arith.constant 192 : index
    %7 = vector.load %arg37[%c0_7, %c192] : memref<16x320xf32, #tpu.memory_space<vmem>>, vector<16x128xf32>
    tpu.vector_store %arg37[%c0_7, %c192], %6 {strides = array<i32>} : memref<16x320xf32, #tpu.memory_space<vmem>>, vector<16x128xf32>,
    %cst_8 = arith.constant 0.000000e+00 : f32
    %8 = vector.broadcast %cst_8 : f32 to vector<16x128xf32>
    %c0_9 = arith.constant 0 : index
    %c0_10 = arith.constant 0 : index
    %9 = vector.load %arg39[%c0_9, %c0_10] : memref<16x272xf32, #tpu.memory_space<vmem>>, vector<16x128xf32>
    tpu.vector_store %arg39[%c0_9, %c0_10], %8 {strides = array<i32>} : memref<16x272xf32, #tpu.memory_space<vmem>>, vector<16x128xf32>,
    %cst_11 = arith.constant 0.000000e+00 : f32
    %10 = vector.broadcast %cst_11 : f32 to vector<16x128xf32>
    %c0_12 = arith.constant 0 : index
    %c144 = arith.constant 144 : index
    %11 = vector.load %arg39[%c0_12, %c144] : memref<16x272xf32, #tpu.memory_space<vmem>>, vector<16x128xf32>
    tpu.vector_store %arg39[%c0_12, %c144], %10 {strides = array<i32>} : memref<16x272xf32, #tpu.memory_space<vmem>>, vector<16x128xf32>,
    %12 = tpu.iota {dimensions = array<i32: 1>} : vector<1x256xi32>
    %c16_i32 = arith.constant 16 : i32
    %c0_i32 = arith.constant 0 : i32
    %13 = arith.cmpi eq, %c16_i32, %c0_i32 : i32
    %c1_i32 = arith.constant 1 : i32
    %14 = arith.select %13, %c1_i32, %c16_i32 : i32
    %15 = vector.broadcast %14 : i32 to vector<1x256xi32>
    %16 = arith.remsi %12, %15 : vector<1x256xi32>
    %c0_i32_13 = arith.constant 0 : i32
    %17 = vector.broadcast %c0_i32_13 : i32 to vector<1x256xi32>
    %18 = arith.cmpi ne, %16, %17 : vector<1x256xi32>
    %c0_i32_14 = arith.constant 0 : i32
    %19 = vector.broadcast %c0_i32_14 : i32 to vector<1x256xi32>
    %20 = arith.cmpi slt, %16, %19 : vector<1x256xi32>
    %c0_i32_15 = arith.constant 0 : i32
    %21 = arith.cmpi slt, %14, %c0_i32_15 : i32
    %22 = vector.broadcast %21 : i1 to vector<1x256xi1>
    %23 = vector.broadcast %22 : vector<1x256xi1> to vector<1x256xi1>
    %24 = arith.xori %20, %23 : vector<1x256xi1>
    %25 = arith.andi %24, %18 : vector<1x256xi1>
    %26 = vector.broadcast %14 : i32 to vector<1x256xi32>
    %27 = arith.addi %16, %26 : vector<1x256xi32>
    %28 = arith.select %25, %27, %16 : vector<1x256xi1>, vector<1x256xi32>
    %c1_i32_16 = arith.constant 1 : i32
    %29 = vector.broadcast %c1_i32_16 : i32 to vector<1x256xi32>
    %30 = arith.cmpi sge, %28, %29 : vector<1x256xi32>
    %c14_i32 = arith.constant 14 : i32
    %31 = vector.broadcast %c14_i32 : i32 to vector<1x256xi32>
    %32 = arith.cmpi sle, %28, %31 : vector<1x256xi32>
    %c0_17 = arith.constant 0 : index
    %c0_18 = arith.constant 0 : index
    %c0_19 = arith.constant 0 : index
    %33 = vector.load %arg1[%c0_17, %c0_18, %c0_19] : memref<1x8x256xf32, #tpu.memory_space<vmem>>, vector<1x8x256xf32>
    %34 = vector.shape_cast %33 : vector<1x8x256xf32> to vector<8x256xf32>
    %c0_20 = arith.constant 0 : index
    %c0_21 = arith.constant 0 : index
    %35 = vector.load %arg2[%c0_20, %c0_21] : memref<8x72xf32, #tpu.memory_space<vmem>>, vector<8x72xf32>
    %c0_22 = arith.constant 0 : index
    %c128 = arith.constant 128 : index
    %36 = vector.load %arg35[%c0_22, %c128] : memref<8x512xf32, #tpu.memory_space<vmem>>, vector<8x256xf32>
    tpu.vector_store %arg35[%c0_22, %c128], %34 {strides = array<i32>} : memref<8x512xf32, #tpu.memory_space<vmem>>, vector<8x256xf32>,
    %c0_23 = arith.constant 0 : index
    %c111 = arith.constant 111 : index
    %37 = vector.load %arg35[%c0_23, %c111] : memref<8x512xf32, #tpu.memory_space<vmem>>, vector<8x256xf32>
    %cst_24 = arith.constant 0.000000e+00 : f32
    %38 = vector.shape_cast %30 : vector<1x256xi1> to vector<1x256xi1>
    %39 = vector.broadcast %38 : vector<1x256xi1> to vector<8x256xi1>
    %40 = vector.broadcast %cst_24 : f32 to vector<8x256xf32>
    %41 = arith.select %39, %37, %40 : vector<8x256xi1>, vector<8x256xf32>
    %c0_25 = arith.constant 0 : index
    %c0_26 = arith.constant 0 : index
    %42 = vector.load %arg36[%c0_25, %c0_26] : memref<72x256xf32, #tpu.memory_space<vmem>>, vector<8x256xf32>
    tpu.vector_store %arg36[%c0_25, %c0_26], %41 {strides = array<i32>} : memref<72x256xf32, #tpu.memory_space<vmem>>, vector<8x256xf32>,
    %c0_27 = arith.constant 0 : index
    %c112 = arith.constant 112 : index
    %43 = vector.load %arg35[%c0_27, %c112] : memref<8x512xf32, #tpu.memory_space<vmem>>, vector<8x256xf32>
    %c8 = arith.constant 8 : index
    %c0_28 = arith.constant 0 : index
    %44 = vector.load %arg36[%c8, %c0_28] : memref<72x256xf32, #tpu.memory_space<vmem>>, vector<8x256xf32>
    tpu.vector_store %arg36[%c8, %c0_28], %43 {strides = array<i32>} : memref<72x256xf32, #tpu.memory_space<vmem>>, vector<8x256xf32>,
    %c0_29 = arith.constant 0 : index
    %c113 = arith.constant 113 : index
    %45 = vector.load %arg35[%c0_29, %c113] : memref<8x512xf32, #tpu.memory_space<vmem>>, vector<8x256xf32>
    %cst_30 = arith.constant 0.000000e+00 : f32
    %46 = vector.shape_cast %32 : vector<1x256xi1> to vector<1x256xi1>
    %47 = vector.broadcast %46 : vector<1x256xi1> to vector<8x256xi1>
    %48 = vector.broadcast %cst_30 : f32 to vector<8x256xf32>
    %49 = arith.select %47, %45, %48 : vector<8x256xi1>, vector<8x256xf32>
    %c16 = arith.constant 16 : index
    %c0_31 = arith.constant 0 : index
    %50 = vector.load %arg36[%c16, %c0_31] : memref<72x256xf32, #tpu.memory_space<vmem>>, vector<8x256xf32>
    tpu.vector_store %arg36[%c16, %c0_31], %49 {strides = array<i32>} : memref<72x256xf32, #tpu.memory_space<vmem>>, vector<8x256xf32>,
    %c0_32 = arith.constant 0 : index
    %c127 = arith.constant 127 : index
    %51 = vector.load %arg35[%c0_32, %c127] : memref<8x512xf32, #tpu.memory_space<vmem>>, vector<8x256xf32>
    %cst_33 = arith.constant 0.000000e+00 : f32
    %52 = vector.shape_cast %30 : vector<1x256xi1> to vector<1x256xi1>
    %53 = vector.broadcast %52 : vector<1x256xi1> to vector<8x256xi1>
    %54 = vector.broadcast %cst_33 : f32 to vector<8x256xf32>
    %55 = arith.select %53, %51, %54 : vector<8x256xi1>, vector<8x256xf32>
    %c24 = arith.constant 24 : index
    %c0_34 = arith.constant 0 : index
    %56 = vector.load %arg36[%c24, %c0_34] : memref<72x256xf32, #tpu.memory_space<vmem>>, vector<8x256xf32>
    tpu.vector_store %arg36[%c24, %c0_34], %55 {strides = array<i32>} : memref<72x256xf32, #tpu.memory_space<vmem>>, vector<8x256xf32>,
    %c0_35 = arith.constant 0 : index
    %c128_36 = arith.constant 128 : index
    %57 = vector.load %arg35[%c0_35, %c128_36] : memref<8x512xf32, #tpu.memory_space<vmem>>, vector<8x256xf32>
    %c32 = arith.constant 32 : index
    %c0_37 = arith.constant 0 : index
    %58 = vector.load %arg36[%c32, %c0_37] : memref<72x256xf32, #tpu.memory_space<vmem>>, vector<8x256xf32>
    tpu.vector_store %arg36[%c32, %c0_37], %57 {strides = array<i32>} : memref<72x256xf32, #tpu.memory_space<vmem>>, vector<8x256xf32>,
    %c0_38 = arith.constant 0 : index
    %c129 = arith.constant 129 : index
    %59 = vector.load %arg35[%c0_38, %c129] : memref<8x512xf32, #tpu.memory_space<vmem>>, vector<8x256xf32>
    %cst_39 = arith.constant 0.000000e+00 : f32
    %60 = vector.shape_cast %32 : vector<1x256xi1> to vector<1x256xi1>
    %61 = vector.broadcast %60 : vector<1x256xi1> to vector<8x256xi1>
    %62 = vector.broadcast %cst_39 : f32 to vector<8x256xf32>
    %63 = arith.select %61, %59, %62 : vector<8x256xi1>, vector<8x256xf32>
    %c40 = arith.constant 40 : index
    %c0_40 = arith.constant 0 : index
    %64 = vector.load %arg36[%c40, %c0_40] : memref<72x256xf32, #tpu.memory_space<vmem>>, vector<8x256xf32>
    tpu.vector_store %arg36[%c40, %c0_40], %63 {strides = array<i32>} : memref<72x256xf32, #tpu.memory_space<vmem>>, vector<8x256xf32>,
    %c0_41 = arith.constant 0 : index
    %c143 = arith.constant 143 : index
    %65 = vector.load %arg35[%c0_41, %c143] : memref<8x512xf32, #tpu.memory_space<vmem>>, vector<8x256xf32>
    %cst_42 = arith.constant 0.000000e+00 : f32
    %66 = vector.shape_cast %30 : vector<1x256xi1> to vector<1x256xi1>
    %67 = vector.broadcast %66 : vector<1x256xi1> to vector<8x256xi1>
    %68 = vector.broadcast %cst_42 : f32 to vector<8x256xf32>
    %69 = arith.select %67, %65, %68 : vector<8x256xi1>, vector<8x256xf32>
    %c48 = arith.constant 48 : index
    %c0_43 = arith.constant 0 : index
    %70 = vector.load %arg36[%c48, %c0_43] : memref<72x256xf32, #tpu.memory_space<vmem>>, vector<8x256xf32>
    tpu.vector_store %arg36[%c48, %c0_43], %69 {strides = array<i32>} : memref<72x256xf32, #tpu.memory_space<vmem>>, vector<8x256xf32>,
    %c0_44 = arith.constant 0 : index
    %c144_45 = arith.constant 144 : index
    %71 = vector.load %arg35[%c0_44, %c144_45] : memref<8x512xf32, #tpu.memory_space<vmem>>, vector<8x256xf32>
    %c56 = arith.constant 56 : index
    %c0_46 = arith.constant 0 : index
    %72 = vector.load %arg36[%c56, %c0_46] : memref<72x256xf32, #tpu.memory_space<vmem>>, vector<8x256xf32>
    tpu.vector_store %arg36[%c56, %c0_46], %71 {strides = array<i32>} : memref<72x256xf32, #tpu.memory_space<vmem>>, vector<8x256xf32>,
    %c0_47 = arith.constant 0 : index
    %c145 = arith.constant 145 : index
    %73 = vector.load %arg35[%c0_47, %c145] : memref<8x512xf32, #tpu.memory_space<vmem>>, vector<8x256xf32>
    %cst_48 = arith.constant 0.000000e+00 : f32
    %74 = vector.shape_cast %32 : vector<1x256xi1> to vector<1x256xi1>
    %75 = vector.broadcast %74 : vector<1x256xi1> to vector<8x256xi1>
    %76 = vector.broadcast %cst_48 : f32 to vector<8x256xf32>
    %77 = arith.select %75, %73, %76 : vector<8x256xi1>, vector<8x256xf32>
    %c64 = arith.constant 64 : index
    %c0_49 = arith.constant 0 : index
    %78 = vector.load %arg36[%c64, %c0_49] : memref<72x256xf32, #tpu.memory_space<vmem>>, vector<8x256xf32>
    tpu.vector_store %arg36[%c64, %c0_49], %77 {strides = array<i32>} : memref<72x256xf32, #tpu.memory_space<vmem>>, vector<8x256xf32>,
    %c0_50 = arith.constant 0 : index
    %c0_51 = arith.constant 0 : index
    %79 = vector.load %arg36[%c0_50, %c0_51] : memref<72x256xf32, #tpu.memory_space<vmem>>, vector<72x256xf32>
    %cst_52 = arith.constant dense<0.000000e+00> : vector<8x256xf32>
    %80 = tpu.matmul %35, %79, %cst_52 {dimension_numbers = #tpu.dot_dimension_numbers<[1], [0], [0], [1], [0, 0, 1, 1], [], []>} : vector<8x72xf32>, vector<72x256xf32>, vector<8x256xf32> -> vector<8x256xf32>
    %c0_53 = arith.constant 0 : index
    %c0_54 = arith.constant 0 : index
    %81 = vector.load %arg3[%c0_53, %c0_54] : memref<8x1xf32, #tpu.memory_space<vmem>>, vector<8x1xf32>
    %c0_55 = arith.constant 0 : index
    %c0_56 = arith.constant 0 : index
    %82 = vector.load %arg4[%c0_55, %c0_56] : memref<8x1xf32, #tpu.memory_space<vmem>>, vector<8x1xf32>
    %c0_57 = arith.constant 0 : index
    %c0_58 = arith.constant 0 : index
    %83 = vector.load %arg5[%c0_57, %c0_58] : memref<8x72xf32, #tpu.memory_space<vmem>>, vector<8x72xf32>
    %c0_59 = arith.constant 0 : index
    %c0_60 = arith.constant 0 : index
    %84 = vector.load %arg6[%c0_59, %c0_60] : memref<8x1xf32, #tpu.memory_space<vmem>>, vector<8x1xf32>
    %c0_61 = arith.constant 0 : index
    %c0_62 = arith.constant 0 : index
    %85 = vector.load %arg7[%c0_61, %c0_62] : memref<8x1xf32, #tpu.memory_space<vmem>>, vector<8x1xf32>
    %c0_63 = arith.constant 0 : index
    %c0_64 = arith.constant 0 : index
    %86 = vector.load %arg8[%c0_63, %c0_64] : memref<8x1xf32, #tpu.memory_space<vmem>>, vector<8x1xf32>
    %c0_65 = arith.constant 0 : index
    %c0_66 = arith.constant 0 : index
    %87 = vector.load %arg9[%c0_65, %c0_66] : memref<8x72xf32, #tpu.memory_space<vmem>>, vector<8x72xf32>
    %c0_67 = arith.constant 0 : index
    %c0_68 = arith.constant 0 : index
    %88 = vector.load %arg10[%c0_67, %c0_68] : memref<8x1xf32, #tpu.memory_space<vmem>>, vector<8x1xf32>
    %cst_69 = arith.constant dense<0.000000e+00> : vector<8xf32>
    %89 = vector.multi_reduction <add>, %80, %cst_69 [1] : vector<8x256xf32> to vector<8xf32>
    %90 = vector.shape_cast %89 : vector<8xf32> to vector<8x1xf32>
    %cst_70 = arith.constant dense<0.000000e+00> : vector<1xf32>
    %91 = vector.multi_reduction <add>, %90, %cst_70 [0] : vector<8x1xf32> to vector<1xf32>
    %92 = vector.shape_cast %91 : vector<1xf32> to vector<1x1xf32>
    %cst_71 = arith.constant 4.8828125E-4 : f32
    %93 = vector.broadcast %cst_71 : f32 to vector<1x1xf32>
    %94 = arith.mulf %92, %93 : vector<1x1xf32>
    %95 = vector.broadcast %94 : vector<1x1xf32> to vector<8x256xf32>
    %96 = arith.subf %80, %95 : vector<8x256xf32>
    %97 = arith.mulf %96, %96 : vector<8x256xf32>
    %cst_72 = arith.constant dense<0.000000e+00> : vector<8xf32>
    %98 = vector.multi_reduction <add>, %97, %cst_72 [1] : vector<8x256xf32> to vector<8xf32>
    %99 = vector.shape_cast %98 : vector<8xf32> to vector<8x1xf32>
    %cst_73 = arith.constant dense<0.000000e+00> : vector<1xf32>
    %100 = vector.multi_reduction <add>, %99, %cst_73 [0] : vector<8x1xf32> to vector<1xf32>
    %101 = vector.shape_cast %100 : vector<1xf32> to vector<1x1xf32>
    %cst_74 = arith.constant 4.8828125E-4 : f32
    %102 = vector.broadcast %cst_74 : f32 to vector<1x1xf32>
    %103 = arith.mulf %101, %102 : vector<1x1xf32>
    %cst_75 = arith.constant 9.99999974E-6 : f32
    %104 = vector.broadcast %cst_75 : f32 to vector<1x1xf32>
    %105 = arith.addf %103, %104 : vector<1x1xf32>
    %106 = math.rsqrt %105 : vector<1x1xf32>
    %107 = vector.broadcast %106 : vector<1x1xf32> to vector<8x256xf32>
    %108 = arith.mulf %96, %107 : vector<8x256xf32>
    %109 = vector.broadcast %81 : vector<8x1xf32> to vector<8x256xf32>
    %110 = arith.mulf %108, %109 : vector<8x256xf32>
    %111 = vector.broadcast %82 : vector<8x1xf32> to vector<8x256xf32>
    %112 = arith.addf %110, %111 : vector<8x256xf32>
    %113 = arith.negf %112 : vector<8x256xf32>
    %114 = math.exp %113 : vector<8x256xf32>
    %cst_76 = arith.constant 1.000000e+00 : f32
    %115 = vector.broadcast %cst_76 : f32 to vector<8x256xf32>
    %116 = arith.addf %115, %114 : vector<8x256xf32>
    %117 = arith.divf %115, %116 : vector<8x256xf32>
    %118 = arith.mulf %112, %117 : vector<8x256xf32>
    %c0_77 = arith.constant 0 : index
    %c128_78 = arith.constant 128 : index
    %119 = vector.load %arg35[%c0_77, %c128_78] : memref<8x512xf32, #tpu.memory_space<vmem>>, vector<8x256xf32>
    tpu.vector_store %arg35[%c0_77, %c128_78], %118 {strides = array<i32>} : memref<8x512xf32, #tpu.memory_space<vmem>>, vector<8x256xf32>,
    %c0_79 = arith.constant 0 : index
    %c111_80 = arith.constant 111 : index
    %120 = vector.load %arg35[%c0_79, %c111_80] : memref<8x512xf32, #tpu.memory_space<vmem>>, vector<8x256xf32>
    %cst_81 = arith.constant 0.000000e+00 : f32
    %121 = vector.shape_cast %30 : vector<1x256xi1> to vector<1x256xi1>
    %122 = vector.broadcast %121 : vector<1x256xi1> to vector<8x256xi1>
    %123 = vector.broadcast %cst_81 : f32 to vector<8x256xf32>
    %124 = arith.select %122, %120, %123 : vector<8x256xi1>, vector<8x256xf32>
    %c0_82 = arith.constant 0 : index
    %c0_83 = arith.constant 0 : index
    %125 = vector.load %arg36[%c0_82, %c0_83] : memref<72x256xf32, #tpu.memory_space<vmem>>, vector<8x256xf32>
    tpu.vector_store %arg36[%c0_82, %c0_83], %124 {strides = array<i32>} : memref<72x256xf32, #tpu.memory_space<vmem>>, vector<8x256xf32>,
    %c0_84 = arith.constant 0 : index
    %c112_85 = arith.constant 112 : index
    %126 = vector.load %arg35[%c0_84, %c112_85] : memref<8x512xf32, #tpu.memory_space<vmem>>, vector<8x256xf32>
    %c8_86 = arith.constant 8 : index
    %c0_87 = arith.constant 0 : index
    %127 = vector.load %arg36[%c8_86, %c0_87] : memref<72x256xf32, #tpu.memory_space<vmem>>, vector<8x256xf32>
    tpu.vector_store %arg36[%c8_86, %c0_87], %126 {strides = array<i32>} : memref<72x256xf32, #tpu.memory_space<vmem>>, vector<8x256xf32>,
    %c0_88 = arith.constant 0 : index
    %c113_89 = arith.constant 113 : index
    %128 = vector.load %arg35[%c0_88, %c113_89] : memref<8x512xf32, #tpu.memory_space<vmem>>, vector<8x256xf32>
    %cst_90 = arith.constant 0.000000e+00 : f32
    %129 = vector.shape_cast %32 : vector<1x256xi1> to vector<1x256xi1>
    %130 = vector.broadcast %129 : vector<1x256xi1> to vector<8x256xi1>
    %131 = vector.broadcast %cst_90 : f32 to vector<8x256xf32>
    %132 = arith.select %130, %128, %131 : vector<8x256xi1>, vector<8x256xf32>
    %c16_91 = arith.constant 16 : index
    %c0_92 = arith.constant 0 : index
    %133 = vector.load %arg36[%c16_91, %c0_92] : memref<72x256xf32, #tpu.memory_space<vmem>>, vector<8x256xf32>
    tpu.vector_store %arg36[%c16_91, %c0_92], %132 {strides = array<i32>} : memref<72x256xf32, #tpu.memory_space<vmem>>, vector<8x256xf32>,
    %c0_93 = arith.constant 0 : index
    %c127_94 = arith.constant 127 : index
    %134 = vector.load %arg35[%c0_93, %c127_94] : memref<8x512xf32, #tpu.memory_space<vmem>>, vector<8x256xf32>
    %cst_95 = arith.constant 0.000000e+00 : f32
    %135 = vector.shape_cast %30 : vector<1x256xi1> to vector<1x256xi1>
    %136 = vector.broadcast %135 : vector<1x256xi1> to vector<8x256xi1>
    %137 = vector.broadcast %cst_95 : f32 to vector<8x256xf32>
    %138 = arith.select %136, %134, %137 : vector<8x256xi1>, vector<8x256xf32>
    %c24_96 = arith.constant 24 : index
    %c0_97 = arith.constant 0 : index
    %139 = vector.load %arg36[%c24_96, %c0_97] : memref<72x256xf32, #tpu.memory_space<vmem>>, vector<8x256xf32>
    tpu.vector_store %arg36[%c24_96, %c0_97], %138 {strides = array<i32>} : memref<72x256xf32, #tpu.memory_space<vmem>>, vector<8x256xf32>,
    %c0_98 = arith.constant 0 : index
    %c128_99 = arith.constant 128 : index
    %140 = vector.load %arg35[%c0_98, %c128_99] : memref<8x512xf32, #tpu.memory_space<vmem>>, vector<8x256xf32>
    %c32_100 = arith.constant 32 : index
    %c0_101 = arith.constant 0 : index
    %141 = vector.load %arg36[%c32_100, %c0_101] : memref<72x256xf32, #tpu.memory_space<vmem>>, vector<8x256xf32>
    tpu.vector_store %arg36[%c32_100, %c0_101], %140 {strides = array<i32>} : memref<72x256xf32, #tpu.memory_space<vmem>>, vector<8x256xf32>,
    %c0_102 = arith.constant 0 : index
    %c129_103 = arith.constant 129 : index
    %142 = vector.load %arg35[%c0_102, %c129_103] : memref<8x512xf32, #tpu.memory_space<vmem>>, vector<8x256xf32>
    %cst_104 = arith.constant 0.000000e+00 : f32
    %143 = vector.shape_cast %32 : vector<1x256xi1> to vector<1x256xi1>
    %144 = vector.broadcast %143 : vector<1x256xi1> to vector<8x256xi1>
    %145 = vector.broadcast %cst_104 : f32 to vector<8x256xf32>
    %146 = arith.select %144, %142, %145 : vector<8x256xi1>, vector<8x256xf32>
    %c40_105 = arith.constant 40 : index
    %c0_106 = arith.constant 0 : index
    %147 = vector.load %arg36[%c40_105, %c0_106] : memref<72x256xf32, #tpu.memory_space<vmem>>, vector<8x256xf32>
    tpu.vector_store %arg36[%c40_105, %c0_106], %146 {strides = array<i32>} : memref<72x256xf32, #tpu.memory_space<vmem>>, vector<8x256xf32>,
    %c0_107 = arith.constant 0 : index
    %c143_108 = arith.constant 143 : index
    %148 = vector.load %arg35[%c0_107, %c143_108] : memref<8x512xf32, #tpu.memory_space<vmem>>, vector<8x256xf32>
    %cst_109 = arith.constant 0.000000e+00 : f32
    %149 = vector.shape_cast %30 : vector<1x256xi1> to vector<1x256xi1>
    %150 = vector.broadcast %149 : vector<1x256xi1> to vector<8x256xi1>
    %151 = vector.broadcast %cst_109 : f32 to vector<8x256xf32>
    %152 = arith.select %150, %148, %151 : vector<8x256xi1>, vector<8x256xf32>
    %c48_110 = arith.constant 48 : index
    %c0_111 = arith.constant 0 : index
    %153 = vector.load %arg36[%c48_110, %c0_111] : memref<72x256xf32, #tpu.memory_space<vmem>>, vector<8x256xf32>
    tpu.vector_store %arg36[%c48_110, %c0_111], %152 {strides = array<i32>} : memref<72x256xf32, #tpu.memory_space<vmem>>, vector<8x256xf32>,
    %c0_112 = arith.constant 0 : index
    %c144_113 = arith.constant 144 : index
    %154 = vector.load %arg35[%c0_112, %c144_113] : memref<8x512xf32, #tpu.memory_space<vmem>>, vector<8x256xf32>
    %c56_114 = arith.constant 56 : index
    %c0_115 = arith.constant 0 : index
    %155 = vector.load %arg36[%c56_114, %c0_115] : memref<72x256xf32, #tpu.memory_space<vmem>>, vector<8x256xf32>
    tpu.vector_store %arg36[%c56_114, %c0_115], %154 {strides = array<i32>} : memref<72x256xf32, #tpu.memory_space<vmem>>, vector<8x256xf32>,
    %c0_116 = arith.constant 0 : index
    %c145_117 = arith.constant 145 : index
    %156 = vector.load %arg35[%c0_116, %c145_117] : memref<8x512xf32, #tpu.memory_space<vmem>>, vector<8x256xf32>
    %cst_118 = arith.constant 0.000000e+00 : f32
    %157 = vector.shape_cast %32 : vector<1x256xi1> to vector<1x256xi1>
    %158 = vector.broadcast %157 : vector<1x256xi1> to vector<8x256xi1>
    %159 = vector.broadcast %cst_118 : f32 to vector<8x256xf32>
    %160 = arith.select %158, %156, %159 : vector<8x256xi1>, vector<8x256xf32>
    %c64_119 = arith.constant 64 : index
    %c0_120 = arith.constant 0 : index
    %161 = vector.load %arg36[%c64_119, %c0_120] : memref<72x256xf32, #tpu.memory_space<vmem>>, vector<8x256xf32>
    tpu.vector_store %arg36[%c64_119, %c0_120], %160 {strides = array<i32>} : memref<72x256xf32, #tpu.memory_space<vmem>>, vector<8x256xf32>,
    %c0_121 = arith.constant 0 : index
    %c0_122 = arith.constant 0 : index
    %162 = vector.load %arg36[%c0_121, %c0_122] : memref<72x256xf32, #tpu.memory_space<vmem>>, vector<72x256xf32>
    %cst_123 = arith.constant dense<0.000000e+00> : vector<8x256xf32>
    %163 = tpu.matmul %83, %162, %cst_123 {dimension_numbers = #tpu.dot_dimension_numbers<[1], [0], [0], [1], [0, 0, 1, 1], [], []>} : vector<8x72xf32>, vector<72x256xf32>, vector<8x256xf32> -> vector<8x256xf32>
    %164 = vector.broadcast %84 : vector<8x1xf32> to vector<8x256xf32>
    %165 = arith.addf %163, %164 : vector<8x256xf32>
    %cst_124 = arith.constant dense<0.000000e+00> : vector<8xf32>
    %166 = vector.multi_reduction <add>, %165, %cst_124 [1] : vector<8x256xf32> to vector<8xf32>
    %167 = vector.shape_cast %166 : vector<8xf32> to vector<8x1xf32>
    %cst_125 = arith.constant dense<0.000000e+00> : vector<1xf32>
    %168 = vector.multi_reduction <add>, %167, %cst_125 [0] : vector<8x1xf32> to vector<1xf32>
    %169 = vector.shape_cast %168 : vector<1xf32> to vector<1x1xf32>
    %cst_126 = arith.constant 4.8828125E-4 : f32
    %170 = vector.broadcast %cst_126 : f32 to vector<1x1xf32>
    %171 = arith.mulf %169, %170 : vector<1x1xf32>
    %172 = vector.broadcast %171 : vector<1x1xf32> to vector<8x256xf32>
    %173 = arith.subf %165, %172 : vector<8x256xf32>
    %174 = arith.mulf %173, %173 : vector<8x256xf32>
    %cst_127 = arith.constant dense<0.000000e+00> : vector<8xf32>
    %175 = vector.multi_reduction <add>, %174, %cst_127 [1] : vector<8x256xf32> to vector<8xf32>
    %176 = vector.shape_cast %175 : vector<8xf32> to vector<8x1xf32>
    %cst_128 = arith.constant dense<0.000000e+00> : vector<1xf32>
    %177 = vector.multi_reduction <add>, %176, %cst_128 [0] : vector<8x1xf32> to vector<1xf32>
    %178 = vector.shape_cast %177 : vector<1xf32> to vector<1x1xf32>
    %cst_129 = arith.constant 4.8828125E-4 : f32
    %179 = vector.broadcast %cst_129 : f32 to vector<1x1xf32>
    %180 = arith.mulf %178, %179 : vector<1x1xf32>
    %cst_130 = arith.constant 9.99999974E-6 : f32
    %181 = vector.broadcast %cst_130 : f32 to vector<1x1xf32>
    %182 = arith.addf %180, %181 : vector<1x1xf32>
    %183 = math.rsqrt %182 : vector<1x1xf32>
    %184 = vector.broadcast %183 : vector<1x1xf32> to vector<8x256xf32>
    %185 = arith.mulf %173, %184 : vector<8x256xf32>
    %186 = vector.broadcast %85 : vector<8x1xf32> to vector<8x256xf32>
    %187 = arith.mulf %185, %186 : vector<8x256xf32>
    %188 = vector.broadcast %86 : vector<8x1xf32> to vector<8x256xf32>
    %189 = arith.addf %187, %188 : vector<8x256xf32>
    %190 = arith.negf %189 : vector<8x256xf32>
    %191 = math.exp %190 : vector<8x256xf32>
    %cst_131 = arith.constant 1.000000e+00 : f32
    %192 = vector.broadcast %cst_131 : f32 to vector<8x256xf32>
    %193 = arith.addf %192, %191 : vector<8x256xf32>
    %194 = arith.divf %192, %193 : vector<8x256xf32>
    %195 = arith.mulf %189, %194 : vector<8x256xf32>
    %c0_132 = arith.constant 0 : index
    %c128_133 = arith.constant 128 : index
    %196 = vector.load %arg35[%c0_132, %c128_133] : memref<8x512xf32, #tpu.memory_space<vmem>>, vector<8x256xf32>
    tpu.vector_store %arg35[%c0_132, %c128_133], %195 {strides = array<i32>} : memref<8x512xf32, #tpu.memory_space<vmem>>, vector<8x256xf32>,
    %c0_134 = arith.constant 0 : index
    %c111_135 = arith.constant 111 : index
    %197 = vector.load %arg35[%c0_134, %c111_135] : memref<8x512xf32, #tpu.memory_space<vmem>>, vector<8x256xf32>
    %cst_136 = arith.constant 0.000000e+00 : f32
    %198 = vector.shape_cast %30 : vector<1x256xi1> to vector<1x256xi1>
    %199 = vector.broadcast %198 : vector<1x256xi1> to vector<8x256xi1>
    %200 = vector.broadcast %cst_136 : f32 to vector<8x256xf32>
    %201 = arith.select %199, %197, %200 : vector<8x256xi1>, vector<8x256xf32>
    %c0_137 = arith.constant 0 : index
    %c0_138 = arith.constant 0 : index
    %202 = vector.load %arg36[%c0_137, %c0_138] : memref<72x256xf32, #tpu.memory_space<vmem>>, vector<8x256xf32>
    tpu.vector_store %arg36[%c0_137, %c0_138], %201 {strides = array<i32>} : memref<72x256xf32, #tpu.memory_space<vmem>>, vector<8x256xf32>,
    %c0_139 = arith.constant 0 : index
    %c112_140 = arith.constant 112 : index
    %203 = vector.load %arg35[%c0_139, %c112_140] : memref<8x512xf32, #tpu.memory_space<vmem>>, vector<8x256xf32>
    %c8_141 = arith.constant 8 : index
    %c0_142 = arith.constant 0 : index
    %204 = vector.load %arg36[%c8_141, %c0_142] : memref<72x256xf32, #tpu.memory_space<vmem>>, vector<8x256xf32>
    tpu.vector_store %arg36[%c8_141, %c0_142], %203 {strides = array<i32>} : memref<72x256xf32, #tpu.memory_space<vmem>>, vector<8x256xf32>,
    %c0_143 = arith.constant 0 : index
    %c113_144 = arith.constant 113 : index
    %205 = vector.load %arg35[%c0_143, %c113_144] : memref<8x512xf32, #tpu.memory_space<vmem>>, vector<8x256xf32>
    %cst_145 = arith.constant 0.000000e+00 : f32
    %206 = vector.shape_cast %32 : vector<1x256xi1> to vector<1x256xi1>
    %207 = vector.broadcast %206 : vector<1x256xi1> to vector<8x256xi1>
    %208 = vector.broadcast %cst_145 : f32 to vector<8x256xf32>
    %209 = arith.select %207, %205, %208 : vector<8x256xi1>, vector<8x256xf32>
    %c16_146 = arith.constant 16 : index
    %c0_147 = arith.constant 0 : index
    %210 = vector.load %arg36[%c16_146, %c0_147] : memref<72x256xf32, #tpu.memory_space<vmem>>, vector<8x256xf32>
    tpu.vector_store %arg36[%c16_146, %c0_147], %209 {strides = array<i32>} : memref<72x256xf32, #tpu.memory_space<vmem>>, vector<8x256xf32>,
    %c0_148 = arith.constant 0 : index
    %c127_149 = arith.constant 127 : index
    %211 = vector.load %arg35[%c0_148, %c127_149] : memref<8x512xf32, #tpu.memory_space<vmem>>, vector<8x256xf32>
    %cst_150 = arith.constant 0.000000e+00 : f32
    %212 = vector.shape_cast %30 : vector<1x256xi1> to vector<1x256xi1>
    %213 = vector.broadcast %212 : vector<1x256xi1> to vector<8x256xi1>
    %214 = vector.broadcast %cst_150 : f32 to vector<8x256xf32>
    %215 = arith.select %213, %211, %214 : vector<8x256xi1>, vector<8x256xf32>
    %c24_151 = arith.constant 24 : index
    %c0_152 = arith.constant 0 : index
    %216 = vector.load %arg36[%c24_151, %c0_152] : memref<72x256xf32, #tpu.memory_space<vmem>>, vector<8x256xf32>
    tpu.vector_store %arg36[%c24_151, %c0_152], %215 {strides = array<i32>} : memref<72x256xf32, #tpu.memory_space<vmem>>, vector<8x256xf32>,
    %c0_153 = arith.constant 0 : index
    %c128_154 = arith.constant 128 : index
    %217 = vector.load %arg35[%c0_153, %c128_154] : memref<8x512xf32, #tpu.memory_space<vmem>>, vector<8x256xf32>
    %c32_155 = arith.constant 32 : index
    %c0_156 = arith.constant 0 : index
    %218 = vector.load %arg36[%c32_155, %c0_156] : memref<72x256xf32, #tpu.memory_space<vmem>>, vector<8x256xf32>
    tpu.vector_store %arg36[%c32_155, %c0_156], %217 {strides = array<i32>} : memref<72x256xf32, #tpu.memory_space<vmem>>, vector<8x256xf32>,
    %c0_157 = arith.constant 0 : index
    %c129_158 = arith.constant 129 : index
    %219 = vector.load %arg35[%c0_157, %c129_158] : memref<8x512xf32, #tpu.memory_space<vmem>>, vector<8x256xf32>
    %cst_159 = arith.constant 0.000000e+00 : f32
    %220 = vector.shape_cast %32 : vector<1x256xi1> to vector<1x256xi1>
    %221 = vector.broadcast %220 : vector<1x256xi1> to vector<8x256xi1>
    %222 = vector.broadcast %cst_159 : f32 to vector<8x256xf32>
    %223 = arith.select %221, %219, %222 : vector<8x256xi1>, vector<8x256xf32>
    %c40_160 = arith.constant 40 : index
    %c0_161 = arith.constant 0 : index
    %224 = vector.load %arg36[%c40_160, %c0_161] : memref<72x256xf32, #tpu.memory_space<vmem>>, vector<8x256xf32>
    tpu.vector_store %arg36[%c40_160, %c0_161], %223 {strides = array<i32>} : memref<72x256xf32, #tpu.memory_space<vmem>>, vector<8x256xf32>,
    %c0_162 = arith.constant 0 : index
    %c143_163 = arith.constant 143 : index
    %225 = vector.load %arg35[%c0_162, %c143_163] : memref<8x512xf32, #tpu.memory_space<vmem>>, vector<8x256xf32>
    %cst_164 = arith.constant 0.000000e+00 : f32
    %226 = vector.shape_cast %30 : vector<1x256xi1> to vector<1x256xi1>
    %227 = vector.broadcast %226 : vector<1x256xi1> to vector<8x256xi1>
    %228 = vector.broadcast %cst_164 : f32 to vector<8x256xf32>
    %229 = arith.select %227, %225, %228 : vector<8x256xi1>, vector<8x256xf32>
    %c48_165 = arith.constant 48 : index
    %c0_166 = arith.constant 0 : index
    %230 = vector.load %arg36[%c48_165, %c0_166] : memref<72x256xf32, #tpu.memory_space<vmem>>, vector<8x256xf32>
    tpu.vector_store %arg36[%c48_165, %c0_166], %229 {strides = array<i32>} : memref<72x256xf32, #tpu.memory_space<vmem>>, vector<8x256xf32>,
    %c0_167 = arith.constant 0 : index
    %c144_168 = arith.constant 144 : index
    %231 = vector.load %arg35[%c0_167, %c144_168] : memref<8x512xf32, #tpu.memory_space<vmem>>, vector<8x256xf32>
    %c56_169 = arith.constant 56 : index
    %c0_170 = arith.constant 0 : index
    %232 = vector.load %arg36[%c56_169, %c0_170] : memref<72x256xf32, #tpu.memory_space<vmem>>, vector<8x256xf32>
    tpu.vector_store %arg36[%c56_169, %c0_170], %231 {strides = array<i32>} : memref<72x256xf32, #tpu.memory_space<vmem>>, vector<8x256xf32>,
    %c0_171 = arith.constant 0 : index
    %c145_172 = arith.constant 145 : index
    %233 = vector.load %arg35[%c0_171, %c145_172] : memref<8x512xf32, #tpu.memory_space<vmem>>, vector<8x256xf32>
    %cst_173 = arith.constant 0.000000e+00 : f32
    %234 = vector.shape_cast %32 : vector<1x256xi1> to vector<1x256xi1>
    %235 = vector.broadcast %234 : vector<1x256xi1> to vector<8x256xi1>
    %236 = vector.broadcast %cst_173 : f32 to vector<8x256xf32>
    %237 = arith.select %235, %233, %236 : vector<8x256xi1>, vector<8x256xf32>
    %c64_174 = arith.constant 64 : index
    %c0_175 = arith.constant 0 : index
    %238 = vector.load %arg36[%c64_174, %c0_175] : memref<72x256xf32, #tpu.memory_space<vmem>>, vector<8x256xf32>
    tpu.vector_store %arg36[%c64_174, %c0_175], %237 {strides = array<i32>} : memref<72x256xf32, #tpu.memory_space<vmem>>, vector<8x256xf32>,
    %c0_176 = arith.constant 0 : index
    %c0_177 = arith.constant 0 : index
    %239 = vector.load %arg36[%c0_176, %c0_177] : memref<72x256xf32, #tpu.memory_space<vmem>>, vector<72x256xf32>
    %cst_178 = arith.constant dense<0.000000e+00> : vector<8x256xf32>
    %240 = tpu.matmul %87, %239, %cst_178 {dimension_numbers = #tpu.dot_dimension_numbers<[1], [0], [0], [1], [0, 0, 1, 1], [], []>} : vector<8x72xf32>, vector<72x256xf32>, vector<8x256xf32> -> vector<8x256xf32>
    %241 = vector.broadcast %88 : vector<8x1xf32> to vector<8x256xf32>
    %242 = arith.addf %240, %241 : vector<8x256xf32>
    %243 = arith.addf %242, %80 : vector<8x256xf32>
    %c0_179 = arith.constant 0 : index
    %c0_180 = arith.constant 0 : index
    %244 = vector.load %arg11[%c0_179, %c0_180] : memref<16x64xf32, #tpu.memory_space<vmem>>, vector<16x64xf32>
    %c0_181 = arith.constant 0 : index
    %c0_182 = arith.constant 0 : index
    %245 = vector.load %arg12[%c0_181, %c0_182] : memref<16x1xf32, #tpu.memory_space<vmem>>, vector<16x1xf32>
    %c0_183 = arith.constant 0 : index
    %c0_184 = arith.constant 0 : index
    %246 = vector.load %arg13[%c0_183, %c0_184] : memref<256x64xf32, #tpu.memory_space<vmem>>, vector<256x64xf32>
    %c0_185 = arith.constant 0 : index
    %c128_186 = arith.constant 128 : index
    %247 = vector.load %arg35[%c0_185, %c128_186] : memref<8x512xf32, #tpu.memory_space<vmem>>, vector<8x256xf32>
    tpu.vector_store %arg35[%c0_185, %c128_186], %243 {strides = array<i32>} : memref<8x512xf32, #tpu.memory_space<vmem>>, vector<8x256xf32>,
    %c0_187 = arith.constant 0 : index
    %c128_188 = arith.constant 128 : index
    %248 = vector.load %arg35[%c0_187, %c128_188] : memref<8x512xf32, #tpu.memory_space<vmem>>, vector<8x256xf32>
    %c0_189 = arith.constant 0 : index
    %c0_190 = arith.constant 0 : index
    %249 = vector.load %arg36[%c0_189, %c0_190] : memref<72x256xf32, #tpu.memory_space<vmem>>, vector<8x256xf32>
    tpu.vector_store %arg36[%c0_189, %c0_190], %248 {strides = array<i32>} : memref<72x256xf32, #tpu.memory_space<vmem>>, vector<8x256xf32>,
    %c0_191 = arith.constant 0 : index
    %c129_192 = arith.constant 129 : index
    %250 = vector.load %arg35[%c0_191, %c129_192] : memref<8x512xf32, #tpu.memory_space<vmem>>, vector<8x256xf32>
    %c8_193 = arith.constant 8 : index
    %c0_194 = arith.constant 0 : index
    %251 = vector.load %arg36[%c8_193, %c0_194] : memref<72x256xf32, #tpu.memory_space<vmem>>, vector<8x256xf32>
    tpu.vector_store %arg36[%c8_193, %c0_194], %250 {strides = array<i32>} : memref<72x256xf32, #tpu.memory_space<vmem>>, vector<8x256xf32>,
    %c0_195 = arith.constant 0 : index
    %c144_196 = arith.constant 144 : index
    %252 = vector.load %arg35[%c0_195, %c144_196] : memref<8x512xf32, #tpu.memory_space<vmem>>, vector<8x256xf32>
    %c16_197 = arith.constant 16 : index
    %c0_198 = arith.constant 0 : index
    %253 = vector.load %arg36[%c16_197, %c0_198] : memref<72x256xf32, #tpu.memory_space<vmem>>, vector<8x256xf32>
    tpu.vector_store %arg36[%c16_197, %c0_198], %252 {strides = array<i32>} : memref<72x256xf32, #tpu.memory_space<vmem>>, vector<8x256xf32>,
    %c0_199 = arith.constant 0 : index
    %c145_200 = arith.constant 145 : index
    %254 = vector.load %arg35[%c0_199, %c145_200] : memref<8x512xf32, #tpu.memory_space<vmem>>, vector<8x256xf32>
    %c24_201 = arith.constant 24 : index
    %c0_202 = arith.constant 0 : index
    %255 = vector.load %arg36[%c24_201, %c0_202] : memref<72x256xf32, #tpu.memory_space<vmem>>, vector<8x256xf32>
    tpu.vector_store %arg36[%c24_201, %c0_202], %254 {strides = array<i32>} : memref<72x256xf32, #tpu.memory_space<vmem>>, vector<8x256xf32>,
    %c0_203 = arith.constant 0 : index
    %c128_204 = arith.constant 128 : index
    %256 = vector.load %arg35[%c0_203, %c128_204] : memref<8x512xf32, #tpu.memory_space<vmem>>, vector<8x256xf32>
    tpu.vector_store %arg35[%c0_203, %c128_204], %80 {strides = array<i32>} : memref<8x512xf32, #tpu.memory_space<vmem>>, vector<8x256xf32>,
    %c0_205 = arith.constant 0 : index
    %c128_206 = arith.constant 128 : index
    %257 = vector.load %arg35[%c0_205, %c128_206] : memref<8x512xf32, #tpu.memory_space<vmem>>, vector<8x256xf32>
    %c32_207 = arith.constant 32 : index
    %c0_208 = arith.constant 0 : index
    %258 = vector.load %arg36[%c32_207, %c0_208] : memref<72x256xf32, #tpu.memory_space<vmem>>, vector<8x256xf32>
    tpu.vector_store %arg36[%c32_207, %c0_208], %257 {strides = array<i32>} : memref<72x256xf32, #tpu.memory_space<vmem>>, vector<8x256xf32>,
    %c0_209 = arith.constant 0 : index
    %c129_210 = arith.constant 129 : index
    %259 = vector.load %arg35[%c0_209, %c129_210] : memref<8x512xf32, #tpu.memory_space<vmem>>, vector<8x256xf32>
    %c40_211 = arith.constant 40 : index
    %c0_212 = arith.constant 0 : index
    %260 = vector.load %arg36[%c40_211, %c0_212] : memref<72x256xf32, #tpu.memory_space<vmem>>, vector<8x256xf32>
    tpu.vector_store %arg36[%c40_211, %c0_212], %259 {strides = array<i32>} : memref<72x256xf32, #tpu.memory_space<vmem>>, vector<8x256xf32>,
    %c0_213 = arith.constant 0 : index
    %c144_214 = arith.constant 144 : index
    %261 = vector.load %arg35[%c0_213, %c144_214] : memref<8x512xf32, #tpu.memory_space<vmem>>, vector<8x256xf32>
    %c48_215 = arith.constant 48 : index
    %c0_216 = arith.constant 0 : index
    %262 = vector.load %arg36[%c48_215, %c0_216] : memref<72x256xf32, #tpu.memory_space<vmem>>, vector<8x256xf32>
    tpu.vector_store %arg36[%c48_215, %c0_216], %261 {strides = array<i32>} : memref<72x256xf32, #tpu.memory_space<vmem>>, vector<8x256xf32>,
    %c0_217 = arith.constant 0 : index
    %c145_218 = arith.constant 145 : index
    %263 = vector.load %arg35[%c0_217, %c145_218] : memref<8x512xf32, #tpu.memory_space<vmem>>, vector<8x256xf32>
    %c56_219 = arith.constant 56 : index
    %c0_220 = arith.constant 0 : index
    %264 = vector.load %arg36[%c56_219, %c0_220] : memref<72x256xf32, #tpu.memory_space<vmem>>, vector<8x256xf32>
    tpu.vector_store %arg36[%c56_219, %c0_220], %263 {strides = array<i32>} : memref<72x256xf32, #tpu.memory_space<vmem>>, vector<8x256xf32>,
    %c0_221 = arith.constant 0 : index
    %c0_222 = arith.constant 0 : index
    %265 = vector.load %arg36[%c0_221, %c0_222] : memref<72x256xf32, #tpu.memory_space<vmem>>, vector<64x256xf32>
    %cst_223 = arith.constant dense<0.000000e+00> : vector<16x256xf32>
    %266 = tpu.matmul %244, %265, %cst_223 {dimension_numbers = #tpu.dot_dimension_numbers<[1], [0], [0], [1], [0, 0, 1, 1], [], []>} : vector<16x64xf32>, vector<64x256xf32>, vector<16x256xf32> -> vector<16x256xf32>
    %cst_224 = arith.constant dense<0.000000e+00> : vector<16x64xf32>
    %267 = tpu.matmul %266, %246, %cst_224 {dimension_numbers = #tpu.dot_dimension_numbers<[1], [0], [0], [1], [0, 0, 1, 1], [], []>} : vector<16x256xf32>, vector<256x64xf32>, vector<16x64xf32> -> vector<16x64xf32>
    %268 = vector.broadcast %245 : vector<16x1xf32> to vector<16x64xf32>
    %269 = arith.addf %267, %268 : vector<16x64xf32>
    %270 = tpu.iota {dimensions = array<i32: 1>} : vector<1x64xi32>
    %c8_i32 = arith.constant 8 : i32
    %c0_i32_225 = arith.constant 0 : i32
    %271 = arith.cmpi eq, %c8_i32, %c0_i32_225 : i32
    %c1_i32_226 = arith.constant 1 : i32
    %272 = arith.select %271, %c1_i32_226, %c8_i32 : i32
    %273 = vector.broadcast %272 : i32 to vector<1x64xi32>
    %274 = arith.remsi %270, %273 : vector<1x64xi32>
    %c0_i32_227 = arith.constant 0 : i32
    %275 = vector.broadcast %c0_i32_227 : i32 to vector<1x64xi32>
    %276 = arith.cmpi ne, %274, %275 : vector<1x64xi32>
    %c0_i32_228 = arith.constant 0 : i32
    %277 = vector.broadcast %c0_i32_228 : i32 to vector<1x64xi32>
    %278 = arith.cmpi slt, %274, %277 : vector<1x64xi32>
    %c0_i32_229 = arith.constant 0 : i32
    %279 = arith.cmpi slt, %272, %c0_i32_229 : i32
    %280 = vector.broadcast %279 : i1 to vector<1x64xi1>
    %281 = vector.broadcast %280 : vector<1x64xi1> to vector<1x64xi1>
    %282 = arith.xori %278, %281 : vector<1x64xi1>
    %283 = arith.andi %282, %276 : vector<1x64xi1>
    %284 = vector.broadcast %272 : i32 to vector<1x64xi32>
    %285 = arith.addi %274, %284 : vector<1x64xi32>
    %286 = arith.select %283, %285, %274 : vector<1x64xi1>, vector<1x64xi32>
    %c1_i32_230 = arith.constant 1 : i32
    %287 = vector.broadcast %c1_i32_230 : i32 to vector<1x64xi32>
    %288 = arith.cmpi sge, %286, %287 : vector<1x64xi32>
    %c6_i32 = arith.constant 6 : i32
    %289 = vector.broadcast %c6_i32 : i32 to vector<1x64xi32>
    %290 = arith.cmpi sle, %286, %289 : vector<1x64xi32>
    %c0_231 = arith.constant 0 : index
    %c0_232 = arith.constant 0 : index
    %291 = vector.load %arg14[%c0_231, %c0_232] : memref<16x1xf32, #tpu.memory_space<vmem>>, vector<16x1xf32>
    %c0_233 = arith.constant 0 : index
    %c0_234 = arith.constant 0 : index
    %292 = vector.load %arg15[%c0_233, %c0_234] : memref<16x1xf32, #tpu.memory_space<vmem>>, vector<16x1xf32>
    %c0_235 = arith.constant 0 : index
    %c0_236 = arith.constant 0 : index
    %293 = vector.load %arg16[%c0_235, %c0_236] : memref<16x144xf32, #tpu.memory_space<vmem>>, vector<16x144xf32>
    %c0_237 = arith.constant 0 : index
    %c0_238 = arith.constant 0 : index
    %294 = vector.load %arg17[%c0_237, %c0_238] : memref<16x1xf32, #tpu.memory_space<vmem>>, vector<16x1xf32>
    %c0_239 = arith.constant 0 : index
    %c0_240 = arith.constant 0 : index
    %295 = vector.load %arg18[%c0_239, %c0_240] : memref<16x1xf32, #tpu.memory_space<vmem>>, vector<16x1xf32>
    %c0_241 = arith.constant 0 : index
    %c0_242 = arith.constant 0 : index
    %296 = vector.load %arg19[%c0_241, %c0_242] : memref<16x1xf32, #tpu.memory_space<vmem>>, vector<16x1xf32>
    %c0_243 = arith.constant 0 : index
    %c0_244 = arith.constant 0 : index
    %297 = vector.load %arg20[%c0_243, %c0_244] : memref<16x144xf32, #tpu.memory_space<vmem>>, vector<16x144xf32>
    %c0_245 = arith.constant 0 : index
    %c0_246 = arith.constant 0 : index
    %298 = vector.load %arg21[%c0_245, %c0_246] : memref<16x1xf32, #tpu.memory_space<vmem>>, vector<16x1xf32>
    %299 = vector.extract_strided_slice %269 {offsets = [0, 0], sizes = [8, 64], strides = [1, 1]} : vector<16x64xf32> to vector<8x64xf32>
    %cst_247 = arith.constant dense<0.000000e+00> : vector<8xf32>
    %300 = vector.multi_reduction <add>, %299, %cst_247 [1] : vector<8x64xf32> to vector<8xf32>
    %301 = vector.shape_cast %300 : vector<8xf32> to vector<8x1xf32>
    %cst_248 = arith.constant dense<0.000000e+00> : vector<1xf32>
    %302 = vector.multi_reduction <add>, %301, %cst_248 [0] : vector<8x1xf32> to vector<1xf32>
    %303 = vector.shape_cast %302 : vector<1xf32> to vector<1x1xf32>
    %cst_249 = arith.constant 0.001953125 : f32
    %304 = vector.broadcast %cst_249 : f32 to vector<1x1xf32>
    %305 = arith.mulf %303, %304 : vector<1x1xf32>
    %306 = vector.broadcast %305 : vector<1x1xf32> to vector<8x64xf32>
    %307 = arith.subf %299, %306 : vector<8x64xf32>
    %308 = arith.mulf %307, %307 : vector<8x64xf32>
    %cst_250 = arith.constant dense<0.000000e+00> : vector<8xf32>
    %309 = vector.multi_reduction <add>, %308, %cst_250 [1] : vector<8x64xf32> to vector<8xf32>
    %310 = vector.shape_cast %309 : vector<8xf32> to vector<8x1xf32>
    %cst_251 = arith.constant dense<0.000000e+00> : vector<1xf32>
    %311 = vector.multi_reduction <add>, %310, %cst_251 [0] : vector<8x1xf32> to vector<1xf32>
    %312 = vector.shape_cast %311 : vector<1xf32> to vector<1x1xf32>
    %cst_252 = arith.constant 0.001953125 : f32
    %313 = vector.broadcast %cst_252 : f32 to vector<1x1xf32>
    %314 = arith.mulf %312, %313 : vector<1x1xf32>
    %cst_253 = arith.constant 9.99999974E-6 : f32
    %315 = vector.broadcast %cst_253 : f32 to vector<1x1xf32>
    %316 = arith.addf %314, %315 : vector<1x1xf32>
    %317 = math.rsqrt %316 : vector<1x1xf32>
    %318 = vector.broadcast %317 : vector<1x1xf32> to vector<8x64xf32>
    %319 = arith.mulf %307, %318 : vector<8x64xf32>
    %320 = vector.extract_strided_slice %269 {offsets = [8, 0], sizes = [8, 64], strides = [1, 1]} : vector<16x64xf32> to vector<8x64xf32>
    %cst_254 = arith.constant dense<0.000000e+00> : vector<8xf32>
    %321 = vector.multi_reduction <add>, %320, %cst_254 [1] : vector<8x64xf32> to vector<8xf32>
    %322 = vector.shape_cast %321 : vector<8xf32> to vector<8x1xf32>
    %cst_255 = arith.constant dense<0.000000e+00> : vector<1xf32>
    %323 = vector.multi_reduction <add>, %322, %cst_255 [0] : vector<8x1xf32> to vector<1xf32>
    %324 = vector.shape_cast %323 : vector<1xf32> to vector<1x1xf32>
    %cst_256 = arith.constant 0.001953125 : f32
    %325 = vector.broadcast %cst_256 : f32 to vector<1x1xf32>
    %326 = arith.mulf %324, %325 : vector<1x1xf32>
    %327 = vector.broadcast %326 : vector<1x1xf32> to vector<8x64xf32>
    %328 = arith.subf %320, %327 : vector<8x64xf32>
    %329 = arith.mulf %328, %328 : vector<8x64xf32>
    %cst_257 = arith.constant dense<0.000000e+00> : vector<8xf32>
    %330 = vector.multi_reduction <add>, %329, %cst_257 [1] : vector<8x64xf32> to vector<8xf32>
    %331 = vector.shape_cast %330 : vector<8xf32> to vector<8x1xf32>
    %cst_258 = arith.constant dense<0.000000e+00> : vector<1xf32>
    %332 = vector.multi_reduction <add>, %331, %cst_258 [0] : vector<8x1xf32> to vector<1xf32>
    %333 = vector.shape_cast %332 : vector<1xf32> to vector<1x1xf32>
    %cst_259 = arith.constant 0.001953125 : f32
    %334 = vector.broadcast %cst_259 : f32 to vector<1x1xf32>
    %335 = arith.mulf %333, %334 : vector<1x1xf32>
    %cst_260 = arith.constant 9.99999974E-6 : f32
    %336 = vector.broadcast %cst_260 : f32 to vector<1x1xf32>
    %337 = arith.addf %335, %336 : vector<1x1xf32>
    %338 = math.rsqrt %337 : vector<1x1xf32>
    %339 = vector.broadcast %338 : vector<1x1xf32> to vector<8x64xf32>
    %340 = arith.mulf %328, %339 : vector<8x64xf32>
    %341 = tpu.concatenate %319, %340 in 0 : vector<8x64xf32>, vector<8x64xf32> -> vector<16x64xf32>
    %342 = vector.broadcast %291 : vector<16x1xf32> to vector<16x64xf32>
    %343 = arith.mulf %341, %342 : vector<16x64xf32>
    %344 = vector.broadcast %292 : vector<16x1xf32> to vector<16x64xf32>
    %345 = arith.addf %343, %344 : vector<16x64xf32>
    %346 = arith.negf %345 : vector<16x64xf32>
    %347 = math.exp %346 : vector<16x64xf32>
    %cst_261 = arith.constant 1.000000e+00 : f32
    %348 = vector.broadcast %cst_261 : f32 to vector<16x64xf32>
    %349 = arith.addf %348, %347 : vector<16x64xf32>
    %350 = arith.divf %348, %349 : vector<16x64xf32>
    %351 = arith.mulf %345, %350 : vector<16x64xf32>
    %c0_262 = arith.constant 0 : index
    %c128_263 = arith.constant 128 : index
    %352 = vector.load %arg37[%c0_262, %c128_263] : memref<16x320xf32, #tpu.memory_space<vmem>>, vector<16x64xf32>
    tpu.vector_store %arg37[%c0_262, %c128_263], %351 {strides = array<i32>} : memref<16x320xf32, #tpu.memory_space<vmem>>, vector<16x64xf32>,
    %c0_264 = arith.constant 0 : index
    %c119 = arith.constant 119 : index
    %353 = vector.load %arg37[%c0_264, %c119] : memref<16x320xf32, #tpu.memory_space<vmem>>, vector<16x64xf32>
    %cst_265 = arith.constant 0.000000e+00 : f32
    %354 = vector.shape_cast %288 : vector<1x64xi1> to vector<1x64xi1>
    %355 = vector.broadcast %354 : vector<1x64xi1> to vector<16x64xi1>
    %356 = vector.broadcast %cst_265 : f32 to vector<16x64xf32>
    %357 = arith.select %355, %353, %356 : vector<16x64xi1>, vector<16x64xf32>
    %c0_266 = arith.constant 0 : index
    %c0_267 = arith.constant 0 : index
    %358 = vector.load %arg38[%c0_266, %c0_267] : memref<144x64xf32, #tpu.memory_space<vmem>>, vector<16x64xf32>
    tpu.vector_store %arg38[%c0_266, %c0_267], %357 {strides = array<i32>} : memref<144x64xf32, #tpu.memory_space<vmem>>, vector<16x64xf32>,
    %c0_268 = arith.constant 0 : index
    %c120 = arith.constant 120 : index
    %359 = vector.load %arg37[%c0_268, %c120] : memref<16x320xf32, #tpu.memory_space<vmem>>, vector<16x64xf32>
    %c16_269 = arith.constant 16 : index
    %c0_270 = arith.constant 0 : index
    %360 = vector.load %arg38[%c16_269, %c0_270] : memref<144x64xf32, #tpu.memory_space<vmem>>, vector<16x64xf32>
    tpu.vector_store %arg38[%c16_269, %c0_270], %359 {strides = array<i32>} : memref<144x64xf32, #tpu.memory_space<vmem>>, vector<16x64xf32>,
    %c0_271 = arith.constant 0 : index
    %c121 = arith.constant 121 : index
    %361 = vector.load %arg37[%c0_271, %c121] : memref<16x320xf32, #tpu.memory_space<vmem>>, vector<16x64xf32>
    %cst_272 = arith.constant 0.000000e+00 : f32
    %362 = vector.shape_cast %290 : vector<1x64xi1> to vector<1x64xi1>
    %363 = vector.broadcast %362 : vector<1x64xi1> to vector<16x64xi1>
    %364 = vector.broadcast %cst_272 : f32 to vector<16x64xf32>
    %365 = arith.select %363, %361, %364 : vector<16x64xi1>, vector<16x64xf32>
    %c32_273 = arith.constant 32 : index
    %c0_274 = arith.constant 0 : index
    %366 = vector.load %arg38[%c32_273, %c0_274] : memref<144x64xf32, #tpu.memory_space<vmem>>, vector<16x64xf32>
    tpu.vector_store %arg38[%c32_273, %c0_274], %365 {strides = array<i32>} : memref<144x64xf32, #tpu.memory_space<vmem>>, vector<16x64xf32>,
    %c0_275 = arith.constant 0 : index
    %c127_276 = arith.constant 127 : index
    %367 = vector.load %arg37[%c0_275, %c127_276] : memref<16x320xf32, #tpu.memory_space<vmem>>, vector<16x64xf32>
    %cst_277 = arith.constant 0.000000e+00 : f32
    %368 = vector.shape_cast %288 : vector<1x64xi1> to vector<1x64xi1>
    %369 = vector.broadcast %368 : vector<1x64xi1> to vector<16x64xi1>
    %370 = vector.broadcast %cst_277 : f32 to vector<16x64xf32>
    %371 = arith.select %369, %367, %370 : vector<16x64xi1>, vector<16x64xf32>
    %c48_278 = arith.constant 48 : index
    %c0_279 = arith.constant 0 : index
    %372 = vector.load %arg38[%c48_278, %c0_279] : memref<144x64xf32, #tpu.memory_space<vmem>>, vector<16x64xf32>
    tpu.vector_store %arg38[%c48_278, %c0_279], %371 {strides = array<i32>} : memref<144x64xf32, #tpu.memory_space<vmem>>, vector<16x64xf32>,
    %c0_280 = arith.constant 0 : index
    %c128_281 = arith.constant 128 : index
    %373 = vector.load %arg37[%c0_280, %c128_281] : memref<16x320xf32, #tpu.memory_space<vmem>>, vector<16x64xf32>
    %c64_282 = arith.constant 64 : index
    %c0_283 = arith.constant 0 : index
    %374 = vector.load %arg38[%c64_282, %c0_283] : memref<144x64xf32, #tpu.memory_space<vmem>>, vector<16x64xf32>
    tpu.vector_store %arg38[%c64_282, %c0_283], %373 {strides = array<i32>} : memref<144x64xf32, #tpu.memory_space<vmem>>, vector<16x64xf32>,
    %c0_284 = arith.constant 0 : index
    %c129_285 = arith.constant 129 : index
    %375 = vector.load %arg37[%c0_284, %c129_285] : memref<16x320xf32, #tpu.memory_space<vmem>>, vector<16x64xf32>
    %cst_286 = arith.constant 0.000000e+00 : f32
    %376 = vector.shape_cast %290 : vector<1x64xi1> to vector<1x64xi1>
    %377 = vector.broadcast %376 : vector<1x64xi1> to vector<16x64xi1>
    %378 = vector.broadcast %cst_286 : f32 to vector<16x64xf32>
    %379 = arith.select %377, %375, %378 : vector<16x64xi1>, vector<16x64xf32>
    %c80 = arith.constant 80 : index
    %c0_287 = arith.constant 0 : index
    %380 = vector.load %arg38[%c80, %c0_287] : memref<144x64xf32, #tpu.memory_space<vmem>>, vector<16x64xf32>
    tpu.vector_store %arg38[%c80, %c0_287], %379 {strides = array<i32>} : memref<144x64xf32, #tpu.memory_space<vmem>>, vector<16x64xf32>,
    %c0_288 = arith.constant 0 : index
    %c135 = arith.constant 135 : index
    %381 = vector.load %arg37[%c0_288, %c135] : memref<16x320xf32, #tpu.memory_space<vmem>>, vector<16x64xf32>
    %cst_289 = arith.constant 0.000000e+00 : f32
    %382 = vector.shape_cast %288 : vector<1x64xi1> to vector<1x64xi1>
    %383 = vector.broadcast %382 : vector<1x64xi1> to vector<16x64xi1>
    %384 = vector.broadcast %cst_289 : f32 to vector<16x64xf32>
    %385 = arith.select %383, %381, %384 : vector<16x64xi1>, vector<16x64xf32>
    %c96 = arith.constant 96 : index
    %c0_290 = arith.constant 0 : index
    %386 = vector.load %arg38[%c96, %c0_290] : memref<144x64xf32, #tpu.memory_space<vmem>>, vector<16x64xf32>
    tpu.vector_store %arg38[%c96, %c0_290], %385 {strides = array<i32>} : memref<144x64xf32, #tpu.memory_space<vmem>>, vector<16x64xf32>,
    %c0_291 = arith.constant 0 : index
    %c136 = arith.constant 136 : index
    %387 = vector.load %arg37[%c0_291, %c136] : memref<16x320xf32, #tpu.memory_space<vmem>>, vector<16x64xf32>
    %c112_292 = arith.constant 112 : index
    %c0_293 = arith.constant 0 : index
    %388 = vector.load %arg38[%c112_292, %c0_293] : memref<144x64xf32, #tpu.memory_space<vmem>>, vector<16x64xf32>
    tpu.vector_store %arg38[%c112_292, %c0_293], %387 {strides = array<i32>} : memref<144x64xf32, #tpu.memory_space<vmem>>, vector<16x64xf32>,
    %c0_294 = arith.constant 0 : index
    %c137 = arith.constant 137 : index
    %389 = vector.load %arg37[%c0_294, %c137] : memref<16x320xf32, #tpu.memory_space<vmem>>, vector<16x64xf32>
    %cst_295 = arith.constant 0.000000e+00 : f32
    %390 = vector.shape_cast %290 : vector<1x64xi1> to vector<1x64xi1>
    %391 = vector.broadcast %390 : vector<1x64xi1> to vector<16x64xi1>
    %392 = vector.broadcast %cst_295 : f32 to vector<16x64xf32>
    %393 = arith.select %391, %389, %392 : vector<16x64xi1>, vector<16x64xf32>
    %c128_296 = arith.constant 128 : index
    %c0_297 = arith.constant 0 : index
    %394 = vector.load %arg38[%c128_296, %c0_297] : memref<144x64xf32, #tpu.memory_space<vmem>>, vector<16x64xf32>
    tpu.vector_store %arg38[%c128_296, %c0_297], %393 {strides = array<i32>} : memref<144x64xf32, #tpu.memory_space<vmem>>, vector<16x64xf32>,
    %c0_298 = arith.constant 0 : index
    %c0_299 = arith.constant 0 : index
    %395 = vector.load %arg38[%c0_298, %c0_299] : memref<144x64xf32, #tpu.memory_space<vmem>>, vector<144x64xf32>
    %cst_300 = arith.constant dense<0.000000e+00> : vector<16x64xf32>
    %396 = tpu.matmul %293, %395, %cst_300 {dimension_numbers = #tpu.dot_dimension_numbers<[1], [0], [0], [1], [0, 0, 1, 1], [], []>} : vector<16x144xf32>, vector<144x64xf32>, vector<16x64xf32> -> vector<16x64xf32>
    %397 = vector.broadcast %294 : vector<16x1xf32> to vector<16x64xf32>
    %398 = arith.addf %396, %397 : vector<16x64xf32>
    %399 = vector.extract_strided_slice %398 {offsets = [0, 0], sizes = [8, 64], strides = [1, 1]} : vector<16x64xf32> to vector<8x64xf32>
    %cst_301 = arith.constant dense<0.000000e+00> : vector<8xf32>
    %400 = vector.multi_reduction <add>, %399, %cst_301 [1] : vector<8x64xf32> to vector<8xf32>
    %401 = vector.shape_cast %400 : vector<8xf32> to vector<8x1xf32>
    %cst_302 = arith.constant dense<0.000000e+00> : vector<1xf32>
    %402 = vector.multi_reduction <add>, %401, %cst_302 [0] : vector<8x1xf32> to vector<1xf32>
    %403 = vector.shape_cast %402 : vector<1xf32> to vector<1x1xf32>
    %cst_303 = arith.constant 0.001953125 : f32
    %404 = vector.broadcast %cst_303 : f32 to vector<1x1xf32>
    %405 = arith.mulf %403, %404 : vector<1x1xf32>
    %406 = vector.broadcast %405 : vector<1x1xf32> to vector<8x64xf32>
    %407 = arith.subf %399, %406 : vector<8x64xf32>
    %408 = arith.mulf %407, %407 : vector<8x64xf32>
    %cst_304 = arith.constant dense<0.000000e+00> : vector<8xf32>
    %409 = vector.multi_reduction <add>, %408, %cst_304 [1] : vector<8x64xf32> to vector<8xf32>
    %410 = vector.shape_cast %409 : vector<8xf32> to vector<8x1xf32>
    %cst_305 = arith.constant dense<0.000000e+00> : vector<1xf32>
    %411 = vector.multi_reduction <add>, %410, %cst_305 [0] : vector<8x1xf32> to vector<1xf32>
    %412 = vector.shape_cast %411 : vector<1xf32> to vector<1x1xf32>
    %cst_306 = arith.constant 0.001953125 : f32
    %413 = vector.broadcast %cst_306 : f32 to vector<1x1xf32>
    %414 = arith.mulf %412, %413 : vector<1x1xf32>
    %cst_307 = arith.constant 9.99999974E-6 : f32
    %415 = vector.broadcast %cst_307 : f32 to vector<1x1xf32>
    %416 = arith.addf %414, %415 : vector<1x1xf32>
    %417 = math.rsqrt %416 : vector<1x1xf32>
    %418 = vector.broadcast %417 : vector<1x1xf32> to vector<8x64xf32>
    %419 = arith.mulf %407, %418 : vector<8x64xf32>
    %420 = vector.extract_strided_slice %398 {offsets = [8, 0], sizes = [8, 64], strides = [1, 1]} : vector<16x64xf32> to vector<8x64xf32>
    %cst_308 = arith.constant dense<0.000000e+00> : vector<8xf32>
    %421 = vector.multi_reduction <add>, %420, %cst_308 [1] : vector<8x64xf32> to vector<8xf32>
    %422 = vector.shape_cast %421 : vector<8xf32> to vector<8x1xf32>
    %cst_309 = arith.constant dense<0.000000e+00> : vector<1xf32>
    %423 = vector.multi_reduction <add>, %422, %cst_309 [0] : vector<8x1xf32> to vector<1xf32>
    %424 = vector.shape_cast %423 : vector<1xf32> to vector<1x1xf32>
    %cst_310 = arith.constant 0.001953125 : f32
    %425 = vector.broadcast %cst_310 : f32 to vector<1x1xf32>
    %426 = arith.mulf %424, %425 : vector<1x1xf32>
    %427 = vector.broadcast %426 : vector<1x1xf32> to vector<8x64xf32>
    %428 = arith.subf %420, %427 : vector<8x64xf32>
    %429 = arith.mulf %428, %428 : vector<8x64xf32>
    %cst_311 = arith.constant dense<0.000000e+00> : vector<8xf32>
    %430 = vector.multi_reduction <add>, %429, %cst_311 [1] : vector<8x64xf32> to vector<8xf32>
    %431 = vector.shape_cast %430 : vector<8xf32> to vector<8x1xf32>
    %cst_312 = arith.constant dense<0.000000e+00> : vector<1xf32>
    %432 = vector.multi_reduction <add>, %431, %cst_312 [0] : vector<8x1xf32> to vector<1xf32>
    %433 = vector.shape_cast %432 : vector<1xf32> to vector<1x1xf32>
    %cst_313 = arith.constant 0.001953125 : f32
    %434 = vector.broadcast %cst_313 : f32 to vector<1x1xf32>
    %435 = arith.mulf %433, %434 : vector<1x1xf32>
    %cst_314 = arith.constant 9.99999974E-6 : f32
    %436 = vector.broadcast %cst_314 : f32 to vector<1x1xf32>
    %437 = arith.addf %435, %436 : vector<1x1xf32>
    %438 = math.rsqrt %437 : vector<1x1xf32>
    %439 = vector.broadcast %438 : vector<1x1xf32> to vector<8x64xf32>
    %440 = arith.mulf %428, %439 : vector<8x64xf32>
    %441 = tpu.concatenate %419, %440 in 0 : vector<8x64xf32>, vector<8x64xf32> -> vector<16x64xf32>
    %442 = vector.broadcast %295 : vector<16x1xf32> to vector<16x64xf32>
    %443 = arith.mulf %441, %442 : vector<16x64xf32>
    %444 = vector.broadcast %296 : vector<16x1xf32> to vector<16x64xf32>
    %445 = arith.addf %443, %444 : vector<16x64xf32>
    %446 = arith.negf %445 : vector<16x64xf32>
    %447 = math.exp %446 : vector<16x64xf32>
    %cst_315 = arith.constant 1.000000e+00 : f32
    %448 = vector.broadcast %cst_315 : f32 to vector<16x64xf32>
    %449 = arith.addf %448, %447 : vector<16x64xf32>
    %450 = arith.divf %448, %449 : vector<16x64xf32>
    %451 = arith.mulf %445, %450 : vector<16x64xf32>
    %c0_316 = arith.constant 0 : index
    %c128_317 = arith.constant 128 : index
    %452 = vector.load %arg37[%c0_316, %c128_317] : memref<16x320xf32, #tpu.memory_space<vmem>>, vector<16x64xf32>
    tpu.vector_store %arg37[%c0_316, %c128_317], %451 {strides = array<i32>} : memref<16x320xf32, #tpu.memory_space<vmem>>, vector<16x64xf32>,
    %c0_318 = arith.constant 0 : index
    %c119_319 = arith.constant 119 : index
    %453 = vector.load %arg37[%c0_318, %c119_319] : memref<16x320xf32, #tpu.memory_space<vmem>>, vector<16x64xf32>
    %cst_320 = arith.constant 0.000000e+00 : f32
    %454 = vector.shape_cast %288 : vector<1x64xi1> to vector<1x64xi1>
    %455 = vector.broadcast %454 : vector<1x64xi1> to vector<16x64xi1>
    %456 = vector.broadcast %cst_320 : f32 to vector<16x64xf32>
    %457 = arith.select %455, %453, %456 : vector<16x64xi1>, vector<16x64xf32>
    %c0_321 = arith.constant 0 : index
    %c0_322 = arith.constant 0 : index
    %458 = vector.load %arg38[%c0_321, %c0_322] : memref<144x64xf32, #tpu.memory_space<vmem>>, vector<16x64xf32>
    tpu.vector_store %arg38[%c0_321, %c0_322], %457 {strides = array<i32>} : memref<144x64xf32, #tpu.memory_space<vmem>>, vector<16x64xf32>,
    %c0_323 = arith.constant 0 : index
    %c120_324 = arith.constant 120 : index
    %459 = vector.load %arg37[%c0_323, %c120_324] : memref<16x320xf32, #tpu.memory_space<vmem>>, vector<16x64xf32>
    %c16_325 = arith.constant 16 : index
    %c0_326 = arith.constant 0 : index
    %460 = vector.load %arg38[%c16_325, %c0_326] : memref<144x64xf32, #tpu.memory_space<vmem>>, vector<16x64xf32>
    tpu.vector_store %arg38[%c16_325, %c0_326], %459 {strides = array<i32>} : memref<144x64xf32, #tpu.memory_space<vmem>>, vector<16x64xf32>,
    %c0_327 = arith.constant 0 : index
    %c121_328 = arith.constant 121 : index
    %461 = vector.load %arg37[%c0_327, %c121_328] : memref<16x320xf32, #tpu.memory_space<vmem>>, vector<16x64xf32>
    %cst_329 = arith.constant 0.000000e+00 : f32
    %462 = vector.shape_cast %290 : vector<1x64xi1> to vector<1x64xi1>
    %463 = vector.broadcast %462 : vector<1x64xi1> to vector<16x64xi1>
    %464 = vector.broadcast %cst_329 : f32 to vector<16x64xf32>
    %465 = arith.select %463, %461, %464 : vector<16x64xi1>, vector<16x64xf32>
    %c32_330 = arith.constant 32 : index
    %c0_331 = arith.constant 0 : index
    %466 = vector.load %arg38[%c32_330, %c0_331] : memref<144x64xf32, #tpu.memory_space<vmem>>, vector<16x64xf32>
    tpu.vector_store %arg38[%c32_330, %c0_331], %465 {strides = array<i32>} : memref<144x64xf32, #tpu.memory_space<vmem>>, vector<16x64xf32>,
    %c0_332 = arith.constant 0 : index
    %c127_333 = arith.constant 127 : index
    %467 = vector.load %arg37[%c0_332, %c127_333] : memref<16x320xf32, #tpu.memory_space<vmem>>, vector<16x64xf32>
    %cst_334 = arith.constant 0.000000e+00 : f32
    %468 = vector.shape_cast %288 : vector<1x64xi1> to vector<1x64xi1>
    %469 = vector.broadcast %468 : vector<1x64xi1> to vector<16x64xi1>
    %470 = vector.broadcast %cst_334 : f32 to vector<16x64xf32>
    %471 = arith.select %469, %467, %470 : vector<16x64xi1>, vector<16x64xf32>
    %c48_335 = arith.constant 48 : index
    %c0_336 = arith.constant 0 : index
    %472 = vector.load %arg38[%c48_335, %c0_336] : memref<144x64xf32, #tpu.memory_space<vmem>>, vector<16x64xf32>
    tpu.vector_store %arg38[%c48_335, %c0_336], %471 {strides = array<i32>} : memref<144x64xf32, #tpu.memory_space<vmem>>, vector<16x64xf32>,
    %c0_337 = arith.constant 0 : index
    %c128_338 = arith.constant 128 : index
    %473 = vector.load %arg37[%c0_337, %c128_338] : memref<16x320xf32, #tpu.memory_space<vmem>>, vector<16x64xf32>
    %c64_339 = arith.constant 64 : index
    %c0_340 = arith.constant 0 : index
    %474 = vector.load %arg38[%c64_339, %c0_340] : memref<144x64xf32, #tpu.memory_space<vmem>>, vector<16x64xf32>
    tpu.vector_store %arg38[%c64_339, %c0_340], %473 {strides = array<i32>} : memref<144x64xf32, #tpu.memory_space<vmem>>, vector<16x64xf32>,
    %c0_341 = arith.constant 0 : index
    %c129_342 = arith.constant 129 : index
    %475 = vector.load %arg37[%c0_341, %c129_342] : memref<16x320xf32, #tpu.memory_space<vmem>>, vector<16x64xf32>
    %cst_343 = arith.constant 0.000000e+00 : f32
    %476 = vector.shape_cast %290 : vector<1x64xi1> to vector<1x64xi1>
    %477 = vector.broadcast %476 : vector<1x64xi1> to vector<16x64xi1>
    %478 = vector.broadcast %cst_343 : f32 to vector<16x64xf32>
    %479 = arith.select %477, %475, %478 : vector<16x64xi1>, vector<16x64xf32>
    %c80_344 = arith.constant 80 : index
    %c0_345 = arith.constant 0 : index
    %480 = vector.load %arg38[%c80_344, %c0_345] : memref<144x64xf32, #tpu.memory_space<vmem>>, vector<16x64xf32>
    tpu.vector_store %arg38[%c80_344, %c0_345], %479 {strides = array<i32>} : memref<144x64xf32, #tpu.memory_space<vmem>>, vector<16x64xf32>,
    %c0_346 = arith.constant 0 : index
    %c135_347 = arith.constant 135 : index
    %481 = vector.load %arg37[%c0_346, %c135_347] : memref<16x320xf32, #tpu.memory_space<vmem>>, vector<16x64xf32>
    %cst_348 = arith.constant 0.000000e+00 : f32
    %482 = vector.shape_cast %288 : vector<1x64xi1> to vector<1x64xi1>
    %483 = vector.broadcast %482 : vector<1x64xi1> to vector<16x64xi1>
    %484 = vector.broadcast %cst_348 : f32 to vector<16x64xf32>
    %485 = arith.select %483, %481, %484 : vector<16x64xi1>, vector<16x64xf32>
    %c96_349 = arith.constant 96 : index
    %c0_350 = arith.constant 0 : index
    %486 = vector.load %arg38[%c96_349, %c0_350] : memref<144x64xf32, #tpu.memory_space<vmem>>, vector<16x64xf32>
    tpu.vector_store %arg38[%c96_349, %c0_350], %485 {strides = array<i32>} : memref<144x64xf32, #tpu.memory_space<vmem>>, vector<16x64xf32>,
    %c0_351 = arith.constant 0 : index
    %c136_352 = arith.constant 136 : index
    %487 = vector.load %arg37[%c0_351, %c136_352] : memref<16x320xf32, #tpu.memory_space<vmem>>, vector<16x64xf32>
    %c112_353 = arith.constant 112 : index
    %c0_354 = arith.constant 0 : index
    %488 = vector.load %arg38[%c112_353, %c0_354] : memref<144x64xf32, #tpu.memory_space<vmem>>, vector<16x64xf32>
    tpu.vector_store %arg38[%c112_353, %c0_354], %487 {strides = array<i32>} : memref<144x64xf32, #tpu.memory_space<vmem>>, vector<16x64xf32>,
    %c0_355 = arith.constant 0 : index
    %c137_356 = arith.constant 137 : index
    %489 = vector.load %arg37[%c0_355, %c137_356] : memref<16x320xf32, #tpu.memory_space<vmem>>, vector<16x64xf32>
    %cst_357 = arith.constant 0.000000e+00 : f32
    %490 = vector.shape_cast %290 : vector<1x64xi1> to vector<1x64xi1>
    %491 = vector.broadcast %490 : vector<1x64xi1> to vector<16x64xi1>
    %492 = vector.broadcast %cst_357 : f32 to vector<16x64xf32>
    %493 = arith.select %491, %489, %492 : vector<16x64xi1>, vector<16x64xf32>
    %c128_358 = arith.constant 128 : index
    %c0_359 = arith.constant 0 : index
    %494 = vector.load %arg38[%c128_358, %c0_359] : memref<144x64xf32, #tpu.memory_space<vmem>>, vector<16x64xf32>
    tpu.vector_store %arg38[%c128_358, %c0_359], %493 {strides = array<i32>} : memref<144x64xf32, #tpu.memory_space<vmem>>, vector<16x64xf32>,
    %c0_360 = arith.constant 0 : index
    %c0_361 = arith.constant 0 : index
    %495 = vector.load %arg38[%c0_360, %c0_361] : memref<144x64xf32, #tpu.memory_space<vmem>>, vector<144x64xf32>
    %cst_362 = arith.constant dense<0.000000e+00> : vector<16x64xf32>
    %496 = tpu.matmul %297, %495, %cst_362 {dimension_numbers = #tpu.dot_dimension_numbers<[1], [0], [0], [1], [0, 0, 1, 1], [], []>} : vector<16x144xf32>, vector<144x64xf32>, vector<16x64xf32> -> vector<16x64xf32>
    %497 = vector.broadcast %298 : vector<16x1xf32> to vector<16x64xf32>
    %498 = arith.addf %496, %497 : vector<16x64xf32>
    %499 = arith.addf %498, %269 : vector<16x64xf32>
    %c0_363 = arith.constant 0 : index
    %c0_364 = arith.constant 0 : index
    %500 = vector.load %arg22[%c0_363, %c0_364] : memref<16x128xf32, #tpu.memory_space<vmem>>, vector<16x128xf32>
    %c0_365 = arith.constant 0 : index
    %c0_366 = arith.constant 0 : index
    %501 = vector.load %arg23[%c0_365, %c0_366] : memref<16x1xf32, #tpu.memory_space<vmem>>, vector<16x1xf32>
    %c0_367 = arith.constant 0 : index
    %c0_368 = arith.constant 0 : index
    %502 = vector.load %arg24[%c0_367, %c0_368] : memref<64x16xf32, #tpu.memory_space<vmem>>, vector<64x16xf32>
    %c0_369 = arith.constant 0 : index
    %c128_370 = arith.constant 128 : index
    %503 = vector.load %arg37[%c0_369, %c128_370] : memref<16x320xf32, #tpu.memory_space<vmem>>, vector<16x64xf32>
    tpu.vector_store %arg37[%c0_369, %c128_370], %499 {strides = array<i32>} : memref<16x320xf32, #tpu.memory_space<vmem>>, vector<16x64xf32>,
    %c0_371 = arith.constant 0 : index
    %c128_372 = arith.constant 128 : index
    %504 = vector.load %arg37[%c0_371, %c128_372] : memref<16x320xf32, #tpu.memory_space<vmem>>, vector<16x64xf32>
    %c0_373 = arith.constant 0 : index
    %c0_374 = arith.constant 0 : index
    %505 = vector.load %arg38[%c0_373, %c0_374] : memref<144x64xf32, #tpu.memory_space<vmem>>, vector<16x64xf32>
    tpu.vector_store %arg38[%c0_373, %c0_374], %504 {strides = array<i32>} : memref<144x64xf32, #tpu.memory_space<vmem>>, vector<16x64xf32>,
    %c0_375 = arith.constant 0 : index
    %c129_376 = arith.constant 129 : index
    %506 = vector.load %arg37[%c0_375, %c129_376] : memref<16x320xf32, #tpu.memory_space<vmem>>, vector<16x64xf32>
    %c16_377 = arith.constant 16 : index
    %c0_378 = arith.constant 0 : index
    %507 = vector.load %arg38[%c16_377, %c0_378] : memref<144x64xf32, #tpu.memory_space<vmem>>, vector<16x64xf32>
    tpu.vector_store %arg38[%c16_377, %c0_378], %506 {strides = array<i32>} : memref<144x64xf32, #tpu.memory_space<vmem>>, vector<16x64xf32>,
    %c0_379 = arith.constant 0 : index
    %c136_380 = arith.constant 136 : index
    %508 = vector.load %arg37[%c0_379, %c136_380] : memref<16x320xf32, #tpu.memory_space<vmem>>, vector<16x64xf32>
    %c32_381 = arith.constant 32 : index
    %c0_382 = arith.constant 0 : index
    %509 = vector.load %arg38[%c32_381, %c0_382] : memref<144x64xf32, #tpu.memory_space<vmem>>, vector<16x64xf32>
    tpu.vector_store %arg38[%c32_381, %c0_382], %508 {strides = array<i32>} : memref<144x64xf32, #tpu.memory_space<vmem>>, vector<16x64xf32>,
    %c0_383 = arith.constant 0 : index
    %c137_384 = arith.constant 137 : index
    %510 = vector.load %arg37[%c0_383, %c137_384] : memref<16x320xf32, #tpu.memory_space<vmem>>, vector<16x64xf32>
    %c48_385 = arith.constant 48 : index
    %c0_386 = arith.constant 0 : index
    %511 = vector.load %arg38[%c48_385, %c0_386] : memref<144x64xf32, #tpu.memory_space<vmem>>, vector<16x64xf32>
    tpu.vector_store %arg38[%c48_385, %c0_386], %510 {strides = array<i32>} : memref<144x64xf32, #tpu.memory_space<vmem>>, vector<16x64xf32>,
    %c0_387 = arith.constant 0 : index
    %c128_388 = arith.constant 128 : index
    %512 = vector.load %arg37[%c0_387, %c128_388] : memref<16x320xf32, #tpu.memory_space<vmem>>, vector<16x64xf32>
    tpu.vector_store %arg37[%c0_387, %c128_388], %269 {strides = array<i32>} : memref<16x320xf32, #tpu.memory_space<vmem>>, vector<16x64xf32>,
    %c0_389 = arith.constant 0 : index
    %c128_390 = arith.constant 128 : index
    %513 = vector.load %arg37[%c0_389, %c128_390] : memref<16x320xf32, #tpu.memory_space<vmem>>, vector<16x64xf32>
    %c64_391 = arith.constant 64 : index
    %c0_392 = arith.constant 0 : index
    %514 = vector.load %arg38[%c64_391, %c0_392] : memref<144x64xf32, #tpu.memory_space<vmem>>, vector<16x64xf32>
    tpu.vector_store %arg38[%c64_391, %c0_392], %513 {strides = array<i32>} : memref<144x64xf32, #tpu.memory_space<vmem>>, vector<16x64xf32>,
    %c0_393 = arith.constant 0 : index
    %c129_394 = arith.constant 129 : index
    %515 = vector.load %arg37[%c0_393, %c129_394] : memref<16x320xf32, #tpu.memory_space<vmem>>, vector<16x64xf32>
    %c80_395 = arith.constant 80 : index
    %c0_396 = arith.constant 0 : index
    %516 = vector.load %arg38[%c80_395, %c0_396] : memref<144x64xf32, #tpu.memory_space<vmem>>, vector<16x64xf32>
    tpu.vector_store %arg38[%c80_395, %c0_396], %515 {strides = array<i32>} : memref<144x64xf32, #tpu.memory_space<vmem>>, vector<16x64xf32>,
    %c0_397 = arith.constant 0 : index
    %c136_398 = arith.constant 136 : index
    %517 = vector.load %arg37[%c0_397, %c136_398] : memref<16x320xf32, #tpu.memory_space<vmem>>, vector<16x64xf32>
    %c96_399 = arith.constant 96 : index
    %c0_400 = arith.constant 0 : index
    %518 = vector.load %arg38[%c96_399, %c0_400] : memref<144x64xf32, #tpu.memory_space<vmem>>, vector<16x64xf32>
    tpu.vector_store %arg38[%c96_399, %c0_400], %517 {strides = array<i32>} : memref<144x64xf32, #tpu.memory_space<vmem>>, vector<16x64xf32>,
    %c0_401 = arith.constant 0 : index
    %c137_402 = arith.constant 137 : index
    %519 = vector.load %arg37[%c0_401, %c137_402] : memref<16x320xf32, #tpu.memory_space<vmem>>, vector<16x64xf32>
    %c112_403 = arith.constant 112 : index
    %c0_404 = arith.constant 0 : index
    %520 = vector.load %arg38[%c112_403, %c0_404] : memref<144x64xf32, #tpu.memory_space<vmem>>, vector<16x64xf32>
    tpu.vector_store %arg38[%c112_403, %c0_404], %519 {strides = array<i32>} : memref<144x64xf32, #tpu.memory_space<vmem>>, vector<16x64xf32>,
    %c0_405 = arith.constant 0 : index
    %c0_406 = arith.constant 0 : index
    %521 = vector.load %arg38[%c0_405, %c0_406] : memref<144x64xf32, #tpu.memory_space<vmem>>, vector<128x64xf32>
    %cst_407 = arith.constant dense<0.000000e+00> : vector<16x64xf32>
    %522 = tpu.matmul %500, %521, %cst_407 {dimension_numbers = #tpu.dot_dimension_numbers<[1], [0], [0], [1], [0, 0, 1, 1], [], []>} : vector<16x128xf32>, vector<128x64xf32>, vector<16x64xf32> -> vector<16x64xf32>
    %cst_408 = arith.constant dense<0.000000e+00> : vector<16x16xf32>
    %523 = tpu.matmul %522, %502, %cst_408 {dimension_numbers = #tpu.dot_dimension_numbers<[1], [0], [0], [1], [0, 0, 1, 1], [], []>} : vector<16x64xf32>, vector<64x16xf32>, vector<16x16xf32> -> vector<16x16xf32>
    %524 = vector.broadcast %501 : vector<16x1xf32> to vector<16x16xf32>
    %525 = arith.addf %523, %524 : vector<16x16xf32>
    %526 = tpu.iota {dimensions = array<i32: 1>} : vector<1x16xi32>
    %c4_i32 = arith.constant 4 : i32
    %c0_i32_409 = arith.constant 0 : i32
    %527 = arith.cmpi eq, %c4_i32, %c0_i32_409 : i32
    %c1_i32_410 = arith.constant 1 : i32
    %528 = arith.select %527, %c1_i32_410, %c4_i32 : i32
    %529 = vector.broadcast %528 : i32 to vector<1x16xi32>
    %530 = arith.remsi %526, %529 : vector<1x16xi32>
    %c0_i32_411 = arith.constant 0 : i32
    %531 = vector.broadcast %c0_i32_411 : i32 to vector<1x16xi32>
    %532 = arith.cmpi ne, %530, %531 : vector<1x16xi32>
    %c0_i32_412 = arith.constant 0 : i32
    %533 = vector.broadcast %c0_i32_412 : i32 to vector<1x16xi32>
    %534 = arith.cmpi slt, %530, %533 : vector<1x16xi32>
    %c0_i32_413 = arith.constant 0 : i32
    %535 = arith.cmpi slt, %528, %c0_i32_413 : i32
    %536 = vector.broadcast %535 : i1 to vector<1x16xi1>
    %537 = vector.broadcast %536 : vector<1x16xi1> to vector<1x16xi1>
    %538 = arith.xori %534, %537 : vector<1x16xi1>
    %539 = arith.andi %538, %532 : vector<1x16xi1>
    %540 = vector.broadcast %528 : i32 to vector<1x16xi32>
    %541 = arith.addi %530, %540 : vector<1x16xi32>
    %542 = arith.select %539, %541, %530 : vector<1x16xi1>, vector<1x16xi32>
    %c1_i32_414 = arith.constant 1 : i32
    %543 = vector.broadcast %c1_i32_414 : i32 to vector<1x16xi32>
    %544 = arith.cmpi sge, %542, %543 : vector<1x16xi32>
    %c2_i32 = arith.constant 2 : i32
    %545 = vector.broadcast %c2_i32 : i32 to vector<1x16xi32>
    %546 = arith.cmpi sle, %542, %545 : vector<1x16xi32>
    %c0_415 = arith.constant 0 : index
    %c0_416 = arith.constant 0 : index
    %547 = vector.load %arg25[%c0_415, %c0_416] : memref<16x1xf32, #tpu.memory_space<vmem>>, vector<16x1xf32>
    %c0_417 = arith.constant 0 : index
    %c0_418 = arith.constant 0 : index
    %548 = vector.load %arg26[%c0_417, %c0_418] : memref<16x1xf32, #tpu.memory_space<vmem>>, vector<16x1xf32>
    %c0_419 = arith.constant 0 : index
    %c0_420 = arith.constant 0 : index
    %549 = vector.load %arg27[%c0_419, %c0_420] : memref<16x144xf32, #tpu.memory_space<vmem>>, vector<16x144xf32>
    %c0_421 = arith.constant 0 : index
    %c0_422 = arith.constant 0 : index
    %550 = vector.load %arg28[%c0_421, %c0_422] : memref<16x1xf32, #tpu.memory_space<vmem>>, vector<16x1xf32>
    %c0_423 = arith.constant 0 : index
    %c0_424 = arith.constant 0 : index
    %551 = vector.load %arg29[%c0_423, %c0_424] : memref<16x1xf32, #tpu.memory_space<vmem>>, vector<16x1xf32>
    %c0_425 = arith.constant 0 : index
    %c0_426 = arith.constant 0 : index
    %552 = vector.load %arg30[%c0_425, %c0_426] : memref<16x1xf32, #tpu.memory_space<vmem>>, vector<16x1xf32>
    %c0_427 = arith.constant 0 : index
    %c0_428 = arith.constant 0 : index
    %553 = vector.load %arg31[%c0_427, %c0_428] : memref<16x144xf32, #tpu.memory_space<vmem>>, vector<16x144xf32>
    %c0_429 = arith.constant 0 : index
    %c0_430 = arith.constant 0 : index
    %554 = vector.load %arg32[%c0_429, %c0_430] : memref<16x1xf32, #tpu.memory_space<vmem>>, vector<16x1xf32>
    %555 = vector.extract_strided_slice %525 {offsets = [0, 0], sizes = [8, 16], strides = [1, 1]} : vector<16x16xf32> to vector<8x16xf32>
    %cst_431 = arith.constant dense<0.000000e+00> : vector<8xf32>
    %556 = vector.multi_reduction <add>, %555, %cst_431 [1] : vector<8x16xf32> to vector<8xf32>
    %557 = vector.shape_cast %556 : vector<8xf32> to vector<8x1xf32>
    %cst_432 = arith.constant dense<0.000000e+00> : vector<1xf32>
    %558 = vector.multi_reduction <add>, %557, %cst_432 [0] : vector<8x1xf32> to vector<1xf32>
    %559 = vector.shape_cast %558 : vector<1xf32> to vector<1x1xf32>
    %cst_433 = arith.constant 7.812500e-03 : f32
    %560 = vector.broadcast %cst_433 : f32 to vector<1x1xf32>
    %561 = arith.mulf %559, %560 : vector<1x1xf32>
    %562 = vector.broadcast %561 : vector<1x1xf32> to vector<8x16xf32>
    %563 = arith.subf %555, %562 : vector<8x16xf32>
    %564 = arith.mulf %563, %563 : vector<8x16xf32>
    %cst_434 = arith.constant dense<0.000000e+00> : vector<8xf32>
    %565 = vector.multi_reduction <add>, %564, %cst_434 [1] : vector<8x16xf32> to vector<8xf32>
    %566 = vector.shape_cast %565 : vector<8xf32> to vector<8x1xf32>
    %cst_435 = arith.constant dense<0.000000e+00> : vector<1xf32>
    %567 = vector.multi_reduction <add>, %566, %cst_435 [0] : vector<8x1xf32> to vector<1xf32>
    %568 = vector.shape_cast %567 : vector<1xf32> to vector<1x1xf32>
    %cst_436 = arith.constant 7.812500e-03 : f32
    %569 = vector.broadcast %cst_436 : f32 to vector<1x1xf32>
    %570 = arith.mulf %568, %569 : vector<1x1xf32>
    %cst_437 = arith.constant 9.99999974E-6 : f32
    %571 = vector.broadcast %cst_437 : f32 to vector<1x1xf32>
    %572 = arith.addf %570, %571 : vector<1x1xf32>
    %573 = math.rsqrt %572 : vector<1x1xf32>
    %574 = vector.broadcast %573 : vector<1x1xf32> to vector<8x16xf32>
    %575 = arith.mulf %563, %574 : vector<8x16xf32>
    %576 = vector.extract_strided_slice %525 {offsets = [8, 0], sizes = [8, 16], strides = [1, 1]} : vector<16x16xf32> to vector<8x16xf32>
    %cst_438 = arith.constant dense<0.000000e+00> : vector<8xf32>
    %577 = vector.multi_reduction <add>, %576, %cst_438 [1] : vector<8x16xf32> to vector<8xf32>
    %578 = vector.shape_cast %577 : vector<8xf32> to vector<8x1xf32>
    %cst_439 = arith.constant dense<0.000000e+00> : vector<1xf32>
    %579 = vector.multi_reduction <add>, %578, %cst_439 [0] : vector<8x1xf32> to vector<1xf32>
    %580 = vector.shape_cast %579 : vector<1xf32> to vector<1x1xf32>
    %cst_440 = arith.constant 7.812500e-03 : f32
    %581 = vector.broadcast %cst_440 : f32 to vector<1x1xf32>
    %582 = arith.mulf %580, %581 : vector<1x1xf32>
    %583 = vector.broadcast %582 : vector<1x1xf32> to vector<8x16xf32>
    %584 = arith.subf %576, %583 : vector<8x16xf32>
    %585 = arith.mulf %584, %584 : vector<8x16xf32>
    %cst_441 = arith.constant dense<0.000000e+00> : vector<8xf32>
    %586 = vector.multi_reduction <add>, %585, %cst_441 [1] : vector<8x16xf32> to vector<8xf32>
    %587 = vector.shape_cast %586 : vector<8xf32> to vector<8x1xf32>
    %cst_442 = arith.constant dense<0.000000e+00> : vector<1xf32>
    %588 = vector.multi_reduction <add>, %587, %cst_442 [0] : vector<8x1xf32> to vector<1xf32>
    %589 = vector.shape_cast %588 : vector<1xf32> to vector<1x1xf32>
    %cst_443 = arith.constant 7.812500e-03 : f32
    %590 = vector.broadcast %cst_443 : f32 to vector<1x1xf32>
    %591 = arith.mulf %589, %590 : vector<1x1xf32>
    %cst_444 = arith.constant 9.99999974E-6 : f32
    %592 = vector.broadcast %cst_444 : f32 to vector<1x1xf32>
    %593 = arith.addf %591, %592 : vector<1x1xf32>
    %594 = math.rsqrt %593 : vector<1x1xf32>
    %595 = vector.broadcast %594 : vector<1x1xf32> to vector<8x16xf32>
    %596 = arith.mulf %584, %595 : vector<8x16xf32>
    %597 = tpu.concatenate %575, %596 in 0 : vector<8x16xf32>, vector<8x16xf32> -> vector<16x16xf32>
    %598 = vector.broadcast %547 : vector<16x1xf32> to vector<16x16xf32>
    %599 = arith.mulf %597, %598 : vector<16x16xf32>
    %600 = vector.broadcast %548 : vector<16x1xf32> to vector<16x16xf32>
    %601 = arith.addf %599, %600 : vector<16x16xf32>
    %602 = arith.negf %601 : vector<16x16xf32>
    %603 = math.exp %602 : vector<16x16xf32>
    %cst_445 = arith.constant 1.000000e+00 : f32
    %604 = vector.broadcast %cst_445 : f32 to vector<16x16xf32>
    %605 = arith.addf %604, %603 : vector<16x16xf32>
    %606 = arith.divf %604, %605 : vector<16x16xf32>
    %607 = arith.mulf %601, %606 : vector<16x16xf32>
    %c0_446 = arith.constant 0 : index
    %c128_447 = arith.constant 128 : index
    %608 = vector.load %arg39[%c0_446, %c128_447] : memref<16x272xf32, #tpu.memory_space<vmem>>, vector<16x16xf32>
    tpu.vector_store %arg39[%c0_446, %c128_447], %607 {strides = array<i32>} : memref<16x272xf32, #tpu.memory_space<vmem>>, vector<16x16xf32>,
    %c0_448 = arith.constant 0 : index
    %c123 = arith.constant 123 : index
    %609 = vector.load %arg39[%c0_448, %c123] : memref<16x272xf32, #tpu.memory_space<vmem>>, vector<16x16xf32>
    %cst_449 = arith.constant 0.000000e+00 : f32
    %610 = vector.shape_cast %544 : vector<1x16xi1> to vector<1x16xi1>
    %611 = vector.broadcast %610 : vector<1x16xi1> to vector<16x16xi1>
    %612 = vector.broadcast %cst_449 : f32 to vector<16x16xf32>
    %613 = arith.select %611, %609, %612 : vector<16x16xi1>, vector<16x16xf32>
    %c0_450 = arith.constant 0 : index
    %c0_451 = arith.constant 0 : index
    %614 = vector.load %arg40[%c0_450, %c0_451] : memref<144x16xf32, #tpu.memory_space<vmem>>, vector<16x16xf32>
    tpu.vector_store %arg40[%c0_450, %c0_451], %613 {strides = array<i32>} : memref<144x16xf32, #tpu.memory_space<vmem>>, vector<16x16xf32>,
    %c0_452 = arith.constant 0 : index
    %c124 = arith.constant 124 : index
    %615 = vector.load %arg39[%c0_452, %c124] : memref<16x272xf32, #tpu.memory_space<vmem>>, vector<16x16xf32>
    %c16_453 = arith.constant 16 : index
    %c0_454 = arith.constant 0 : index
    %616 = vector.load %arg40[%c16_453, %c0_454] : memref<144x16xf32, #tpu.memory_space<vmem>>, vector<16x16xf32>
    tpu.vector_store %arg40[%c16_453, %c0_454], %615 {strides = array<i32>} : memref<144x16xf32, #tpu.memory_space<vmem>>, vector<16x16xf32>,
    %c0_455 = arith.constant 0 : index
    %c125 = arith.constant 125 : index
    %617 = vector.load %arg39[%c0_455, %c125] : memref<16x272xf32, #tpu.memory_space<vmem>>, vector<16x16xf32>
    %cst_456 = arith.constant 0.000000e+00 : f32
    %618 = vector.shape_cast %546 : vector<1x16xi1> to vector<1x16xi1>
    %619 = vector.broadcast %618 : vector<1x16xi1> to vector<16x16xi1>
    %620 = vector.broadcast %cst_456 : f32 to vector<16x16xf32>
    %621 = arith.select %619, %617, %620 : vector<16x16xi1>, vector<16x16xf32>
    %c32_457 = arith.constant 32 : index
    %c0_458 = arith.constant 0 : index
    %622 = vector.load %arg40[%c32_457, %c0_458] : memref<144x16xf32, #tpu.memory_space<vmem>>, vector<16x16xf32>
    tpu.vector_store %arg40[%c32_457, %c0_458], %621 {strides = array<i32>} : memref<144x16xf32, #tpu.memory_space<vmem>>, vector<16x16xf32>,
    %c0_459 = arith.constant 0 : index
    %c127_460 = arith.constant 127 : index
    %623 = vector.load %arg39[%c0_459, %c127_460] : memref<16x272xf32, #tpu.memory_space<vmem>>, vector<16x16xf32>
    %cst_461 = arith.constant 0.000000e+00 : f32
    %624 = vector.shape_cast %544 : vector<1x16xi1> to vector<1x16xi1>
    %625 = vector.broadcast %624 : vector<1x16xi1> to vector<16x16xi1>
    %626 = vector.broadcast %cst_461 : f32 to vector<16x16xf32>
    %627 = arith.select %625, %623, %626 : vector<16x16xi1>, vector<16x16xf32>
    %c48_462 = arith.constant 48 : index
    %c0_463 = arith.constant 0 : index
    %628 = vector.load %arg40[%c48_462, %c0_463] : memref<144x16xf32, #tpu.memory_space<vmem>>, vector<16x16xf32>
    tpu.vector_store %arg40[%c48_462, %c0_463], %627 {strides = array<i32>} : memref<144x16xf32, #tpu.memory_space<vmem>>, vector<16x16xf32>,
    %c0_464 = arith.constant 0 : index
    %c128_465 = arith.constant 128 : index
    %629 = vector.load %arg39[%c0_464, %c128_465] : memref<16x272xf32, #tpu.memory_space<vmem>>, vector<16x16xf32>
    %c64_466 = arith.constant 64 : index
    %c0_467 = arith.constant 0 : index
    %630 = vector.load %arg40[%c64_466, %c0_467] : memref<144x16xf32, #tpu.memory_space<vmem>>, vector<16x16xf32>
    tpu.vector_store %arg40[%c64_466, %c0_467], %629 {strides = array<i32>} : memref<144x16xf32, #tpu.memory_space<vmem>>, vector<16x16xf32>,
    %c0_468 = arith.constant 0 : index
    %c129_469 = arith.constant 129 : index
    %631 = vector.load %arg39[%c0_468, %c129_469] : memref<16x272xf32, #tpu.memory_space<vmem>>, vector<16x16xf32>
    %cst_470 = arith.constant 0.000000e+00 : f32
    %632 = vector.shape_cast %546 : vector<1x16xi1> to vector<1x16xi1>
    %633 = vector.broadcast %632 : vector<1x16xi1> to vector<16x16xi1>
    %634 = vector.broadcast %cst_470 : f32 to vector<16x16xf32>
    %635 = arith.select %633, %631, %634 : vector<16x16xi1>, vector<16x16xf32>
    %c80_471 = arith.constant 80 : index
    %c0_472 = arith.constant 0 : index
    %636 = vector.load %arg40[%c80_471, %c0_472] : memref<144x16xf32, #tpu.memory_space<vmem>>, vector<16x16xf32>
    tpu.vector_store %arg40[%c80_471, %c0_472], %635 {strides = array<i32>} : memref<144x16xf32, #tpu.memory_space<vmem>>, vector<16x16xf32>,
    %c0_473 = arith.constant 0 : index
    %c131 = arith.constant 131 : index
    %637 = vector.load %arg39[%c0_473, %c131] : memref<16x272xf32, #tpu.memory_space<vmem>>, vector<16x16xf32>
    %cst_474 = arith.constant 0.000000e+00 : f32
    %638 = vector.shape_cast %544 : vector<1x16xi1> to vector<1x16xi1>
    %639 = vector.broadcast %638 : vector<1x16xi1> to vector<16x16xi1>
    %640 = vector.broadcast %cst_474 : f32 to vector<16x16xf32>
    %641 = arith.select %639, %637, %640 : vector<16x16xi1>, vector<16x16xf32>
    %c96_475 = arith.constant 96 : index
    %c0_476 = arith.constant 0 : index
    %642 = vector.load %arg40[%c96_475, %c0_476] : memref<144x16xf32, #tpu.memory_space<vmem>>, vector<16x16xf32>
    tpu.vector_store %arg40[%c96_475, %c0_476], %641 {strides = array<i32>} : memref<144x16xf32, #tpu.memory_space<vmem>>, vector<16x16xf32>,
    %c0_477 = arith.constant 0 : index
    %c132 = arith.constant 132 : index
    %643 = vector.load %arg39[%c0_477, %c132] : memref<16x272xf32, #tpu.memory_space<vmem>>, vector<16x16xf32>
    %c112_478 = arith.constant 112 : index
    %c0_479 = arith.constant 0 : index
    %644 = vector.load %arg40[%c112_478, %c0_479] : memref<144x16xf32, #tpu.memory_space<vmem>>, vector<16x16xf32>
    tpu.vector_store %arg40[%c112_478, %c0_479], %643 {strides = array<i32>} : memref<144x16xf32, #tpu.memory_space<vmem>>, vector<16x16xf32>,
    %c0_480 = arith.constant 0 : index
    %c133 = arith.constant 133 : index
    %645 = vector.load %arg39[%c0_480, %c133] : memref<16x272xf32, #tpu.memory_space<vmem>>, vector<16x16xf32>
    %cst_481 = arith.constant 0.000000e+00 : f32
    %646 = vector.shape_cast %546 : vector<1x16xi1> to vector<1x16xi1>
    %647 = vector.broadcast %646 : vector<1x16xi1> to vector<16x16xi1>
    %648 = vector.broadcast %cst_481 : f32 to vector<16x16xf32>
    %649 = arith.select %647, %645, %648 : vector<16x16xi1>, vector<16x16xf32>
    %c128_482 = arith.constant 128 : index
    %c0_483 = arith.constant 0 : index
    %650 = vector.load %arg40[%c128_482, %c0_483] : memref<144x16xf32, #tpu.memory_space<vmem>>, vector<16x16xf32>
    tpu.vector_store %arg40[%c128_482, %c0_483], %649 {strides = array<i32>} : memref<144x16xf32, #tpu.memory_space<vmem>>, vector<16x16xf32>,
    %c0_484 = arith.constant 0 : index
    %c0_485 = arith.constant 0 : index
    %651 = vector.load %arg40[%c0_484, %c0_485] : memref<144x16xf32, #tpu.memory_space<vmem>>, vector<144x16xf32>
    %cst_486 = arith.constant dense<0.000000e+00> : vector<16x16xf32>
    %652 = tpu.matmul %549, %651, %cst_486 {dimension_numbers = #tpu.dot_dimension_numbers<[1], [0], [0], [1], [0, 0, 1, 1], [], []>} : vector<16x144xf32>, vector<144x16xf32>, vector<16x16xf32> -> vector<16x16xf32>
    %653 = vector.broadcast %550 : vector<16x1xf32> to vector<16x16xf32>
    %654 = arith.addf %652, %653 : vector<16x16xf32>
    %655 = vector.extract_strided_slice %654 {offsets = [0, 0], sizes = [8, 16], strides = [1, 1]} : vector<16x16xf32> to vector<8x16xf32>
    %cst_487 = arith.constant dense<0.000000e+00> : vector<8xf32>
    %656 = vector.multi_reduction <add>, %655, %cst_487 [1] : vector<8x16xf32> to vector<8xf32>
    %657 = vector.shape_cast %656 : vector<8xf32> to vector<8x1xf32>
    %cst_488 = arith.constant dense<0.000000e+00> : vector<1xf32>
    %658 = vector.multi_reduction <add>, %657, %cst_488 [0] : vector<8x1xf32> to vector<1xf32>
    %659 = vector.shape_cast %658 : vector<1xf32> to vector<1x1xf32>
    %cst_489 = arith.constant 7.812500e-03 : f32
    %660 = vector.broadcast %cst_489 : f32 to vector<1x1xf32>
    %661 = arith.mulf %659, %660 : vector<1x1xf32>
    %662 = vector.broadcast %661 : vector<1x1xf32> to vector<8x16xf32>
    %663 = arith.subf %655, %662 : vector<8x16xf32>
    %664 = arith.mulf %663, %663 : vector<8x16xf32>
    %cst_490 = arith.constant dense<0.000000e+00> : vector<8xf32>
    %665 = vector.multi_reduction <add>, %664, %cst_490 [1] : vector<8x16xf32> to vector<8xf32>
    %666 = vector.shape_cast %665 : vector<8xf32> to vector<8x1xf32>
    %cst_491 = arith.constant dense<0.000000e+00> : vector<1xf32>
    %667 = vector.multi_reduction <add>, %666, %cst_491 [0] : vector<8x1xf32> to vector<1xf32>
    %668 = vector.shape_cast %667 : vector<1xf32> to vector<1x1xf32>
    %cst_492 = arith.constant 7.812500e-03 : f32
    %669 = vector.broadcast %cst_492 : f32 to vector<1x1xf32>
    %670 = arith.mulf %668, %669 : vector<1x1xf32>
    %cst_493 = arith.constant 9.99999974E-6 : f32
    %671 = vector.broadcast %cst_493 : f32 to vector<1x1xf32>
    %672 = arith.addf %670, %671 : vector<1x1xf32>
    %673 = math.rsqrt %672 : vector<1x1xf32>
    %674 = vector.broadcast %673 : vector<1x1xf32> to vector<8x16xf32>
    %675 = arith.mulf %663, %674 : vector<8x16xf32>
    %676 = vector.extract_strided_slice %654 {offsets = [8, 0], sizes = [8, 16], strides = [1, 1]} : vector<16x16xf32> to vector<8x16xf32>
    %cst_494 = arith.constant dense<0.000000e+00> : vector<8xf32>
    %677 = vector.multi_reduction <add>, %676, %cst_494 [1] : vector<8x16xf32> to vector<8xf32>
    %678 = vector.shape_cast %677 : vector<8xf32> to vector<8x1xf32>
    %cst_495 = arith.constant dense<0.000000e+00> : vector<1xf32>
    %679 = vector.multi_reduction <add>, %678, %cst_495 [0] : vector<8x1xf32> to vector<1xf32>
    %680 = vector.shape_cast %679 : vector<1xf32> to vector<1x1xf32>
    %cst_496 = arith.constant 7.812500e-03 : f32
    %681 = vector.broadcast %cst_496 : f32 to vector<1x1xf32>
    %682 = arith.mulf %680, %681 : vector<1x1xf32>
    %683 = vector.broadcast %682 : vector<1x1xf32> to vector<8x16xf32>
    %684 = arith.subf %676, %683 : vector<8x16xf32>
    %685 = arith.mulf %684, %684 : vector<8x16xf32>
    %cst_497 = arith.constant dense<0.000000e+00> : vector<8xf32>
    %686 = vector.multi_reduction <add>, %685, %cst_497 [1] : vector<8x16xf32> to vector<8xf32>
    %687 = vector.shape_cast %686 : vector<8xf32> to vector<8x1xf32>
    %cst_498 = arith.constant dense<0.000000e+00> : vector<1xf32>
    %688 = vector.multi_reduction <add>, %687, %cst_498 [0] : vector<8x1xf32> to vector<1xf32>
    %689 = vector.shape_cast %688 : vector<1xf32> to vector<1x1xf32>
    %cst_499 = arith.constant 7.812500e-03 : f32
    %690 = vector.broadcast %cst_499 : f32 to vector<1x1xf32>
    %691 = arith.mulf %689, %690 : vector<1x1xf32>
    %cst_500 = arith.constant 9.99999974E-6 : f32
    %692 = vector.broadcast %cst_500 : f32 to vector<1x1xf32>
    %693 = arith.addf %691, %692 : vector<1x1xf32>
    %694 = math.rsqrt %693 : vector<1x1xf32>
    %695 = vector.broadcast %694 : vector<1x1xf32> to vector<8x16xf32>
    %696 = arith.mulf %684, %695 : vector<8x16xf32>
    %697 = tpu.concatenate %675, %696 in 0 : vector<8x16xf32>, vector<8x16xf32> -> vector<16x16xf32>
    %698 = vector.broadcast %551 : vector<16x1xf32> to vector<16x16xf32>
    %699 = arith.mulf %697, %698 : vector<16x16xf32>
    %700 = vector.broadcast %552 : vector<16x1xf32> to vector<16x16xf32>
    %701 = arith.addf %699, %700 : vector<16x16xf32>
    %702 = arith.negf %701 : vector<16x16xf32>
    %703 = math.exp %702 : vector<16x16xf32>
    %cst_501 = arith.constant 1.000000e+00 : f32
    %704 = vector.broadcast %cst_501 : f32 to vector<16x16xf32>
    %705 = arith.addf %704, %703 : vector<16x16xf32>
    %706 = arith.divf %704, %705 : vector<16x16xf32>
    %707 = arith.mulf %701, %706 : vector<16x16xf32>
    %c0_502 = arith.constant 0 : index
    %c128_503 = arith.constant 128 : index
    %708 = vector.load %arg39[%c0_502, %c128_503] : memref<16x272xf32, #tpu.memory_space<vmem>>, vector<16x16xf32>
    tpu.vector_store %arg39[%c0_502, %c128_503], %707 {strides = array<i32>} : memref<16x272xf32, #tpu.memory_space<vmem>>, vector<16x16xf32>,
    %c0_504 = arith.constant 0 : index
    %c123_505 = arith.constant 123 : index
    %709 = vector.load %arg39[%c0_504, %c123_505] : memref<16x272xf32, #tpu.memory_space<vmem>>, vector<16x16xf32>
    %cst_506 = arith.constant 0.000000e+00 : f32
    %710 = vector.shape_cast %544 : vector<1x16xi1> to vector<1x16xi1>
    %711 = vector.broadcast %710 : vector<1x16xi1> to vector<16x16xi1>
    %712 = vector.broadcast %cst_506 : f32 to vector<16x16xf32>
    %713 = arith.select %711, %709, %712 : vector<16x16xi1>, vector<16x16xf32>
    %c0_507 = arith.constant 0 : index
    %c0_508 = arith.constant 0 : index
    %714 = vector.load %arg40[%c0_507, %c0_508] : memref<144x16xf32, #tpu.memory_space<vmem>>, vector<16x16xf32>
    tpu.vector_store %arg40[%c0_507, %c0_508], %713 {strides = array<i32>} : memref<144x16xf32, #tpu.memory_space<vmem>>, vector<16x16xf32>,
    %c0_509 = arith.constant 0 : index
    %c124_510 = arith.constant 124 : index
    %715 = vector.load %arg39[%c0_509, %c124_510] : memref<16x272xf32, #tpu.memory_space<vmem>>, vector<16x16xf32>
    %c16_511 = arith.constant 16 : index
    %c0_512 = arith.constant 0 : index
    %716 = vector.load %arg40[%c16_511, %c0_512] : memref<144x16xf32, #tpu.memory_space<vmem>>, vector<16x16xf32>
    tpu.vector_store %arg40[%c16_511, %c0_512], %715 {strides = array<i32>} : memref<144x16xf32, #tpu.memory_space<vmem>>, vector<16x16xf32>,
    %c0_513 = arith.constant 0 : index
    %c125_514 = arith.constant 125 : index
    %717 = vector.load %arg39[%c0_513, %c125_514] : memref<16x272xf32, #tpu.memory_space<vmem>>, vector<16x16xf32>
    %cst_515 = arith.constant 0.000000e+00 : f32
    %718 = vector.shape_cast %546 : vector<1x16xi1> to vector<1x16xi1>
    %719 = vector.broadcast %718 : vector<1x16xi1> to vector<16x16xi1>
    %720 = vector.broadcast %cst_515 : f32 to vector<16x16xf32>
    %721 = arith.select %719, %717, %720 : vector<16x16xi1>, vector<16x16xf32>
    %c32_516 = arith.constant 32 : index
    %c0_517 = arith.constant 0 : index
    %722 = vector.load %arg40[%c32_516, %c0_517] : memref<144x16xf32, #tpu.memory_space<vmem>>, vector<16x16xf32>
    tpu.vector_store %arg40[%c32_516, %c0_517], %721 {strides = array<i32>} : memref<144x16xf32, #tpu.memory_space<vmem>>, vector<16x16xf32>,
    %c0_518 = arith.constant 0 : index
    %c127_519 = arith.constant 127 : index
    %723 = vector.load %arg39[%c0_518, %c127_519] : memref<16x272xf32, #tpu.memory_space<vmem>>, vector<16x16xf32>
    %cst_520 = arith.constant 0.000000e+00 : f32
    %724 = vector.shape_cast %544 : vector<1x16xi1> to vector<1x16xi1>
    %725 = vector.broadcast %724 : vector<1x16xi1> to vector<16x16xi1>
    %726 = vector.broadcast %cst_520 : f32 to vector<16x16xf32>
    %727 = arith.select %725, %723, %726 : vector<16x16xi1>, vector<16x16xf32>
    %c48_521 = arith.constant 48 : index
    %c0_522 = arith.constant 0 : index
    %728 = vector.load %arg40[%c48_521, %c0_522] : memref<144x16xf32, #tpu.memory_space<vmem>>, vector<16x16xf32>
    tpu.vector_store %arg40[%c48_521, %c0_522], %727 {strides = array<i32>} : memref<144x16xf32, #tpu.memory_space<vmem>>, vector<16x16xf32>,
    %c0_523 = arith.constant 0 : index
    %c128_524 = arith.constant 128 : index
    %729 = vector.load %arg39[%c0_523, %c128_524] : memref<16x272xf32, #tpu.memory_space<vmem>>, vector<16x16xf32>
    %c64_525 = arith.constant 64 : index
    %c0_526 = arith.constant 0 : index
    %730 = vector.load %arg40[%c64_525, %c0_526] : memref<144x16xf32, #tpu.memory_space<vmem>>, vector<16x16xf32>
    tpu.vector_store %arg40[%c64_525, %c0_526], %729 {strides = array<i32>} : memref<144x16xf32, #tpu.memory_space<vmem>>, vector<16x16xf32>,
    %c0_527 = arith.constant 0 : index
    %c129_528 = arith.constant 129 : index
    %731 = vector.load %arg39[%c0_527, %c129_528] : memref<16x272xf32, #tpu.memory_space<vmem>>, vector<16x16xf32>
    %cst_529 = arith.constant 0.000000e+00 : f32
    %732 = vector.shape_cast %546 : vector<1x16xi1> to vector<1x16xi1>
    %733 = vector.broadcast %732 : vector<1x16xi1> to vector<16x16xi1>
    %734 = vector.broadcast %cst_529 : f32 to vector<16x16xf32>
    %735 = arith.select %733, %731, %734 : vector<16x16xi1>, vector<16x16xf32>
    %c80_530 = arith.constant 80 : index
    %c0_531 = arith.constant 0 : index
    %736 = vector.load %arg40[%c80_530, %c0_531] : memref<144x16xf32, #tpu.memory_space<vmem>>, vector<16x16xf32>
    tpu.vector_store %arg40[%c80_530, %c0_531], %735 {strides = array<i32>} : memref<144x16xf32, #tpu.memory_space<vmem>>, vector<16x16xf32>,
    %c0_532 = arith.constant 0 : index
    %c131_533 = arith.constant 131 : index
    %737 = vector.load %arg39[%c0_532, %c131_533] : memref<16x272xf32, #tpu.memory_space<vmem>>, vector<16x16xf32>
    %cst_534 = arith.constant 0.000000e+00 : f32
    %738 = vector.shape_cast %544 : vector<1x16xi1> to vector<1x16xi1>
    %739 = vector.broadcast %738 : vector<1x16xi1> to vector<16x16xi1>
    %740 = vector.broadcast %cst_534 : f32 to vector<16x16xf32>
    %741 = arith.select %739, %737, %740 : vector<16x16xi1>, vector<16x16xf32>
    %c96_535 = arith.constant 96 : index
    %c0_536 = arith.constant 0 : index
    %742 = vector.load %arg40[%c96_535, %c0_536] : memref<144x16xf32, #tpu.memory_space<vmem>>, vector<16x16xf32>
    tpu.vector_store %arg40[%c96_535, %c0_536], %741 {strides = array<i32>} : memref<144x16xf32, #tpu.memory_space<vmem>>, vector<16x16xf32>,
    %c0_537 = arith.constant 0 : index
    %c132_538 = arith.constant 132 : index
    %743 = vector.load %arg39[%c0_537, %c132_538] : memref<16x272xf32, #tpu.memory_space<vmem>>, vector<16x16xf32>
    %c112_539 = arith.constant 112 : index
    %c0_540 = arith.constant 0 : index
    %744 = vector.load %arg40[%c112_539, %c0_540] : memref<144x16xf32, #tpu.memory_space<vmem>>, vector<16x16xf32>
    tpu.vector_store %arg40[%c112_539, %c0_540], %743 {strides = array<i32>} : memref<144x16xf32, #tpu.memory_space<vmem>>, vector<16x16xf32>,
    %c0_541 = arith.constant 0 : index
    %c133_542 = arith.constant 133 : index
    %745 = vector.load %arg39[%c0_541, %c133_542] : memref<16x272xf32, #tpu.memory_space<vmem>>, vector<16x16xf32>
    %cst_543 = arith.constant 0.000000e+00 : f32
    %746 = vector.shape_cast %546 : vector<1x16xi1> to vector<1x16xi1>
    %747 = vector.broadcast %746 : vector<1x16xi1> to vector<16x16xi1>
    %748 = vector.broadcast %cst_543 : f32 to vector<16x16xf32>
    %749 = arith.select %747, %745, %748 : vector<16x16xi1>, vector<16x16xf32>
    %c128_544 = arith.constant 128 : index
    %c0_545 = arith.constant 0 : index
    %750 = vector.load %arg40[%c128_544, %c0_545] : memref<144x16xf32, #tpu.memory_space<vmem>>, vector<16x16xf32>
    tpu.vector_store %arg40[%c128_544, %c0_545], %749 {strides = array<i32>} : memref<144x16xf32, #tpu.memory_space<vmem>>, vector<16x16xf32>,
    %c0_546 = arith.constant 0 : index
    %c0_547 = arith.constant 0 : index
    %751 = vector.load %arg40[%c0_546, %c0_547] : memref<144x16xf32, #tpu.memory_space<vmem>>, vector<144x16xf32>
    %cst_548 = arith.constant dense<0.000000e+00> : vector<16x16xf32>
    %752 = tpu.matmul %553, %751, %cst_548 {dimension_numbers = #tpu.dot_dimension_numbers<[1], [0], [0], [1], [0, 0, 1, 1], [], []>} : vector<16x144xf32>, vector<144x16xf32>, vector<16x16xf32> -> vector<16x16xf32>
    %753 = vector.broadcast %554 : vector<16x1xf32> to vector<16x16xf32>
    %754 = arith.addf %752, %753 : vector<16x16xf32>
    %755 = arith.addf %754, %525 : vector<16x16xf32>
    %756 = arith.addf %755, %525 : vector<16x16xf32>
    %c0_549 = arith.constant 0 : index
    %c0_550 = arith.constant 0 : index
    %757 = vector.load %arg33[%c0_549, %c0_550] : memref<4x16xf32, #tpu.memory_space<vmem>>, vector<4x16xf32>
    %cst_551 = arith.constant dense<0.000000e+00> : vector<4x16xf32>
    %758 = tpu.matmul %757, %756, %cst_551 {dimension_numbers = #tpu.dot_dimension_numbers<[1], [0], [0], [1], [0, 0, 1, 1], [], []>} : vector<4x16xf32>, vector<16x16xf32>, vector<4x16xf32> -> vector<4x16xf32>
    %c0_552 = arith.constant 0 : index
    %c0_553 = arith.constant 0 : index
    %c0_554 = arith.constant 0 : index
    %759 = vector.load %arg34[%c0_552, %c0_553, %c0_554] : memref<1x4x16xf32, #tpu.memory_space<vmem>>, vector<1x4x16xf32>
    %760 = vector.shape_cast %759 : vector<1x4x16xf32> to vector<4x16xf32>
    %761 = vector.shape_cast %758 : vector<4x16xf32> to vector<1x4x16xf32>
    tpu.vector_store %arg34[%c0_552, %c0_553, %c0_554], %761 {strides = array<i32>} : memref<1x4x16xf32, #tpu.memory_space<vmem>>, vector<1x4x16xf32>,
    return
  }
  func.func @transform_0(%arg0: i32) -> (i32, i32, i32) {
    %c0_i32 = arith.constant 0 : i32
    %c0_i32_0 = arith.constant 0 : i32
    %c0_i32_1 = arith.constant 0 : i32
    return %arg0, %c0_i32, %c0_i32_0 : i32, i32, i32
  }
  func.func @transform_1(%arg0: i32) -> (i32, i32) {
    %c0_i32 = arith.constant 0 : i32
    %c0_i32_0 = arith.constant 0 : i32
    %c0_i32_1 = arith.constant 0 : i32
    return %c0_i32, %c0_i32_0 : i32, i32
  }
  func.func @transform_2(%arg0: i32) -> (i32, i32) {
    %c0_i32 = arith.constant 0 : i32
    %c0_i32_0 = arith.constant 0 : i32
    %c0_i32_1 = arith.constant 0 : i32
    return %c0_i32, %c0_i32_0 : i32, i32
  }
  func.func @transform_3(%arg0: i32) -> (i32, i32) {
    %c0_i32 = arith.constant 0 : i32
    %c0_i32_0 = arith.constant 0 : i32
    %c0_i32_1 = arith.constant 0 : i32
    return %c0_i32, %c0_i32_0 : i32, i32
  }
  func.func @transform_4(%arg0: i32) -> (i32, i32) {
    %c0_i32 = arith.constant 0 : i32
    %c0_i32_0 = arith.constant 0 : i32
    %c0_i32_1 = arith.constant 0 : i32
    return %c0_i32, %c0_i32_0 : i32, i32
  }
  func.func @transform_5(%arg0: i32) -> (i32, i32) {
    %c0_i32 = arith.constant 0 : i32
    %c0_i32_0 = arith.constant 0 : i32
    %c0_i32_1 = arith.constant 0 : i32
    return %c0_i32, %c0_i32_0 : i32, i32
  }
  func.func @transform_6(%arg0: i32) -> (i32, i32) {
    %c0_i32 = arith.constant 0 : i32
    %c0_i32_0 = arith.constant 0 : i32
    %c0_i32_1 = arith.constant 0 : i32
    return %c0_i32, %c0_i32_0 : i32, i32
  }
  func.func @transform_7(%arg0: i32) -> (i32, i32) {
    %c0_i32 = arith.constant 0 : i32
    %c0_i32_0 = arith.constant 0 : i32
    %c0_i32_1 = arith.constant 0 : i32
    return %c0_i32, %c0_i32_0 : i32, i32
  }
  func.func @transform_8(%arg0: i32) -> (i32, i32) {
    %c0_i32 = arith.constant 0 : i32
    %c0_i32_0 = arith.constant 0 : i32
    %c0_i32_1 = arith.constant 0 : i32
    return %c0_i32, %c0_i32_0 : i32, i32
  }
  func.func @transform_9(%arg0: i32) -> (i32, i32) {
    %c0_i32 = arith.constant 0 : i32
    %c0_i32_0 = arith.constant 0 : i32
    %c0_i32_1 = arith.constant 0 : i32
    return %c0_i32, %c0_i32_0 : i32, i32
  }
  func.func @transform_10(%arg0: i32) -> (i32, i32) {
    %c0_i32 = arith.constant 0 : i32
    %c0_i32_0 = arith.constant 0 : i32
    %c0_i32_1 = arith.constant 0 : i32
    return %c0_i32, %c0_i32_0 : i32, i32
  }
  func.func @transform_11(%arg0: i32) -> (i32, i32) {
    %c0_i32 = arith.constant 0 : i32
    %c0_i32_0 = arith.constant 0 : i32
    %c0_i32_1 = arith.constant 0 : i32
    return %c0_i32, %c0_i32_0 : i32, i32
  }
  func.func @transform_12(%arg0: i32) -> (i32, i32) {
    %c0_i32 = arith.constant 0 : i32
    %c0_i32_0 = arith.constant 0 : i32
    %c0_i32_1 = arith.constant 0 : i32
    return %c0_i32, %c0_i32_0 : i32, i32
  }
  func.func @transform_13(%arg0: i32) -> (i32, i32) {
    %c0_i32 = arith.constant 0 : i32
    %c0_i32_0 = arith.constant 0 : i32
    %c0_i32_1 = arith.constant 0 : i32
    return %c0_i32, %c0_i32_0 : i32, i32
  }
  func.func @transform_14(%arg0: i32) -> (i32, i32) {
    %c0_i32 = arith.constant 0 : i32
    %c0_i32_0 = arith.constant 0 : i32
    %c0_i32_1 = arith.constant 0 : i32
    return %c0_i32, %c0_i32_0 : i32, i32
  }
  func.func @transform_15(%arg0: i32) -> (i32, i32) {
    %c0_i32 = arith.constant 0 : i32
    %c0_i32_0 = arith.constant 0 : i32
    %c0_i32_1 = arith.constant 0 : i32
    return %c0_i32, %c0_i32_0 : i32, i32
  }
  func.func @transform_16(%arg0: i32) -> (i32, i32) {
    %c0_i32 = arith.constant 0 : i32
    %c0_i32_0 = arith.constant 0 : i32
    %c0_i32_1 = arith.constant 0 : i32
    return %c0_i32, %c0_i32_0 : i32, i32
  }
  func.func @transform_17(%arg0: i32) -> (i32, i32) {
    %c0_i32 = arith.constant 0 : i32
    %c0_i32_0 = arith.constant 0 : i32
    %c0_i32_1 = arith.constant 0 : i32
    return %c0_i32, %c0_i32_0 : i32, i32
  }
  func.func @transform_18(%arg0: i32) -> (i32, i32) {
    %c0_i32 = arith.constant 0 : i32
    %c0_i32_0 = arith.constant 0 : i32
    %c0_i32_1 = arith.constant 0 : i32
    return %c0_i32, %c0_i32_0 : i32, i32
  }
  func.func @transform_19(%arg0: i32) -> (i32, i32) {
    %c0_i32 = arith.constant 0 : i32
    %c0_i32_0 = arith.constant 0 : i32
    %c0_i32_1 = arith.constant 0 : i32
    return %c0_i32, %c0_i32_0 : i32, i32
  }
  func.func @transform_20(%arg0: i32) -> (i32, i32) {
    %c0_i32 = arith.constant 0 : i32
    %c0_i32_0 = arith.constant 0 : i32
    %c0_i32_1 = arith.constant 0 : i32
    return %c0_i32, %c0_i32_0 : i32, i32
  }
  func.func @transform_21(%arg0: i32) -> (i32, i32) {
    %c0_i32 = arith.constant 0 : i32
    %c0_i32_0 = arith.constant 0 : i32
    %c0_i32_1 = arith.constant 0 : i32
    return %c0_i32, %c0_i32_0 : i32, i32
  }
  func.func @transform_22(%arg0: i32) -> (i32, i32) {
    %c0_i32 = arith.constant 0 : i32
    %c0_i32_0 = arith.constant 0 : i32
    %c0_i32_1 = arith.constant 0 : i32
    return %c0_i32, %c0_i32_0 : i32, i32
  }
  func.func @transform_23(%arg0: i32) -> (i32, i32) {
    %c0_i32 = arith.constant 0 : i32
    %c0_i32_0 = arith.constant 0 : i32
    %c0_i32_1 = arith.constant 0 : i32
    return %c0_i32, %c0_i32_0 : i32, i32
  }
  func.func @transform_24(%arg0: i32) -> (i32, i32) {
    %c0_i32 = arith.constant 0 : i32
    %c0_i32_0 = arith.constant 0 : i32
    %c0_i32_1 = arith.constant 0 : i32
    return %c0_i32, %c0_i32_0 : i32, i32
  }
  func.func @transform_25(%arg0: i32) -> (i32, i32) {
    %c0_i32 = arith.constant 0 : i32
    %c0_i32_0 = arith.constant 0 : i32
    %c0_i32_1 = arith.constant 0 : i32
    return %c0_i32, %c0_i32_0 : i32, i32
  }
  func.func @transform_26(%arg0: i32) -> (i32, i32) {
    %c0_i32 = arith.constant 0 : i32
    %c0_i32_0 = arith.constant 0 : i32
    %c0_i32_1 = arith.constant 0 : i32
    return %c0_i32, %c0_i32_0 : i32, i32
  }
  func.func @transform_27(%arg0: i32) -> (i32, i32) {
    %c0_i32 = arith.constant 0 : i32
    %c0_i32_0 = arith.constant 0 : i32
    %c0_i32_1 = arith.constant 0 : i32
    return %c0_i32, %c0_i32_0 : i32, i32
  }
  func.func @transform_28(%arg0: i32) -> (i32, i32) {
    %c0_i32 = arith.constant 0 : i32
    %c0_i32_0 = arith.constant 0 : i32
    %c0_i32_1 = arith.constant 0 : i32
    return %c0_i32, %c0_i32_0 : i32, i32
  }
  func.func @transform_29(%arg0: i32) -> (i32, i32) {
    %c0_i32 = arith.constant 0 : i32
    %c0_i32_0 = arith.constant 0 : i32
    %c0_i32_1 = arith.constant 0 : i32
    return %c0_i32, %c0_i32_0 : i32, i32
  }
  func.func @transform_30(%arg0: i32) -> (i32, i32) {
    %c0_i32 = arith.constant 0 : i32
    %c0_i32_0 = arith.constant 0 : i32
    %c0_i32_1 = arith.constant 0 : i32
    return %c0_i32, %c0_i32_0 : i32, i32
  }
  func.func @transform_31(%arg0: i32) -> (i32, i32) {
    %c0_i32 = arith.constant 0 : i32
    %c0_i32_0 = arith.constant 0 : i32
    %c0_i32_1 = arith.constant 0 : i32
    return %c0_i32, %c0_i32_0 : i32, i32
  }
  func.func @transform_32(%arg0: i32) -> (i32, i32) {
    %c0_i32 = arith.constant 0 : i32
    %c0_i32_0 = arith.constant 0 : i32
    %c0_i32_1 = arith.constant 0 : i32
    return %c0_i32, %c0_i32_0 : i32, i32
  }
  func.func @transform_33(%arg0: i32) -> (i32, i32, i32) {
    %c0_i32 = arith.constant 0 : i32
    %c0_i32_0 = arith.constant 0 : i32
    %c0_i32_1 = arith.constant 0 : i32
    return %arg0, %c0_i32, %c0_i32_0 : i32, i32, i32
  }
}

</mosaic_0001>

<bundles_post_ra>
// kernel: _lambda_.1
= control target key start
LH: loop header
LB: loop body
LE: loop exit
PB: predicated region body
PF: predicated region fallthrough
CT: control target
= control target key end

     0   :  { %s5211_s6 = smov 1   ;;  %s5212_s10 = smov 2   ;;  %s6465_s0 = inlined_call_operand.smem [shape: u32[34], index: -1, kind: input, shape index: {}] }
   0x1   :  { %s5288_s5 = sld [smem:[%s6465_s0]]   ;;  %s5213_s14 = smov 3  }
   0x2   :  { %s5293_s9 = sld [smem:[%s6465_s0 + %s5211_s6]]   ;;  %s5214_s18 = smov 4  }
   0x3   :  { %s5298_s13 = sld [smem:[%s6465_s0 + %s5212_s10]]   ;;  %s5215_s22 = smov 5  }
   0x4   :  { %s5303_s17 = sld [smem:[%s6465_s0 + %s5213_s14]]   ;;  %s5216_s26 = smov 6  }
   0x5   :  { %s5308_s21 = sld [smem:[%s6465_s0 + %s5214_s18]]   ;;  %s5217_s30 = smov 7  }
   0x6   :  { %s5313_s25 = sld [smem:[%s6465_s0 + %s5215_s22]]   ;;  %s5218_s4 = smov 8  }
   0x7   :  { %6507 = sst [smem:[#allocation34_spill]] %s5288_s5  ;;  %s5219_s10 = smov 9  }
   0x8   :  { %s5318_s29 = sld [smem:[%s6465_s0 + %s5216_s26]]   ;;  %s5220_s15 = smov 10  }
   0x9   :  { %s5323_s3 = sld [smem:[%s6465_s0 + %s5217_s30]]   ;;  %s5221_s20 = smov 11  }
   0xa   :  { %6508 = sst [smem:[#allocation35_spill]] %s5303_s17  ;;  %s5222_s26 = smov 12  }
   0xb   :  { %s5328_s8 = sld [smem:[%s6465_s0 + %s5218_s4]]   ;;  %s5223_s1 = smov 13  }
   0xc   :  { %s5333_s14 = sld [smem:[%s6465_s0 + %s5219_s10]]   ;;  %s5224_s7 = smov 14  }
   0xd   :  { %s5338_s19 = sld [smem:[%s6465_s0 + %s5220_s15]]   ;;  %s5225_s15 = smov 15  }
   0xe   :  { %6509 = sst [smem:[#allocation36_spill]] %s5318_s29  ;;  %s5226_s22 = smov 16  }
   0xf   :  { %6510 = sst [smem:[#allocation37_spill]] %s5323_s3  ;;  %s5227_s28 = smov 17  }
  0x10   :  { %s5343_s24 = sld [smem:[%s6465_s0 + %s5221_s20]]  }
  0x11   :  { %6511 = sst [smem:[#allocation38_spill]] %s5328_s8 }
  0x12   :  { %s5348_s30 = sld [smem:[%s6465_s0 + %s5222_s26]]  }
  0x13   :  { %s5353_s6 = sld [smem:[%s6465_s0 + %s5223_s1]]  }
  0x14   :  { %s5358_s12 = sld [smem:[%s6465_s0 + %s5224_s7]]   ;;  %s5228_s7 = smov 18  }
  0x15   :  { %s5363_s20 = sld [smem:[%s6465_s0 + %s5225_s15]]   ;;  %s5229_s15 = smov 19  }
  0x16   :  { %s5368_s27 = sld [smem:[%s6465_s0 + %s5226_s22]]   ;;  %s5230_s22 = smov 20  }
  0x17   :  { %s5373_s4 = sld [smem:[%s6465_s0 + %s5227_s28]]   ;;  %s5231_s28 = smov 21  }
  0x19   :  { %6512 = sst [smem:[#allocation39_spill]] %s5353_s6 }
  0x1a   :  { %6513 = sst [smem:[#allocation40_spill]] %s5358_s12 }
  0x1b   :  { %6514 = sst [smem:[#allocation41_spill]] %s5363_s20 }
  0x1c   :  { %s5378_s12 = sld [smem:[%s6465_s0 + %s5228_s7]]   ;;  %s5232_s7 = smov 22  }
  0x1d   :  { %6515 = sst [smem:[#allocation42_spill]] %s5373_s4 }
  0x1e   :  { %s5383_s20 = sld [smem:[%s6465_s0 + %s5229_s15]]   ;;  %s5233_s15 = smov 23  }
  0x1f   :  { %s5388_s6 = sld [smem:[%s6465_s0 + %s5230_s22]]   ;;  %s5234_s22 = smov 24  }
  0x20   :  { %s5393_s4 = sld [smem:[%s6465_s0 + %s5231_s28]]   ;;  %s5235_s28 = smov 25  }
  0x21   :  { %s5408_s3 = sld [smem:[%s6465_s0 + %s5234_s22]]   ;;  %s5238_s22 = smov 28  }
  0x22   :  { %6516 = sst [smem:[#allocation43_spill]] %s5378_s12 }
  0x23   :  { %s5398_s12 = sld [smem:[%s6465_s0 + %s5232_s7]]   ;;  %s5236_s7 = smov 26  }
  0x24   :  { %6517 = sst [smem:[#allocation44_spill]] %s5383_s20 }
  0x25   :  { %s5403_s20 = sld [smem:[%s6465_s0 + %s5233_s15]]   ;;  %s5237_s15 = smov 27  }
  0x26   :  { %6518 = sst [smem:[#allocation45_spill]] %s5393_s4 }
  0x27   :  { %6520 = sst [smem:[#allocation47_spill]] %s5408_s3 }
  0x28   :  { %s5413_s29 = sld [smem:[%s6465_s0 + %s5235_s28]]   ;;  %s5239_s28 = smov 29  }
  0x29   :  { %s5418_s17 = sld [smem:[%s6465_s0 + %s5236_s7]]   ;;  %s5240_s7 = smov 30  }
  0x2a   :  { %s5428_s3 = sld [smem:[%s6465_s0 + %s5238_s22]]   ;;  %s5242_s22 = smov 32  }
  0x2b   :  { %6519 = sst [smem:[#allocation46_spill]] %s5403_s20 }
  0x2c   :  { %s5423_s20 = sld [smem:[%s6465_s0 + %s5237_s15]]   ;;  %s5241_s15 = smov 31  }
  0x2e   :  { %6521 = sst [smem:[#allocation48_spill]] %s5413_s29 }
  0x2f   :  { %6522 = sst [smem:[#allocation49_spill]] %s5418_s17 }
  0x30   :  { %6524 = sst [smem:[#allocation51_spill]] %s5428_s3 }
  0x31   :  { %s5433_s29 = sld [smem:[%s6465_s0 + %s5239_s28]]   ;;  %s5243_s28 = smov 33  }
  0x32   :  { %6523 = sst [smem:[#allocation50_spill]] %s5423_s20 }
  0x33   :  { %s5438_s17 = sld [smem:[%s6465_s0 + %s5240_s7]]  }
  0x34   :  { %s5443_s20 = sld [smem:[%s6465_s0 + %s5241_s15]]  }
  0x35   :  { %s5448_s3 = sld [smem:[%s6465_s0 + %s5242_s22]]  }
  0x37   :  { %6525 = sst [smem:[#allocation52_spill]] %s5433_s29 }
  0x38   :  { %s5453_s29 = sld [smem:[%s6465_s0 + %s5243_s28]]  }
  0x3e   :  { %6526 = sst [smem:[#allocation53_spill]] %s5453_s29 }
  0x3f   :  { %72 = vsyncpa [#allocation9], 0 }
  0x40   :  { %73 = vsyncpa [#allocation11], 0 }
  0x41   :  { %74 = vsyncpa [#allocation14], 0 }
  0x42   :  { %75 = vsyncpa [#allocation17], 0 }
  0x43   :  { %76 = vsyncpa [#allocation20], 0 }
  0x44   :  { %77 = vsyncpa [#allocation23], 0 }
  0x45   :  { %78 = vsyncpa [#allocation26], 0  ;;  %s5455_s7 = smov 0  }
  0x46 LB: > { %s6527_s4 = sld [smem:[#allocation45_spill]]  ;;  %s843_s0 = sshll.u32 %s5308_s21, 4  ;;  %s5209_s7 = sphi %s5455_s7, %s84_s7   ;;  %s5461_s0 = int_to_ptr.hbm [resolvable:$true] %s843_s0 }
  0x47   : > { %s6528_s8 = sld [smem:[#allocation38_spill]]  ;;  %s5464_s10 = sadd.s32 4294967295, %s5209_s7  }
  0x48   : > { %6529 = sst [smem:[#allocation54_spill]] %s5209_s7  ;;  %p4378_p0 = scmp.ge.s32.totalorder %s5209_s7, 1 }
  0x49   : > { %p813_p1 = scmp.lt.s32.totalorder %s5209_s7, 3  ;;  %p4565_p2 = scmp.eq.s32.totalorder %s5464_s10, 0 }
  0x4a   : > { %s5244_s15 = smov [#allocation10]   ;;  %s896_s22 = sshll.u32 %s5338_s19, 4  ;;  %s5488_s22 = int_to_ptr.hbm [resolvable:$true] %s896_s22 }
  0x4b   : > { %p5469_p3 = pnand %p4378_p0, %p813_p1  ;;  %s845_s16 = sshll.u32 %s5244_s15, 4  ;;  %s846_s16 = int_to_ptr.vmem [resolvable:$true] %s845_s16 }
  0x4c   : > { %s5245_s26 = smov [#allocation13]   ;;  %s4815_s1 = sshra.s32 %s5461_s0, 4  ;;  %s4816_s1 = int_to_ptr.hbm [resolvable:$true] %s4815_s1 }
  0x4d   : > { %s873_s18 = sshll.u32 %s6528_s8, 4  ;;  %p4528_p4 = pneg %p5469_p3  ;;  %s5476_s18 = int_to_ptr.hbm [resolvable:$true] %s873_s18 }
  0x4e   : > { %s5485_s28 = sshll.u32 %s5245_s26, 4  ;;  %s4817_s2 = scalar_lea.hbm %s4816_s1, 8  ;;  %s876_s28 = int_to_ptr.vmem [resolvable:$true] %s5485_s28 }
  0x4f   : > { %p5481_p5 = pnand %p4565_p2, %p4528_p4  ;;  %p4818_p6 = scmp.ne.s32.totalorder %s4816_s1, %s4817_s2 }
  0x50   : > { %s4822_s7 = scalar_lea.hbm %s5308_s21, 8  ;;  %p4823_p10 = scmp.lt.s32.totalorder %s4816_s1, %s5308_s21 }
  0x51   : > { %p5493_p7 = pneg %p5481_p5  ;;  %p4824_p11 = scmp.lt.s32.totalorder %s4822_s7, %s4817_s2 }
  0x53   : > { %p4820_p8 = pnand %p5493_p7, %p4818_p6  ;;  %p4825_p12 = por %p4824_p11, %p4823_p10 }
  0x55   : > { %p4821_p9 = pneg %p4820_p8 }
  0x57   : > { %p4826_p13 = pnand %p4825_p12, %p4821_p9 }
  0x59   : > { %4829 = shalt.err (!%p4826_p13)
}
  0x5a   : > { %4534 = dma.hbm_to_vmem [thread:$0]  (!%p5481_p5), %s5461_s0, 128, %s846_s16, [#allocation11]  }
  0x5b   : > { %s4845_s26 = sshra.s32 %s5476_s18, 4  ;;  %s4852_s1 = scalar_lea.hbm %s6528_s8, 8  ;;  %s4846_s26 = int_to_ptr.hbm [resolvable:$true] %s4845_s26 }
  0x5c   : > { %s4847_s29 = scalar_lea.hbm %s4846_s26, 8  ;;  %p4853_p6 = scmp.lt.s32.totalorder %s4846_s26, %s6528_s8 }
  0x5d   : > { %p4848_p0 = scmp.ne.s32.totalorder %s4846_s26, %s4847_s29  ;;  %p4854_p8 = scmp.lt.s32.totalorder %s4852_s1, %s4847_s29 }
  0x5f   : > { %p4850_p1 = pnand %p4848_p0, %p5493_p7  ;;  %p4855_p9 = por %p4854_p8, %p4853_p6 }
  0x61   : > { %p4851_p4 = pneg %p4850_p1 }
  0x63   : > { %p4856_p10 = pnand %p4855_p9, %p4851_p4 }
  0x65   : > { %4859 = shalt.err (!%p4856_p10)
}
  0x66   : > { %4540 = dma.hbm_to_vmem [thread:$0]  (!%p5481_p5), %s5476_s18, 128, %s876_s28, [#allocation14]  }
  0x67   : > { %s5246_s7 = smov [#allocation16]   ;;  %s4875_s16 = sshra.s32 %s5488_s22, 4  ;;  %s4876_s16 = int_to_ptr.hbm [resolvable:$true] %s4875_s16 }
  0x68   : > { %s898_s0 = sshll.u32 %s5246_s7, 4  ;;  %s4877_s2 = scalar_lea.hbm %s4876_s16, 16  ;;  %s899_s0 = int_to_ptr.vmem [resolvable:$true] %s898_s0 }
  0x69   : > { %p4878_p11 = scmp.ne.s32.totalorder %s4876_s16, %s4877_s2  ;;  %s4882_s29 = scalar_lea.hbm %s5338_s19, 16 }
  0x6a   : > { %p4883_p0 = scmp.lt.s32.totalorder %s4876_s16, %s5338_s19  ;;  %p4884_p1 = scmp.lt.s32.totalorder %s4882_s29, %s4877_s2 }
  0x6b   : > { %p4880_p12 = pnand %p4878_p11, %p5493_p7 }
  0x6c   : > { %p4885_p4 = por %p4884_p1, %p4883_p0 }
  0x6d   : > { %p4881_p13 = pneg %p4880_p12 }
  0x6f   : > { %p4886_p6 = pnand %p4885_p4, %p4881_p13 }
  0x71   : > { %4889 = shalt.err (!%p4886_p6)
}
  0x72   : > { %s5247_s26 = smov 128   ;;  %s5248_s18 = smov 8  }
  0x73   : > { %4546 = dma.hbm_to_vmem [thread:$0]  (!%p5481_p5), %s5488_s22, 256, %s899_s0, [#allocation17], %s5247_s26, %s5247_s26, %s5248_s18  }
  0x74   : > { %s924_s28 = sshll.u32 %s5348_s30, 4  ;;  %s5249_s1 = smov [#allocation19]   ;;  %s925_s28 = int_to_ptr.hbm [resolvable:$true] %s924_s28 }
  0x75   : > { %s926_s7 = sshll.u32 %s5249_s1, 4  ;;  %s970_s16 = sshll.u32 %s5388_s6, 4  ;;  %s927_s7 = int_to_ptr.vmem [resolvable:$true] %s926_s7  ;;  %s971_s16 = int_to_ptr.hbm [resolvable:$true] %s970_s16 }
  0x76   : > { %s4905_s2 = sshra.s32 %s925_s28, 4  ;;  %s4912_s8 = scalar_lea.hbm %s5348_s30, 256  ;;  %s4906_s2 = int_to_ptr.hbm [resolvable:$true] %s4905_s2 }
  0x77   : > { %s4907_s29 = scalar_lea.hbm %s4906_s2, 256  ;;  %p4913_p11 = scmp.lt.s32.totalorder %s4906_s2, %s5348_s30 }
  0x78   : > { %p4908_p8 = scmp.ne.s32.totalorder %s4906_s2, %s4907_s29  ;;  %p4914_p12 = scmp.lt.s32.totalorder %s4912_s8, %s4907_s29 }
  0x7a   : > { %p4910_p9 = pnand %p4908_p8, %p5493_p7  ;;  %p4915_p13 = por %p4914_p12, %p4913_p11 }
  0x7c   : > { %p4911_p10 = pneg %p4910_p9 }
  0x7e   : > { %p4916_p0 = pnand %p4915_p13, %p4911_p10 }
  0x80   : > { %4919 = shalt.err (!%p4916_p0)
}
  0x81   : > { %4552 = dma.hbm_to_vmem [thread:$0]  (!%p5481_p5), %s925_s28, 4096, %s927_s7, [#allocation20], %s5247_s26, %s5247_s26, %s5248_s18  }
  0x82   : > { %s5250_s22 = smov [#allocation22]   ;;  %s825_s1 = sshll.u32 %s5293_s9, 4  ;;  %s5535_s1 = int_to_ptr.hbm [resolvable:$true] %s825_s1 }
  0x83   : > { %s972_s0 = sshll.u32 %s5250_s22, 4  ;;  %s4935_s8 = sshra.s32 %s971_s16, 4  ;;  %s973_s0 = int_to_ptr.vmem [resolvable:$true] %s972_s0  ;;  %s4936_s8 = int_to_ptr.hbm [resolvable:$true] %s4935_s8 }
  0x84   : > { %s4937_s2 = scalar_lea.hbm %s4936_s8, 16  ;;  %s4942_s29 = scalar_lea.hbm %s5388_s6, 16 }
  0x85   : > { %p4938_p1 = scmp.ne.s32.totalorder %s4936_s8, %s4937_s2  ;;  %p4943_p8 = scmp.lt.s32.totalorder %s4936_s8, %s5388_s6 }
  0x86   : > { %p4944_p9 = scmp.lt.s32.totalorder %s4942_s29, %s4937_s2 }
  0x87   : > { %p4940_p4 = pnand %p4938_p1, %p5493_p7 }
  0x88   : > { %p4945_p10 = por %p4944_p9, %p4943_p8 }
  0x89   : > { %p4941_p6 = pneg %p4940_p4 }
  0x8b   : > { %p4946_p11 = pnand %p4945_p10, %p4941_p6 }
  0x8d   : > { %4949 = shalt.err (!%p4946_p11)
}
  0x8e   : > { %4558 = dma.hbm_to_vmem [thread:$0]  (!%p5481_p5), %s971_s16, 256, %s973_s0, [#allocation23], %s5247_s26, %s5247_s26, %s5248_s18  }
  0x8f   : > { %s855_s28 = sshll.u32 %s5313_s25, 4  ;;  %s5251_s7 = smov [#allocation8]   ;;  %s5547_s28 = int_to_ptr.hbm [resolvable:$true] %s855_s28 }
  0x90   : > { %s827_s22 = sshll.u32 %s5251_s7, 4  ;;  %s4965_s8 = sshra.s32 %s5535_s1, 4  ;;  %s828_s22 = int_to_ptr.vmem [resolvable:$true] %s827_s22  ;;  %s4966_s8 = int_to_ptr.hbm [resolvable:$true] %s4965_s8 }
  0x91   : > { %s4967_s2 = scalar_lea.hbm %s4966_s8, 8  ;;  %s4972_s29 = scalar_lea.hbm %s5293_s9, 8 }
  0x92   : > { %p4968_p12 = scmp.ne.s32.totalorder %s4966_s8, %s4967_s2  ;;  %p4973_p1 = scmp.lt.s32.totalorder %s4966_s8, %s5293_s9 }
  0x93   : > { %p4974_p4 = scmp.lt.s32.totalorder %s4972_s29, %s4967_s2 }
  0x94   : > { %p4970_p13 = pnand %p4968_p12, %p5493_p7 }
  0x95   : > { %p4975_p6 = por %p4974_p4, %p4973_p1 }
  0x96   : > { %p4971_p0 = pneg %p4970_p13 }
  0x98   : > { %p4976_p8 = pnand %p4975_p6, %p4971_p0 }
  0x9a   : > { %4979 = shalt.err (!%p4976_p8)
}
  0x9b   : > { %4531 = dma.hbm_to_vmem [thread:$0]  (!%p5481_p5), %s5535_s1, 128, %s828_s22, [#allocation9]  }
  0x9c   : > { %s5252_s16 = smov [#allocation12]   ;;  %s885_s7 = sshll.u32 %s5333_s14, 4  ;;  %s5558_s7 = int_to_ptr.hbm [resolvable:$true] %s885_s7 }
  0x9d   : > { %s857_s0 = sshll.u32 %s5252_s16, 4  ;;  %s4995_s8 = sshra.s32 %s5547_s28, 4  ;;  %s858_s0 = int_to_ptr.vmem [resolvable:$true] %s857_s0  ;;  %s4996_s8 = int_to_ptr.hbm [resolvable:$true] %s4995_s8 }
  0x9e   : > { %s4997_s2 = scalar_lea.hbm %s4996_s8, 8  ;;  %s5002_s29 = scalar_lea.hbm %s5313_s25, 8 }
  0x9f   : > { %p4998_p9 = scmp.ne.s32.totalorder %s4996_s8, %s4997_s2  ;;  %p5003_p12 = scmp.lt.s32.totalorder %s4996_s8, %s5313_s25 }
  0xa0   : > { %p5004_p13 = scmp.lt.s32.totalorder %s5002_s29, %s4997_s2 }
  0xa1   : > { %p5000_p10 = pnand %p4998_p9, %p5493_p7 }
  0xa2   : > { %p5005_p0 = por %p5004_p13, %p5003_p12 }
  0xa3   : > { %p5001_p11 = pneg %p5000_p10 }
  0xa5   : > { %p5006_p1 = pnand %p5005_p0, %p5001_p11 }
  0xa7   : > { %5009 = shalt.err (!%p5006_p1)
}
  0xa8   : > { %4537 = dma.hbm_to_vmem [thread:$0]  (!%p5481_p5), %s5547_s28, 128, %s858_s0, [#allocation11]  }
  0xa9   : > { %s910_s1 = sshll.u32 %s5343_s24, 4  ;;  %s5253_s22 = smov [#allocation15]   ;;  %s5569_s1 = int_to_ptr.hbm [resolvable:$true] %s910_s1 }
  0xaa   : > { %s887_s16 = sshll.u32 %s5253_s22, 4  ;;  %s5025_s8 = sshra.s32 %s5558_s7, 4  ;;  %s888_s16 = int_to_ptr.vmem [resolvable:$true] %s887_s16  ;;  %s5026_s8 = int_to_ptr.hbm [resolvable:$true] %s5025_s8 }
  0xab   : > { %s5027_s2 = scalar_lea.hbm %s5026_s8, 8  ;;  %s5032_s29 = scalar_lea.hbm %s5333_s14, 8 }
  0xac   : > { %p5028_p4 = scmp.ne.s32.totalorder %s5026_s8, %s5027_s2  ;;  %p5033_p9 = scmp.lt.s32.totalorder %s5026_s8, %s5333_s14 }
  0xad   : > { %p5034_p10 = scmp.lt.s32.totalorder %s5032_s29, %s5027_s2 }
  0xae   : > { %p5030_p6 = pnand %p5028_p4, %p5493_p7 }
  0xaf   : > { %p5035_p11 = por %p5034_p10, %p5033_p9 }
  0xb0   : > { %p5031_p8 = pneg %p5030_p6 }
  0xb2   : > { %p5036_p12 = pnand %p5035_p11, %p5031_p8 }
  0xb4   : > { %5039 = shalt.err (!%p5036_p12)
}
  0xb5   : > { %4543 = dma.hbm_to_vmem [thread:$0]  (!%p5481_p5), %s5558_s7, 128, %s888_s16, [#allocation14]  }
  0xb6   : > { %s5254_s28 = smov [#allocation18]   ;;  %s947_s22 = sshll.u32 %s5368_s27, 4  ;;  %s5580_s22 = int_to_ptr.hbm [resolvable:$true] %s947_s22 }
  0xb7   : > { %s912_s0 = sshll.u32 %s5254_s28, 4  ;;  %s5055_s8 = sshra.s32 %s5569_s1, 4  ;;  %s913_s0 = int_to_ptr.vmem [resolvable:$true] %s912_s0  ;;  %s5056_s8 = int_to_ptr.hbm [resolvable:$true] %s5055_s8 }
  0xb8   : > { %s5057_s2 = scalar_lea.hbm %s5056_s8, 16  ;;  %s5062_s29 = scalar_lea.hbm %s5343_s24, 16 }
  0xb9   : > { %p5058_p13 = scmp.ne.s32.totalorder %s5056_s8, %s5057_s2  ;;  %p5063_p4 = scmp.lt.s32.totalorder %s5056_s8, %s5343_s24 }
  0xba   : > { %p5064_p6 = scmp.lt.s32.totalorder %s5062_s29, %s5057_s2 }
  0xbb   : > { %p5060_p0 = pnand %p5058_p13, %p5493_p7 }
  0xbc   : > { %p5065_p8 = por %p5064_p6, %p5063_p4 }
  0xbd   : > { %p5061_p1 = pneg %p5060_p0 }
  0xbf   : > { %p5066_p9 = pnand %p5065_p8, %p5061_p1 }
  0xc1   : > { %5069 = shalt.err (!%p5066_p9)
}
  0xc2   : > { %4549 = dma.hbm_to_vmem [thread:$0]  (!%p5481_p5), %s5569_s1, 256, %s913_s0, [#allocation17], %s5247_s26, %s5247_s26, %s5248_s18  }
  0xc3   : > { %s984_s7 = sshll.u32 %s6527_s4, 4  ;;  %s5255_s16 = smov [#allocation21]   ;;  %s5594_s7 = int_to_ptr.hbm [resolvable:$true] %s984_s7 }
  0xc4   : > { %s949_s28 = sshll.u32 %s5255_s16, 4  ;;  %s5085_s8 = sshra.s32 %s5580_s22, 4  ;;  %s950_s28 = int_to_ptr.vmem [resolvable:$true] %s949_s28  ;;  %s5086_s8 = int_to_ptr.hbm [resolvable:$true] %s5085_s8 }
  0xc5   : > { %s5087_s2 = scalar_lea.hbm %s5086_s8, 16  ;;  %s5092_s29 = scalar_lea.hbm %s5368_s27, 16 }
  0xc6   : > { %p5088_p10 = scmp.ne.s32.totalorder %s5086_s8, %s5087_s2  ;;  %p5093_p13 = scmp.lt.s32.totalorder %s5086_s8, %s5368_s27 }
  0xc7   : > { %p5094_p0 = scmp.lt.s32.totalorder %s5092_s29, %s5087_s2 }
  0xc8   : > { %p5090_p11 = pnand %p5088_p10, %p5493_p7 }
  0xc9   : > { %p5095_p1 = por %p5094_p0, %p5093_p13 }
  0xca   : > { %p5091_p12 = pneg %p5090_p11 }
  0xcc   : > { %p5096_p4 = pnand %p5095_p1, %p5091_p12 }
  0xce   : > { %5099 = shalt.err (!%p5096_p4)
}
  0xcf   : > { %4555 = dma.hbm_to_vmem [thread:$0]  (!%p5481_p5), %s5580_s22, 256, %s950_s28, [#allocation20], %s5247_s26, %s5247_s26, %s5248_s18  }
  0xd0   : > { %s5256_s1 = smov [#allocation24]   ;;  %s998_s16 = sshll.u32 %s5398_s12, 4  ;;  %s999_s16 = int_to_ptr.hbm [resolvable:$true] %s998_s16 }
  0xd1   : > { %s986_s0 = sshll.u32 %s5256_s1, 4  ;;  %s5115_s8 = sshra.s32 %s5594_s7, 4  ;;  %s987_s0 = int_to_ptr.vmem [resolvable:$true] %s986_s0  ;;  %s5116_s8 = int_to_ptr.hbm [resolvable:$true] %s5115_s8 }
  0xd2   : > { %s5117_s2 = scalar_lea.hbm %s5116_s8, 16  ;;  %s5122_s29 = scalar_lea.hbm %s6527_s4, 16 }
  0xd3   : > { %p5118_p6 = scmp.ne.s32.totalorder %s5116_s8, %s5117_s2  ;;  %p5123_p10 = scmp.lt.s32.totalorder %s5116_s8, %s6527_s4 }
  0xd4   : > { %p5124_p11 = scmp.lt.s32.totalorder %s5122_s29, %s5117_s2 }
  0xd5   : > { %p5120_p8 = pnand %p5118_p6, %p5493_p7 }
  0xd6   : > { %p5125_p12 = por %p5124_p11, %p5123_p10 }
  0xd7   : > { %p5121_p9 = pneg %p5120_p8 }
  0xd9   : > { %p5126_p13 = pnand %p5125_p12, %p5121_p9 }
  0xdb   : > { %5129 = shalt.err (!%p5126_p13)
}
  0xdc   : > { %4561 = dma.hbm_to_vmem [thread:$0]  (!%p5481_p5), %s5594_s7, 256, %s987_s0, [#allocation23], %s5247_s26, %s5247_s26, %s5248_s18  }
  0xdd   : > { %s5257_s22 = smov [#allocation25]   ;;  %s5145_s1 = sshra.s32 %s999_s16, 4  ;;  %s5146_s1 = int_to_ptr.hbm [resolvable:$true] %s5145_s1 }
  0xde   : > { %s1000_s28 = sshll.u32 %s5257_s22, 4  ;;  %s5147_s8 = scalar_lea.hbm %s5146_s1, 16  ;;  %s1001_s28 = int_to_ptr.vmem [resolvable:$true] %s1000_s28 }
  0xdf   : > { %p5148_p0 = scmp.ne.s32.totalorder %s5146_s1, %s5147_s8  ;;  %s5152_s2 = scalar_lea.hbm %s5398_s12, 16 }
  0xe0   : > { %p5153_p6 = scmp.lt.s32.totalorder %s5146_s1, %s5398_s12  ;;  %p5154_p8 = scmp.lt.s32.totalorder %s5152_s2, %s5147_s8 }
  0xe1   : > { %p5150_p1 = pnand %p5148_p0, %p5493_p7 }
  0xe2   : > { %p5155_p9 = por %p5154_p8, %p5153_p6 }
  0xe3   : > { %p5151_p4 = pneg %p5150_p1 }
  0xe5   : > { %p5156_p10 = pnand %p5155_p9, %p5151_p4 }
  0xe7   : > { %5159 = shalt.err (!%p5156_p10)
}
  0xe8   : > { %4564 = dma.hbm_to_vmem [thread:$0]  (!%p5481_p5), %s999_s16, 256, %s1001_s28, [#allocation26], %s5247_s26, %s5247_s26, %s5248_s18  }
  0xe9   : > { %1054 = sbr.rel (%p5469_p3) target bundleno = 5336 (0x14d8), region = 152 }
  0xee   : > { %5180 = dma.done.wait (%p4565_p2), [#allocation9], 128  }
  0xef   : > { %5182 = vsyncadd (%p4565_p2), [#allocation9], 4294967168 }
  0xf0   : > { %5184 = dma.done.wait (%p4565_p2), [#allocation11], 256  }
  0xf1   : > { %5186 = vsyncadd (%p4565_p2), [#allocation11], 4294967040 }
  0xf2   : > { %5188 = dma.done.wait (%p4565_p2), [#allocation14], 256  }
  0xf3   : > { %5190 = vsyncadd (%p4565_p2), [#allocation14], 4294967040 }
  0xf4   : > { %5192 = dma.done.wait (%p4565_p2), [#allocation17], 512  }
  0xf5   : > { %5194 = vsyncadd (%p4565_p2), [#allocation17], 4294966784 }
  0xf6   : > { %5196 = dma.done.wait (%p4565_p2), [#allocation20], 4352  }
  0xf7   : > { %5198 = vsyncadd (%p4565_p2), [#allocation20], 4294962944 }
  0xf8   : > { %5200 = dma.done.wait (%p4565_p2), [#allocation23], 512  }
  0xf9   : > { %5202 = vsyncadd (%p4565_p2), [#allocation23], 4294966784 }
  0xfa   : > { %5204 = dma.done.wait (%p4565_p2), [#allocation26], 256  }
  0xfb   : > { %5206 = vsyncadd (%p4565_p2), [#allocation26], 4294967040  ;;  %s6533_s5 = sld [smem:[#allocation34_spill]]  ;;  %v5258_v0 = vmov 0.0   ;;  %s5259_s11 = smov 111   ;;  %vm6483_vm1 = vcmask 130048   ;;  %v1220_v6 = vlaneseq }
  0xfc   : > { %1420 = vrot.lane.b32.xlu1 %v5258_v0, %s5259_s11  ;;  %p1193_p3 = scmp.lt.s32.totalorder %s5464_s10, 1  ;;  %s5260_s23 = smov 112   ;;  %1204 = vst [vmem:[#allocation4] sm:$0xff] %v5258_v0  ;;  %vm1422_vm2 = vcmask 908288   ;;  %vm1403_vm5 = vcmask 916480   ;;  %vm1382_vm6 = vcmask 924672  }
  0xfd   : > { %1401 = vrot.lane.b32.xlu2 %v5258_v0, %s5260_s23  ;;  %s5261_s18 = smov 113   ;;  %s6490_s7 = smov 127   ;;  %v5715_v9 = vand.u32 127, %v1220_v6  ;;  %vm1361_vm9 = vcmask 1039360   ;;  %vm6485_vm10 = vcmask 7168   ;;  %vm6484_vm11 = vcmask 121856  }
  0xfe   : > { %s6728_s10 = smov (!%p1193_p3, %s5464_s10), 1  ;;  %s6492_s0 = smov 1   ;;  %vm6482_vm12 = vcmask 138240   ;;  %v1253_v52 = vld [vmem:[#allocation8] sm:$0xff]  ;;  %vm6481_vm13 = vcmask 588800   ;;  %v5267_v61 = vmov 0  }
  0xff   : > { %s4443_s15 = sshll.u32 %s6728_s10, 4  ;;  %s5264_s16 = smov 15   ;;  %v1222_v10 = vadd.s32 128, %v5715_v9  ;;  %v1227_v14 = vand.u32 15, %v5715_v9  ;;  %v1493_v60 = vld [vmem:[%s5298_s13] sm:$0xff]  ;;  %4676 = vset.pattern.permute.xlu0 %v5267_v61  ;;  %4687 = vset.pattern.permute.xlu2 %v5267_v61 }
 0x100   : > { %s5265_s29 = smov 16   ;;  %s5266_s22 = smov 17   ;;  %4743 = vset.pattern.permute.xlu1 %v5267_v61 }
 0x101   : > { %s1197_s26 = scalar_lea.vmem %s6533_s5, %s4443_s15  ;;  %v1234_v15 = vand.u32 15, %v1222_v10  ;;  %vm5719_vm3 = vcmp.le.s32.totalorder %v1227_v14, 14  ;;  %vm5735_vm7 = vcmp.ge.s32.totalorder %v1227_v14, 1  ;;  %s6542_s28 = sld [smem:[#allocation35_spill]] }
 0x102   : > { %v5669_v1 = vld [vmem:[%s1197_s26] sm:$0xff]  ;;  %v5671_v2 = vld [vmem:[%s1197_s26 + $0x8] sm:$0xff]  ;;  %s6543_s1 = sld [smem:[#allocation36_spill]]  ;;  %s5269_s15 = smov 121  }
 0x103   : > { %1416 = vrot.lane.b32.xlu0 %v5669_v1, %s5259_s11  ;;  %v4666_v3 = vpack.i.bf16 %v5671_v2, %v5669_v1  ;;  %v4671_v4 = vpack.i.bf16 %v5669_v1, %v5258_v0  ;;  %vm5723_vm4 = vcmp.le.s32.totalorder %v1234_v15, 14  ;;  %vm5739_vm8 = vcmp.ge.s32.totalorder %v1234_v15, 1  ;;  %s6546_s8 = sld [smem:[#allocation37_spill]]  ;;  %s5270_s26 = smov 120  }
 0x104   : > { %s6569_s2 = sld [smem:[#allocation39_spill]]  ;;  %s6666_s4 = smov 1  }
 0x105   : > { %4667 = vrot.lane.b32.xlu1 %v4666_v3, %s5260_s23  ;;  %1376 = vrot.lane.b32.xlu2 %v5669_v1, %s5261_s18  ;;  %s6703_s5 = smov 123  }
 0x107   : > { %v1494_v62 = vld [vmem:[%s6542_s28] sm:$0xff]  ;;  %s6603_s28 = sld [smem:[#allocation42_spill]] }
 0x10b   : > { %1418 = vrot.lane.b32.xlu0 %v5671_v2, %s5259_s11 }
 0x10d   : > { %1380 = vrot.lane.b32.xlu1 %v5258_v0, %s5261_s18  ;;  %1355 = vrot.lane.b32.xlu2 %v5669_v1, %s6490_s7 }
 0x113   : > { %1378 = vrot.lane.b32.xlu0 %v5671_v2, %s5261_s18 }
 0x115   : > { %1359 = vrot.lane.b32.xlu1 %v5258_v0, %s6490_s7  ;;  %1330 = vrot.lane.b32.xlu2 %v5258_v0, %s6492_s0 }
 0x11b   : > { %1357 = vrot.lane.b32.xlu0 %v5671_v2, %s6490_s7 }
 0x11d   : > { %1334 = vrot.lane.b32.xlu1 %v5671_v2, %s6492_s0  ;;  %1309 = vrot.lane.b32.xlu2 %v5258_v0, %s5264_s16 }
 0x123   : > { %1332 = vrot.lane.b32.xlu0 %v5669_v1, %s6492_s0 }
 0x125   : > { %1313 = vrot.lane.b32.xlu1 %v5671_v2, %s5264_s16  ;;  %4672 = vrot.lane.b32.xlu2 %v4671_v4, %s5265_s29 }
 0x12b   : > { %1311 = vrot.lane.b32.xlu0 %v5669_v1, %s5264_s16 }
 0x12d   : > { %1266 = vrot.lane.b32.xlu1 %v5258_v0, %s5266_s22  ;;  %1268 = vrot.lane.b32.xlu2 %v5669_v1, %s5266_s22 }
 0x133   : > { %1291 = vrot.lane.b32.xlu0 %v5671_v2, %s5265_s29 }
 0x13b   : > { %1270 = vrot.lane.b32.xlu0 %v5671_v2, %s5266_s22 }
 0x143   : > { %1540 = vperm.xlu0 %4676, %v1493_v60  }
 0x14b   : > { %1547 = vperm.xlu0 %4676, %v1494_v62  }
 0x153   : > { %1726 = vrot.lane.b32.xlu0 %v5258_v0, %s5260_s23 }
 0x157   : > { %v1402_v5 = vpop.permute.xlu2 %1401 }
 0x15f   : > { %v1377_v7 = vpop.permute.xlu2 %1376 }
 0x167   : > { %v1356_v13 = vpop.permute.xlu2 %1355 }
 0x16e   : > { %v1421_v8 = vpop.permute.xlu1 %1420 }
 0x16f   : > { %v1331_v26 = vpop.permute.xlu2 %1330 }
 0x175   : > { %v1417_v11 = vpop.permute.xlu0 %1416 }
 0x177   : > { %v4668_v12 = vpop.permute.xlu1 %4667  ;;  %v1310_v33 = vpop.permute.xlu2 %1309 }
 0x178   : > { %v4669_v16 = vunpack.i.l.bf16 %v4668_v12  ;;  %v4670_v17 = vunpack.i.h.bf16 %v4668_v12 }
 0x17a   : > { %v1404_v23 = vsel %vm1403_vm5, %v4669_v16, %v4670_v17  ;;  %v1405_v25 = vsel %vm1403_vm5, %v4670_v17, %v1402_v5 }
 0x17d   : > { %v1419_v20 = vpop.permute.xlu0 %1418 }
 0x17e   : > { %v1423_v21 = vsel %vm1422_vm2, %v1417_v11, %v1419_v20  ;;  %v1424_v22 = vsel %vm1422_vm2, %v1419_v20, %v1421_v8 }
 0x17f   : > { %4444 = vmatpush.msk.msra.mxu0 %vm5719_vm3, %v1423_v21  ;;  %4450 = vmatpush.msk.msra.mxu1 %vm5723_vm4, %v1424_v22  ;;  %v1381_v24 = vpop.permute.xlu1 %1380  ;;  %v4673_v39 = vpop.permute.xlu2 %4672 }
 0x180   : > { %v4674_v43 = vunpack.i.l.bf16 %v4673_v39  ;;  %v4675_v44 = vunpack.i.h.bf16 %v4673_v39 }
 0x181   : > { %1481 = vmatpush.msra.mxu1 %v1405_v25  ;;  %1461 = vmatpush.msra.mxu0 %v1404_v23 }
 0x182   : > { %v1293_v49 = vsel %vm6483_vm1, %v4674_v43, %v4675_v44 }
 0x185   : > { %v1379_v29 = vpop.permute.xlu0 %1378 }
 0x186   : > { %v1383_v30 = vsel %vm1382_vm6, %v1377_v7, %v1379_v29  ;;  %v1384_v31 = vsel %vm1382_vm6, %v1379_v29, %v1381_v24 }
 0x187   : > { %4445 = vmatpush.msk.msra.mxu0 %vm5735_vm7, %v1383_v30  ;;  %4451 = vmatpush.msk.msra.mxu1 %vm5739_vm8, %v1384_v31  ;;  %v1360_v32 = vpop.permute.xlu1 %1359  ;;  %v1269_v46 = vpop.permute.xlu2 %1268 }
 0x18d   : > { %v1358_v34 = vpop.permute.xlu0 %1357 }
 0x18e   : > { %v1362_v35 = vsel %vm1361_vm9, %v1356_v13, %v1358_v34  ;;  %v1363_v36 = vsel %vm1361_vm9, %v1358_v34, %v1360_v32 }
 0x18f   : > { %4446 = vmatpush.msk.msra.mxu0 %vm5719_vm3, %v1362_v35  ;;  %4452 = vmatpush.msk.msra.mxu1 %vm5723_vm4, %v1363_v36  ;;  %v1335_v37 = vpop.permute.xlu1 %1334 }
 0x191   : > { %1464 = vmatpush.msra.mxu0 %v5669_v1  ;;  %1484 = vmatpush.msra.mxu1 %v5671_v2 }
 0x195   : > { %v1333_v38 = vpop.permute.xlu0 %1332 }
 0x196   : > { %v1337_v40 = vsel %vm6485_vm10, %v1331_v26, %v1333_v38  ;;  %v1338_v41 = vsel %vm6485_vm10, %v1333_v38, %v1335_v37 }
 0x197   : > { %4447 = vmatpush.msk.msra.mxu0 %vm5735_vm7, %v1337_v40  ;;  %4453 = vmatpush.msk.msra.mxu1 %vm5739_vm8, %v1338_v41  ;;  %v1314_v42 = vpop.permute.xlu1 %1313 }
 0x19d   : > { %v1312_v45 = vpop.permute.xlu0 %1311 }
 0x19e   : > { %v1316_v47 = vsel %vm6484_vm11, %v1310_v33, %v1312_v45  ;;  %v1317_v48 = vsel %vm6484_vm11, %v1312_v45, %v1314_v42 }
 0x19f   : > { %4448 = vmatpush.msk.msra.mxu0 %vm5719_vm3, %v1316_v47  ;;  %4454 = vmatpush.msk.msra.mxu1 %vm5723_vm4, %v1317_v48  ;;  %v1267_v50 = vpop.permute.xlu1 %1266 }
 0x1a0   : > { %v1273_v51 = vsel %vm6482_vm12, %v1267_v50, %v1269_v46 }
 0x1a1   : > { %1467 = vmatpush.msra.mxu0 %v1293_v49 }
 0x1a3   : > { %4449 = vmatpush.msk.msra.mxu0 %vm5735_vm7, %v1273_v51 }
 0x1a4   : > { %4408 = vmatmul.msk.f32.vlgmr.msra.gmra.mxu0 %vm6481_vm13, %v1253_v52 }
 0x1a5   : > { %v1292_v53 = vpop.permute.xlu0 %1291 }
 0x1a6   : > { %v1294_v54 = vsel %vm6483_vm1, %v4675_v44, %v1292_v53 }
 0x1a7   : > { %1487 = vmatpush.msra.mxu1 %v1294_v54 }
 0x1ad   : > { %v1271_v55 = vpop.permute.xlu0 %1270 }
 0x1ae   : > { %v1274_v56 = vsel %vm6482_vm12, %v1269_v46, %v1271_v55 }
 0x1af   : > { %4455 = vmatpush.msk.msra.mxu1 %vm5739_vm8, %v1274_v56 }
 0x1b0   : > { %4409 = vmatmul.msk.f32.vlgmr.msra.gmra.mxu1 %vm6481_vm13, %v1253_v52 }
 0x1b5   : > { %v1541_v31 = vpop.permute.xlu0 %1540 }
 0x1bd   : > { %v1548_v39 = vpop.permute.xlu0 %1547 }
 0x221   : > { %v5779_v57 = vpop.f32.mrf.mxu0 }
 0x22d   : > { %v5781_v58 = vpop.f32.mrf.mxu1 }
 0x22e   : > { %v1501_v59 = vadd.f32 %v5781_v58, %v5779_v57 }
 0x230   : > { %1502 = vadd.xlane.f32.xlu1 %v1501_v59 }
 0x249   : > { %1658 = vrot.lane.b32.xlu1 %v5258_v0, %s6492_s0 }
 0x251   : > { %1638 = vrot.lane.b32.xlu1 %v5258_v0, %s5264_s16 }
 0x2a3   : > { %v1503_v63 = vpop.xlane.xlu1 %1502 }
 0x2a4   : > { %v1504_v1 = vrot.slane %v1503_v63, 4 }
 0x2a6   : > { %v1505_v2 = vadd.f32 %v1504_v1, %v1503_v63 }
 0x2a8   : > { %v1506_v3 = vrot.slane %v1505_v2, 2 }
 0x2aa   : > { %v1507_v4 = vadd.f32 %v1506_v3, %v1505_v2 }
 0x2ac   : > { %v1508_v5 = vrot.slane %v1507_v4, 1 }
 0x2ae   : > { %v1509_v6 = vadd.f32 %v1508_v5, %v1507_v4 }
 0x2b0   : > { %v1510_v7 = vmul.f32 0.00048828125, %v1509_v6 }
 0x2b2   : > { %v1511_v8 = vsub.f32 %v5779_v57, %v1510_v7  ;;  %v1512_v10 = vsub.f32 %v5781_v58, %v1510_v7 }
 0x2b4   : > { %v1513_v11 = vmul.f32 %v1511_v8, %v1511_v8  ;;  %v1514_v12 = vmul.f32 %v1512_v10, %v1512_v10 }
 0x2b6   : > { %v1515_v13 = vadd.f32 %v1514_v12, %v1513_v11 }
 0x2b8   : > { %1516 = vadd.xlane.f32.xlu2 %v1515_v13  ;;  %v1727_v13 = vpop.permute.xlu0 %1726 }
 0x2bb   : > { %v1659_v12 = vpop.permute.xlu1 %1658 }
 0x2d0   : > { %1744 = vrot.lane.b32.xlu2 %v5258_v0, %s5259_s11 }
 0x2d8   : > { %1706 = vrot.lane.b32.xlu2 %v5258_v0, %s5261_s18 }
 0x2e0   : > { %1686 = vrot.lane.b32.xlu2 %v5258_v0, %s6490_s7 }
 0x32b   : > { %v1517_v14 = vpop.xlane.xlu2 %1516 }
 0x32c   : > { %v1518_v15 = vrot.slane %v1517_v14, 4 }
 0x32e   : > { %v1519_v16 = vadd.f32 %v1518_v15, %v1517_v14  ;;  %v1639_v14 = vpop.permute.xlu1 %1638 }
 0x330   : > { %v1520_v17 = vrot.slane %v1519_v16, 2 }
 0x332   : > { %v1521_v20 = vadd.f32 %v1520_v17, %v1519_v16 }
 0x333   : > { %v1745_v16 = vpop.permute.xlu2 %1744 }
 0x334   : > { %v1522_v21 = vrot.slane %v1521_v20, 1 }
 0x336   : > { %v1523_v22 = vadd.f32 %v1522_v21, %v1521_v20 }
 0x338   : > { %v1524_v23 = vmul.f32 0.00048828125, %v1523_v22 }
 0x33a   : > { %v1525_v24 = vadd.f32 1e-05, %v1524_v23 }
 0x33c   : > { %4744 = vrsqrt.f32 %v1525_v24  ;;  %vm1532_vm15 = vweird.f32 %v1525_v24 }
 0x342   : > { %v4745_v25 = vpop.eup %4744 }
 0x343   : > { %v1527_v26 = vmul.f32 %v4745_v25, %v1525_v24  ;;  %vm1533_vm14 = vweird.f32 %v4745_v25 }
 0x344   : > { %vm1534_vm0 = vmor %vm1532_vm15, %vm1533_vm14 }
 0x345   : > { %v1528_v29 = vmul.f32 %v4745_v25, %v1527_v26 }
 0x347   : > { %v1529_v30 = vmul.f32 0.5, %v1528_v29  ;;  %v1707_v29 = vpop.permute.xlu2 %1706 }
 0x349   : > { %v1530_v32 = vsub.f32 1.5, %v1529_v30 }
 0x34b   : > { %v1531_v33 = vmul.f32 %v4745_v25, %v1530_v32 }
 0x34d   : > { %v1535_v34 = vsel %vm1534_vm0, %v4745_v25, %v1531_v33 }
 0x34e   : > { %v1536_v35 = vmul.f32 %v1535_v34, %v1511_v8  ;;  %v1537_v36 = vmul.f32 %v1535_v34, %v1512_v10 }
 0x350   : > { %v1543_v37 = vmul.f32 %v1541_v31, %v1536_v35  ;;  %v1544_v38 = vmul.f32 %v1541_v31, %v1537_v36  ;;  %v1687_v31 = vpop.permute.xlu2 %1686 }
 0x352   : > { %v1550_v40 = vadd.f32 %v1548_v39, %v1543_v37  ;;  %v1551_v41 = vadd.f32 %v1548_v39, %v1544_v38 }
 0x354   : > { %v4410_v42 = vmul.f32 -1.442695, %v1550_v40  ;;  %v4411_v43 = vmul.f32 -1.442695, %v1551_v41 }
 0x356   : > { %4746 = vpow2.f32 %v4410_v42 }
 0x357   : > { %4748 = vpow2.f32 %v4411_v43 }
 0x35c   : > { %v4747_v44 = vpop.eup %4746 }
 0x35d   : > { %v4749_v45 = vpop.eup %4748  ;;  %v1558_v46 = vadd.f32 1.0, %v4747_v44 }
 0x35e   : > { %v1559_v47 = vadd.f32 1.0, %v4749_v45 }
 0x35f   : > { %4750 = vrcp.f32 %v1558_v46  ;;  %v1571_v53 = vand.u32 2147483648, %v1558_v46  ;;  %v1569_v56 = vand.u32 2147483647, %v1558_v46  ;;  %vm1565_vm15 = vweird.f32 %v1558_v46 }
 0x360   : > { %4752 = vrcp.f32 %v1559_v47  ;;  %v1586_v59 = vand.u32 2147483648, %v1559_v47  ;;  %v1584_v61 = vand.u32 2147483647, %v1559_v47  ;;  %vm1580_vm12 = vweird.f32 %v1559_v47 }
 0x361   : > { %v1572_v63 = vor.u32 1.1754944e-38, %v1571_v53  ;;  %vm1570_vm1 = vcmp.eq.f32.partialorder %v1569_v56, 8.507059e+37  ;;  %v1495_v56 = vld [vmem:[#allocation10] sm:$0xff] }
 0x362   : > { %v1587_v3 = vor.u32 1.1754944e-38, %v1586_v59  ;;  %vm1585_vm10 = vcmp.eq.f32.partialorder %v1584_v61, 8.507059e+37 }
 0x365   : > { %v4751_v48 = vpop.eup %4750 }
 0x366   : > { %v4753_v49 = vpop.eup %4752  ;;  %v1561_v50 = vmul.f32 %v4751_v48, %v1558_v46  ;;  %vm1566_vm0 = vweird.f32 %v4751_v48  ;;  %v1497_v46 = vld [vmem:[%s6543_s1] sm:$0xff]  ;;  %s6606_s1 = sld [smem:[#allocation43_spill]] }
 0x367   : > { %v1576_v51 = vmul.f32 %v4753_v49, %v1559_v47  ;;  %vm1581_vm14 = vweird.f32 %v4753_v49  ;;  %vm1567_vm13 = vmor %vm1565_vm15, %vm1566_vm0  ;;  %vm6550_vm0 = vcmask 138240  }
 0x368   : > { %v1562_v52 = vsub.f32 1.0, %v1561_v50  ;;  %vm1582_vm11 = vmor %vm1580_vm12, %vm1581_vm14  ;;  %vm6551_vm14 = vcmask 588800  }
 0x369   : > { %v1577_v54 = vsub.f32 1.0, %v1576_v51 }
 0x36a   : > { %v1563_v55 = vmul.f32 %v4751_v48, %v1562_v52 }
 0x36b   : > { %v1578_v60 = vmul.f32 %v4753_v49, %v1577_v54  ;;  %v1498_v54 = vld [vmem:[%s6546_s8] sm:$0xff]  ;;  %s6626_s8 = sld [smem:[#allocation44_spill]] }
 0x36c   : > { %v1564_v62 = vadd.f32 %v4751_v48, %v1563_v55 }
 0x36d   : > { %v1579_v1 = vadd.f32 %v4753_v49, %v1578_v60 }
 0x36e   : > { %v1568_v2 = vsel %vm1567_vm13, %v4751_v48, %v1564_v62  ;;  %vm6549_vm13 = vcmask 130048  }
 0x36f   : > { %v1573_v4 = vsel %vm1570_vm1, %v1572_v63, %v1568_v2  ;;  %v1583_v5 = vsel %vm1582_vm11, %v4753_v49, %v1579_v1  ;;  %vm6544_vm1 = vcmask 7168   ;;  %vm6547_vm11 = vcmask 121856   ;;  %vm6552_vm15 = vmmov %vm6549_vm13 }
 0x370   : > { %v1588_v6 = vsel %vm1585_vm10, %v1587_v3, %v1583_v5  ;;  %v1590_v7 = vmul.f32 %v1573_v4, %v1550_v40  ;;  %v1496_v40 = vld [vmem:[#allocation12] sm:$0xff]  ;;  %vm6545_vm10 = vmmov %vm6544_vm1 }
 0x371   : > { %v1591_v8 = vmul.f32 %v1588_v6, %v1551_v41  ;;  %vm6548_vm12 = vmmov %vm6547_vm11 }
 0x372   : > { %1740 = vrot.lane.b32.xlu0 %v1590_v7, %s5259_s11  ;;  %v4682_v11 = vpack.i.bf16 %v1590_v7, %v5258_v0 }
 0x373   : > { %1662 = vrot.lane.b32.xlu2 %v1591_v8, %s6492_s0  ;;  %v4677_v10 = vpack.i.bf16 %v1591_v8, %v1590_v7 }
 0x375   : > { %4678 = vrot.lane.b32.xlu1 %v4677_v10, %s5260_s23 }
 0x37a   : > { %1742 = vrot.lane.b32.xlu0 %v1591_v8, %s5259_s11 }
 0x37b   : > { %1642 = vrot.lane.b32.xlu2 %v1591_v8, %s5264_s16 }
 0x37d   : > { %1682 = vrot.lane.b32.xlu1 %v1590_v7, %s6490_s7 }
 0x382   : > { %1702 = vrot.lane.b32.xlu0 %v1590_v7, %s5261_s18 }
 0x383   : > { %1600 = vrot.lane.b32.xlu2 %v5258_v0, %s5266_s22 }
 0x385   : > { %4683 = vrot.lane.b32.xlu1 %v4682_v11, %s5265_s29 }
 0x38a   : > { %1704 = vrot.lane.b32.xlu0 %v1591_v8, %s5261_s18 }
 0x38b   : > { %1774 = vperm.xlu2 %4687, %v1496_v40  }
 0x38d   : > { %1602 = vrot.lane.b32.xlu1 %v1590_v7, %s5266_s22 }
 0x392   : > { %1684 = vrot.lane.b32.xlu0 %v1591_v8, %s6490_s7 }
 0x393   : > { %1859 = vperm.xlu2 %4687, %v1497_v46  }
 0x39a   : > { %1660 = vrot.lane.b32.xlu0 %v1590_v7, %s6492_s0 }
 0x39b   : > { %1866 = vperm.xlu2 %4687, %v1498_v54  }
 0x3a2   : > { %1640 = vrot.lane.b32.xlu0 %v1590_v7, %s5264_s16 }
 0x3a3   : > { %2063 = vrot.lane.b32.xlu2 %v5258_v0, %s5259_s11 }
 0x3aa   : > { %1624 = vrot.lane.b32.xlu0 %v1591_v8, %s5265_s29 }
 0x3ab   : > { %2045 = vrot.lane.b32.xlu2 %v5258_v0, %s5260_s23 }
 0x3b2   : > { %1604 = vrot.lane.b32.xlu0 %v1591_v8, %s5266_s22 }
 0x3b3   : > { %2025 = vrot.lane.b32.xlu2 %v5258_v0, %s5261_s18 }
 0x3bb   : > { %2005 = vrot.lane.b32.xlu2 %v5258_v0, %s6490_s7 }
 0x3cd   : > { %v1663_v36 = vpop.permute.xlu2 %1662 }
 0x3d5   : > { %v1643_v45 = vpop.permute.xlu2 %1642 }
 0x3dd   : > { %v1601_v52 = vpop.permute.xlu2 %1600 }
 0x3e4   : > { %v1741_v15 = vpop.permute.xlu0 %1740 }
 0x3e5   : > { %v1775_v2 = vpop.permute.xlu2 %1774 }
 0x3e7   : > { %v4679_v17 = vpop.permute.xlu1 %4678 }
 0x3e8   : > { %v4681_v20 = vunpack.i.h.bf16 %v4679_v17  ;;  %v4680_v21 = vunpack.i.l.bf16 %v4679_v17 }
 0x3ea   : > { %v1728_v25 = vsel %vm1403_vm5, %v4680_v21, %v4681_v20  ;;  %v1729_v26 = vsel %vm1403_vm5, %v4681_v20, %v1727_v13 }
 0x3ec   : > { %v1743_v22 = vpop.permute.xlu0 %1742 }
 0x3ed   : > { %v1746_v23 = vsel %vm1422_vm2, %v1741_v15, %v1743_v22  ;;  %v1747_v24 = vsel %vm1422_vm2, %v1743_v22, %v1745_v16 }
 0x3ee   : > { %4456 = vmatpush.msk.msra.mxu2 %vm5719_vm3, %v1746_v23  ;;  %4462 = vmatpush.msk.msra.mxu3 %vm5723_vm4, %v1747_v24 }
 0x3ef   : > { %v1683_v35 = vpop.permute.xlu1 %1682 }
 0x3f0   : > { %1788 = vmatpush.msra.mxu2 %v1728_v25  ;;  %1808 = vmatpush.msra.mxu3 %v1729_v26 }
 0x3f4   : > { %v1703_v30 = vpop.permute.xlu0 %1702 }
 0x3f7   : > { %v4684_v41 = vpop.permute.xlu1 %4683 }
 0x3f8   : > { %v4686_v47 = vunpack.i.h.bf16 %v4684_v41  ;;  %v4685_v48 = vunpack.i.l.bf16 %v4684_v41 }
 0x3fa   : > { %v1626_v55 = vsel %vm6549_vm13, %v4685_v48, %v4686_v47 }
 0x3fc   : > { %v1705_v32 = vpop.permute.xlu0 %1704 }
 0x3fd   : > { %v1708_v33 = vsel %vm1382_vm6, %v1703_v30, %v1705_v32  ;;  %v1709_v34 = vsel %vm1382_vm6, %v1705_v32, %v1707_v29 }
 0x3fe   : > { %4457 = vmatpush.msk.msra.mxu2 %vm5735_vm7, %v1708_v33  ;;  %4463 = vmatpush.msk.msra.mxu3 %vm5739_vm8, %v1709_v34 }
 0x3ff   : > { %v1603_v53 = vpop.permute.xlu1 %1602 }
 0x400   : > { %v1606_v59 = vsel %vm6550_vm0, %v1601_v52, %v1603_v53 }
 0x404   : > { %v1685_v37 = vpop.permute.xlu0 %1684 }
 0x405   : > { %v1688_v38 = vsel %vm1361_vm9, %v1683_v35, %v1685_v37  ;;  %v1689_v39 = vsel %vm1361_vm9, %v1685_v37, %v1687_v31  ;;  %v1860_v37 = vpop.permute.xlu2 %1859 }
 0x406   : > { %4458 = vmatpush.msk.msra.mxu2 %vm5719_vm3, %v1688_v38  ;;  %4464 = vmatpush.msk.msra.mxu3 %vm5723_vm4, %v1689_v39 }
 0x408   : > { %1791 = vmatpush.msra.mxu2 %v1590_v7  ;;  %1811 = vmatpush.msra.mxu3 %v1591_v8 }
 0x40c   : > { %v1661_v42 = vpop.permute.xlu0 %1660 }
 0x40d   : > { %v1664_v43 = vsel %vm6544_vm1, %v1659_v12, %v1661_v42  ;;  %v1665_v44 = vsel %vm6545_vm10, %v1661_v42, %v1663_v36  ;;  %vm6553_vm1 = vmmov %vm6550_vm0  ;;  %v1867_v46 = vpop.permute.xlu2 %1866 }
 0x40e   : > { %4459 = vmatpush.msk.msra.mxu2 %vm5735_vm7, %v1664_v43  ;;  %4465 = vmatpush.msk.msra.mxu3 %vm5739_vm8, %v1665_v44  ;;  %vm6554_vm10 = vmmov %vm6551_vm14 }
 0x414   : > { %v1641_v49 = vpop.permute.xlu0 %1640 }
 0x415   : > { %v1644_v50 = vsel %vm6547_vm11, %v1639_v14, %v1641_v49  ;;  %v1645_v51 = vsel %vm6548_vm12, %v1641_v49, %v1643_v45 }
 0x416   : > { %4460 = vmatpush.msk.msra.mxu2 %vm5719_vm3, %v1644_v50  ;;  %4466 = vmatpush.msk.msra.mxu3 %vm5723_vm4, %v1645_v51 }
 0x418   : > { %1794 = vmatpush.msra.mxu2 %v1626_v55 }
 0x41a   : > { %4461 = vmatpush.msk.msra.mxu2 %vm5735_vm7, %v1606_v59 }
 0x41b   : > { %4412 = vmatmul.msk.f32.vlgmr.msra.gmra.mxu2 %vm6551_vm14, %v1495_v56 }
 0x41c   : > { %v1625_v60 = vpop.permute.xlu0 %1624 }
 0x41d   : > { %v1627_v61 = vsel %vm6552_vm15, %v4686_v47, %v1625_v60 }
 0x41e   : > { %1814 = vmatpush.msra.mxu3 %v1627_v61 }
 0x424   : > { %v1605_v62 = vpop.permute.xlu0 %1604 }
 0x425   : > { %v1607_v63 = vsel %vm6553_vm1, %v1603_v53, %v1605_v62 }
 0x426   : > { %4467 = vmatpush.msk.msra.mxu3 %vm5739_vm8, %v1607_v63 }
 0x427   : > { %4413 = vmatmul.msk.f32.vlgmr.msra.gmra.mxu3 %vm6554_vm10, %v1495_v56 }
 0x49e   : > { %v1797_v1 = vpop.f32.mrf.mxu2 }
 0x49f   : > { %v1798_v3 = vadd.f32 %v1797_v1, %v1775_v2 }
 0x4aa   : > { %v1817_v4 = vpop.f32.mrf.mxu3 }
 0x4ab   : > { %v1818_v5 = vadd.f32 %v1817_v4, %v1775_v2 }
 0x4ad   : > { %v1820_v6 = vadd.f32 %v1818_v5, %v1798_v3 }
 0x4af   : > { %1821 = vadd.xlane.f32.xlu1 %v1820_v6 }
 0x522   : > { %v1822_v7 = vpop.xlane.xlu1 %1821 }
 0x523   : > { %v1823_v8 = vrot.slane %v1822_v7, 4 }
 0x525   : > { %v1824_v10 = vadd.f32 %v1823_v8, %v1822_v7 }
 0x527   : > { %v1825_v11 = vrot.slane %v1824_v10, 2 }
 0x529   : > { %v1826_v12 = vadd.f32 %v1825_v11, %v1824_v10 }
 0x52b   : > { %v1827_v13 = vrot.slane %v1826_v12, 1 }
 0x52d   : > { %v1828_v14 = vadd.f32 %v1827_v13, %v1826_v12 }
 0x52f   : > { %v1829_v15 = vmul.f32 0.00048828125, %v1828_v14 }
 0x531   : > { %v1830_v16 = vsub.f32 %v1798_v3, %v1829_v15  ;;  %v1831_v17 = vsub.f32 %v1818_v5, %v1829_v15 }
 0x533   : > { %v1832_v20 = vmul.f32 %v1830_v16, %v1830_v16  ;;  %v1833_v21 = vmul.f32 %v1831_v17, %v1831_v17 }
 0x535   : > { %v1834_v22 = vadd.f32 %v1833_v21, %v1832_v20  ;;  %v4698_v21 = vpack.i.bf16 %v5781_v58, %v5779_v57 }
 0x537   : > { %1835 = vadd.xlane.f32.xlu0 %v1834_v22  ;;  %v1500_v22 = vld [vmem:[#allocation15] sm:$0xff] }
 0x54b   : > { %1977 = vrot.lane.b32.xlu0 %v5258_v0, %s6492_s0 }
 0x553   : > { %1957 = vrot.lane.b32.xlu0 %v5258_v0, %s5264_s16 }
 0x5aa   : > { %v1836_v23 = vpop.xlane.xlu0 %1835 }
 0x5ab   : > { %v1837_v24 = vrot.slane %v1836_v23, 4 }
 0x5ad   : > { %v1838_v25 = vadd.f32 %v1837_v24, %v1836_v23  ;;  %v2064_v23 = vpop.permute.xlu2 %2063 }
 0x5af   : > { %v1839_v26 = vrot.slane %v1838_v25, 2 }
 0x5b1   : > { %v1840_v29 = vadd.f32 %v1839_v26, %v1838_v25 }
 0x5b3   : > { %v1841_v30 = vrot.slane %v1840_v29, 1 }
 0x5b5   : > { %v1842_v31 = vadd.f32 %v1841_v30, %v1840_v29  ;;  %v2046_v24 = vpop.permute.xlu2 %2045 }
 0x5b7   : > { %v1843_v32 = vmul.f32 0.00048828125, %v1842_v31 }
 0x5b9   : > { %v1844_v33 = vadd.f32 1e-05, %v1843_v32 }
 0x5bb   : > { %4754 = vrsqrt.f32 %v1844_v33  ;;  %vm1851_vm12 = vweird.f32 %v1844_v33 }
 0x5bd   : > { %v2026_v25 = vpop.permute.xlu2 %2025  ;;  %v1978_v30 = vpop.permute.xlu0 %1977 }
 0x5c1   : > { %v4755_v34 = vpop.eup %4754 }
 0x5c2   : > { %v1846_v35 = vmul.f32 %v4755_v34, %v1844_v33  ;;  %vm1852_vm11 = vweird.f32 %v4755_v34 }
 0x5c3   : > { %vm1853_vm13 = vmor %vm1851_vm12, %vm1852_vm11 }
 0x5c4   : > { %v1847_v36 = vmul.f32 %v4755_v34, %v1846_v35 }
 0x5c5   : > { %v2006_v26 = vpop.permute.xlu2 %2005 }
 0x5c6   : > { %v1848_v38 = vmul.f32 0.5, %v1847_v36 }
 0x5c8   : > { %v1849_v39 = vsub.f32 1.5, %v1848_v38 }
 0x5ca   : > { %v1850_v40 = vmul.f32 %v4755_v34, %v1849_v39 }
 0x5cc   : > { %v1854_v41 = vsel %vm1853_vm13, %v4755_v34, %v1850_v40  ;;  %v1958_v34 = vpop.permute.xlu0 %1957 }
 0x5cd   : > { %v1855_v42 = vmul.f32 %v1854_v41, %v1830_v16  ;;  %v1856_v43 = vmul.f32 %v1854_v41, %v1831_v17 }
 0x5cf   : > { %v1862_v44 = vmul.f32 %v1860_v37, %v1855_v42  ;;  %v1863_v45 = vmul.f32 %v1860_v37, %v1856_v43 }
 0x5d1   : > { %v1869_v47 = vadd.f32 %v1867_v46, %v1862_v44  ;;  %v1870_v48 = vadd.f32 %v1867_v46, %v1863_v45 }
 0x5d3   : > { %v4414_v49 = vmul.f32 -1.442695, %v1869_v47  ;;  %v4415_v50 = vmul.f32 -1.442695, %v1870_v48 }
 0x5d5   : > { %4756 = vpow2.f32 %v4414_v49 }
 0x5d6   : > { %4758 = vpow2.f32 %v4415_v50 }
 0x5db   : > { %v4757_v51 = vpop.eup %4756 }
 0x5dc   : > { %v4759_v52 = vpop.eup %4758  ;;  %v1877_v53 = vadd.f32 1.0, %v4757_v51 }
 0x5dd   : > { %v1878_v54 = vadd.f32 1.0, %v4759_v52 }
 0x5de   : > { %4760 = vrcp.f32 %v1877_v53  ;;  %v1890_v62 = vand.u32 2147483648, %v1877_v53  ;;  %v1888_v2 = vand.u32 2147483647, %v1877_v53  ;;  %vm1884_vm15 = vweird.f32 %v1877_v53 }
 0x5df   : > { %4762 = vrcp.f32 %v1878_v54  ;;  %v1905_v3 = vand.u32 2147483648, %v1878_v54  ;;  %v1903_v5 = vand.u32 2147483647, %v1878_v54  ;;  %vm1899_vm10 = vweird.f32 %v1878_v54 }
 0x5e0   : > { %v1891_v7 = vor.u32 1.1754944e-38, %v1890_v62  ;;  %vm1889_vm11 = vcmp.eq.f32.partialorder %v1888_v2, 8.507059e+37 }
 0x5e1   : > { %v1906_v11 = vor.u32 1.1754944e-38, %v1905_v3  ;;  %vm1904_vm13 = vcmp.eq.f32.partialorder %v1903_v5, 8.507059e+37 }
 0x5e4   : > { %v4761_v55 = vpop.eup %4760 }
 0x5e5   : > { %v4763_v56 = vpop.eup %4762  ;;  %v1880_v59 = vmul.f32 %v4761_v55, %v1877_v53  ;;  %vm1885_vm0 = vweird.f32 %v4761_v55 }
 0x5e6   : > { %v1895_v60 = vmul.f32 %v4763_v56, %v1878_v54  ;;  %vm1900_vm14 = vweird.f32 %v4763_v56  ;;  %vm1886_vm1 = vmor %vm1884_vm15, %vm1885_vm0 }
 0x5e7   : > { %v1881_v61 = vsub.f32 1.0, %v1880_v59  ;;  %vm1901_vm12 = vmor %vm1899_vm10, %vm1900_vm14  ;;  %vm6557_vm14 = vcmask 121856   ;;  %vm6560_vm10 = vcmask 138240  }
 0x5e8   : > { %v1896_v63 = vsub.f32 1.0, %v1895_v60  ;;  %vm6558_vm15 = vmmov %vm6557_vm14 }
 0x5e9   : > { %v1882_v1 = vmul.f32 %v4761_v55, %v1881_v61 }
 0x5ea   : > { %v1897_v4 = vmul.f32 %v4763_v56, %v1896_v63 }
 0x5eb   : > { %v1883_v6 = vadd.f32 %v4761_v55, %v1882_v1  ;;  %v1499_v1 = vld [vmem:[#allocation13] sm:$0xff] }
 0x5ec   : > { %v1898_v8 = vadd.f32 %v4763_v56, %v1897_v4 }
 0x5ed   : > { %v1887_v10 = vsel %vm1886_vm1, %v4761_v55, %v1883_v6  ;;  %vm6559_vm1 = vcmask 130048  }
 0x5ee   : > { %v1892_v12 = vsel %vm1889_vm11, %v1891_v7, %v1887_v10  ;;  %v1902_v13 = vsel %vm1901_vm12, %v4763_v56, %v1898_v8  ;;  %vm6561_vm11 = vcmask 588800  }
 0x5ef   : > { %v1907_v14 = vsel %vm1904_vm13, %v1906_v11, %v1902_v13  ;;  %v1909_v15 = vmul.f32 %v1892_v12, %v1869_v47  ;;  %vm6564_vm12 = vmmov %vm6561_vm11 }
 0x5f0   : > { %v1910_v16 = vmul.f32 %v1907_v14, %v1870_v48 }
 0x5f1   : > { %2021 = vrot.lane.b32.xlu0 %v1909_v15, %s5261_s18  ;;  %2059 = vrot.lane.b32.xlu2 %v1909_v15, %s5259_s11  ;;  %v4693_v20 = vpack.i.bf16 %v1909_v15, %v5258_v0 }
 0x5f2   : > { %v4688_v17 = vpack.i.bf16 %v1910_v16, %v1909_v15 }
 0x5f4   : > { %4689 = vrot.lane.b32.xlu1 %v4688_v17, %s5260_s23 }
 0x5f9   : > { %2001 = vrot.lane.b32.xlu0 %v1909_v15, %s6490_s7  ;;  %2061 = vrot.lane.b32.xlu2 %v1910_v16, %s5259_s11 }
 0x5fc   : > { %2003 = vrot.lane.b32.xlu1 %v1910_v16, %s6490_s7 }
 0x601   : > { %4694 = vrot.lane.b32.xlu0 %v4693_v20, %s5265_s29  ;;  %2023 = vrot.lane.b32.xlu2 %v1910_v16, %s5261_s18  ;;  %s5271_s18 = smov 8  }
 0x604   : > { %1979 = vrot.lane.b32.xlu1 %v1909_v15, %s6492_s0 }
 0x609   : > { %1921 = vrot.lane.b32.xlu0 %v1909_v15, %s5266_s22  ;;  %1981 = vrot.lane.b32.xlu2 %v1910_v16, %s6492_s0 }
 0x60c   : > { %1959 = vrot.lane.b32.xlu1 %v1909_v15, %s5264_s16 }
 0x611   : > { %4699 = vrot.lane.b32.xlu0 %v4698_v21, %s5259_s11  ;;  %1961 = vrot.lane.b32.xlu2 %v1910_v16, %s5264_s16  ;;  %s5272_s16 = smov 9  }
 0x614   : > { %1943 = vrot.lane.b32.xlu1 %v1910_v16, %s5265_s29  ;;  %s5273_s29 = smov 119  }
 0x619   : > { %4709 = vrot.lane.b32.xlu0 %v4698_v21, %s6490_s7  ;;  %1919 = vrot.lane.b32.xlu2 %v5258_v0, %s5266_s22 }
 0x61c   : > { %1923 = vrot.lane.b32.xlu1 %v1910_v16, %s5266_s22  ;;  %s6598_s22 = sld [smem:[#allocation41_spill]] }
 0x621   : > { %2093 = vperm.xlu2 %4687, %v1500_v22  }
 0x624   : > { %4704 = vrot.lane.b32.xlu1 %v4698_v21, %s5260_s23 }
 0x64b   : > { %v2060_v29 = vpop.permute.xlu2 %2059 }
 0x653   : > { %v2062_v31 = vpop.permute.xlu2 %2061 }
 0x654   : > { %v2065_v32 = vsel %vm1422_vm2, %v2060_v29, %v2062_v31  ;;  %v2066_v33 = vsel %vm1422_vm2, %v2062_v31, %v2064_v23 }
 0x655   : > { %4468 = vmatpush.msk.msrb.mxu0 %vm5719_vm3, %v2065_v32  ;;  %4474 = vmatpush.msk.msrb.mxu1 %vm5723_vm4, %v2066_v33 }
 0x65b   : > { %v2024_v36 = vpop.permute.xlu2 %2023 }
 0x65c   : > { %v2028_v42 = vsel %vm1382_vm6, %v2024_v36, %v2026_v25 }
 0x663   : > { %v2022_v35 = vpop.permute.xlu0 %2021  ;;  %v1982_v45 = vpop.permute.xlu2 %1981 }
 0x664   : > { %v2027_v43 = vsel %vm1382_vm6, %v2022_v35, %v2024_v36  ;;  %vm6555_vm6 = vcmask 7168  }
 0x665   : > { %vm6556_vm0 = vmmov %vm6555_vm6 }
 0x666   : > { %v4690_v37 = vpop.permute.xlu1 %4689 }
 0x667   : > { %v4692_v38 = vunpack.i.h.bf16 %v4690_v37  ;;  %v4691_v39 = vunpack.i.l.bf16 %v4690_v37 }
 0x669   : > { %v2047_v40 = vsel %vm1403_vm5, %v4691_v39, %v4692_v38  ;;  %v2048_v41 = vsel %vm1403_vm5, %v4692_v38, %v2046_v24 }
 0x66a   : > { %2107 = vmatpush.msrb.mxu0 %v2047_v40  ;;  %2127 = vmatpush.msrb.mxu1 %v2048_v41 }
 0x66b   : > { %v2002_v44 = vpop.permute.xlu0 %2001  ;;  %v1962_v53 = vpop.permute.xlu2 %1961 }
 0x66c   : > { %4475 = vmatpush.msk.msrb.mxu1 %vm5739_vm8, %v2028_v42  ;;  %4469 = vmatpush.msk.msrb.mxu0 %vm5735_vm7, %v2027_v43 }
 0x66e   : > { %v2004_v46 = vpop.permute.xlu1 %2003 }
 0x66f   : > { %v2007_v47 = vsel %vm1361_vm9, %v2002_v44, %v2004_v46  ;;  %v2008_v48 = vsel %vm1361_vm9, %v2004_v46, %v2006_v26  ;;  %v5950_v26 = vld [vmem:[#allocation4] sm:$0xff] }
 0x670   : > { %4470 = vmatpush.msk.msrb.mxu0 %vm5719_vm3, %v2007_v47  ;;  %4476 = vmatpush.msk.msrb.mxu1 %vm5723_vm4, %v2008_v48 }
 0x672   : > { %2110 = vmatpush.msrb.mxu0 %v1909_v15  ;;  %2130 = vmatpush.msrb.mxu1 %v1910_v16 }
 0x673   : > { %v4695_v49 = vpop.permute.xlu0 %4694  ;;  %v1920_v63 = vpop.permute.xlu2 %1919 }
 0x674   : > { %v4697_v55 = vunpack.i.h.bf16 %v4695_v49  ;;  %v4696_v56 = vunpack.i.l.bf16 %v4695_v49 }
 0x676   : > { %v1980_v50 = vpop.permute.xlu1 %1979  ;;  %v1945_v62 = vsel %vm6559_vm1, %v4696_v56, %v4697_v55  ;;  %v2160_v56 = vld [vmem:[#allocation19 + $0x78] sm:$0xff] }
 0x677   : > { %v1983_v51 = vsel %vm6555_vm6, %v1978_v30, %v1980_v50  ;;  %v1984_v52 = vsel %vm6556_vm0, %v1980_v50, %v1982_v45 }
 0x678   : > { %4471 = vmatpush.msk.msrb.mxu0 %vm5735_vm7, %v1983_v51  ;;  %4477 = vmatpush.msk.msrb.mxu1 %vm5739_vm8, %v1984_v52 }
 0x67b   : > { %v1922_v54 = vpop.permute.xlu0 %1921  ;;  %v2094_v17 = vpop.permute.xlu2 %2093 }
 0x67c   : > { %v1925_v3 = vsel %vm6560_vm10, %v1920_v63, %v1922_v54  ;;  %v2174_v63 = vld [vmem:[#allocation19 + $0xe8] sm:$0xff] }
 0x67e   : > { %v1960_v59 = vpop.permute.xlu1 %1959 }
 0x67f   : > { %v1963_v60 = vsel %vm6557_vm14, %v1958_v34, %v1960_v59  ;;  %v1964_v61 = vsel %vm6558_vm15, %v1960_v59, %v1962_v53  ;;  %v2176_v59 = vld [vmem:[#allocation19 + $0xf8] sm:$0xff]  ;;  %vm1206_vm14 = vcmask 1048064  }
 0x680   : > { %4472 = vmatpush.msk.msrb.mxu0 %vm5719_vm3, %v1963_v60  ;;  %4478 = vmatpush.msk.msrb.mxu1 %vm5723_vm4, %v1964_v61  ;;  %vm6562_vm3 = vmmov %vm6559_vm1  ;;  %v2159_v60 = vld [vmem:[#allocation19 + $0x70] sm:$0xff]  ;;  %1210 = vst.msk [vmem:[#allocation4 + $0x20] sm:$0xff] %vm1206_vm14, %v5950_v26 }
 0x681   : > { %vm6563_vm4 = vmmov %vm6560_vm10  ;;  %v2175_v61 = vld [vmem:[#allocation19 + $0xf0] sm:$0xff]  ;;  %1207 = vst.msk [vmem:[#allocation4 + $0x8] sm:$0xff] %vm1206_vm14, %v5950_v26 }
 0x682   : > { %2113 = vmatpush.msrb.mxu0 %v1945_v62  ;;  %v2158_v62 = vld [vmem:[#allocation19 + $0x68] sm:$0xff] }
 0x683   : > { %v4700_v2 = vpop.permute.xlu0 %4699 }
 0x684   : > { %v4702_v4 = vunpack.i.h.bf16 %v4700_v2  ;;  %v4701_v5 = vunpack.i.l.bf16 %v4700_v2  ;;  %4473 = vmatpush.msk.msrb.mxu0 %vm5735_vm7, %v1925_v3  ;;  %v2173_v2 = vld [vmem:[#allocation19 + $0xe0] sm:$0xff]  ;;  %v2142_v3 = vld [vmem:[#allocation16 + $0x8] sm:$0xff] }
 0x685   : > { %4416 = vmatmul.msk.f32.vlgmr.msrb.gmra.mxu0 %vm6561_vm11, %v1499_v1 }
 0x686   : > { %v1944_v18 = vpop.permute.xlu1 %1943  ;;  %v2291_v6 = vsel %vm1422_vm2, %v4701_v5, %v4702_v4  ;;  %v2172_v5 = vld [vmem:[#allocation19 + $0xd8] sm:$0xff] }
 0x687   : > { %v1946_v19 = vsel %vm6562_vm3, %v4697_v55, %v1944_v18  ;;  %2327 = vmatpush.msrb.mxu2 %v2291_v6  ;;  %v2141_v55 = vld [vmem:[#allocation16] sm:$0xff]  ;;  %v2155_v18 = vld [vmem:[#allocation19 + $0x50] sm:$0xff] }
 0x688   : > { %2133 = vmatpush.msrb.mxu1 %v1946_v19  ;;  %v2171_v6 = vld [vmem:[#allocation19 + $0xd0] sm:$0xff]  ;;  %v2154_v19 = vld [vmem:[#allocation19 + $0x48] sm:$0xff] }
 0x68b   : > { %v4710_v10 = vpop.permute.xlu0 %4709 }
 0x68c   : > { %v4712_v11 = vunpack.i.h.bf16 %v4710_v10  ;;  %v4711_v12 = vunpack.i.l.bf16 %v4710_v10  ;;  %v2169_v10 = vld [vmem:[#allocation19 + $0xc0] sm:$0xff] }
 0x68e   : > { %v1924_v7 = vpop.permute.xlu1 %1923  ;;  %v2255_v16 = vsel %vm1361_vm9, %v4711_v12, %v4712_v11  ;;  %v2151_v12 = vld [vmem:[#allocation19 + $0x30] sm:$0xff] }
 0x68f   : > { %v1926_v8 = vsel %vm6563_vm4, %v1922_v54, %v1924_v7  ;;  %v2170_v7 = vld [vmem:[#allocation19 + $0xc8] sm:$0xff] }
 0x690   : > { %4479 = vmatpush.msk.msrb.mxu1 %vm5739_vm8, %v1926_v8  ;;  %v2153_v8 = vld [vmem:[#allocation19 + $0x40] sm:$0xff] }
 0x691   : > { %4417 = vmatmul.msk.f32.vlgmr.msrb.gmra.mxu1 %vm6564_vm12, %v1499_v1  ;;  %v2157_v1 = vld [vmem:[#allocation19 + $0x60] sm:$0xff] }
 0x696   : > { %v4705_v27 = vpop.permute.xlu1 %4704 }
 0x697   : > { %v4707_v13 = vunpack.i.h.bf16 %v4705_v27  ;;  %v4706_v14 = vunpack.i.l.bf16 %v4705_v27  ;;  %v2152_v27 = vld [vmem:[#allocation19 + $0x38] sm:$0xff] }
 0x699   : > { %v2273_v15 = vsel %vm1403_vm5, %v4706_v14, %v4707_v13  ;;  %v2150_v14 = vld [vmem:[#allocation19 + $0x28] sm:$0xff] }
 0x69a   : > { %2328 = vmatpush.msrb.mxu2 %v2273_v15  ;;  %v2166_v15 = vld [vmem:[#allocation19 + $0xa8] sm:$0xff] }
 0x69c   : > { %2329 = vmatpush.msrb.mxu2 %v2255_v16  ;;  %v2149_v16 = vld [vmem:[#allocation19 + $0x20] sm:$0xff] }
 0x69e   : > { %2330 = vmatpush.msrb.mxu2 %v5779_v57 }
 0x702   : > { %v2116_v20 = vpop.f32.mrf.mxu0 }
 0x703   : > { %v2117_v28 = vadd.f32 %v2116_v20, %v2094_v17  ;;  %v2148_v20 = vld [vmem:[#allocation19 + $0x18] sm:$0xff] }
 0x705   : > { %v2139_v21 = vadd.f32 %v2117_v28, %v5779_v57  ;;  %v2164_v28 = vld [vmem:[#allocation19 + $0x98] sm:$0xff] }
 0x707   : > { %v4718_v22 = vpack.i.bf16 %v2139_v21, %v5258_v0  ;;  %v2144_v0 = vld [vmem:[#allocation18 + $0x8] sm:$0xff] }
 0x709   : > { %4719 = vrot.lane.b32.xlu1 %v4718_v22, %s5260_s23  ;;  %4714 = vrot.lane.b32.xlu2 %v4718_v22, %s5259_s11 }
 0x70e   : > { %v2136_v23 = vpop.f32.mrf.mxu1 }
 0x70f   : > { %v2137_v24 = vadd.f32 %v2136_v23, %v2094_v17  ;;  %v2165_v17 = vld [vmem:[#allocation19 + $0xa0] sm:$0xff]  ;;  %v2146_v23 = vld [vmem:[#allocation19 + $0x8] sm:$0xff] }
 0x711   : > { %v2140_v25 = vadd.f32 %v2137_v24, %v5781_v58  ;;  %4724 = vrot.lane.b32.xlu2 %v4718_v22, %s6490_s7  ;;  %v2163_v22 = vld [vmem:[#allocation19 + $0x90] sm:$0xff]  ;;  %v2145_v24 = vld [vmem:[#allocation19] sm:$0xff] }
 0x713   : > { %v4728_v29 = vpack.i.bf16 %v5950_v26, %v2140_v25 }
 0x715   : > { %4729 = vrot.lane.b32.xlu0 %v4728_v29, %s5259_s11  ;;  %4734 = vrot.lane.b32.xlu1 %v4728_v29, %s5260_s23  ;;  %s6570_s11 = sld [smem:[#allocation40_spill]]  ;;  %s5268_s23 = smov 7  }
 0x719   : > { %4739 = vrot.lane.b32.xlu2 %v4728_v29, %s6490_s7  ;;  %v2161_v29 = vld [vmem:[#allocation19 + $0x80] sm:$0xff] }
 0x71d   : > { %2372 = vperm.xlu0 %4676, %v2144_v0   ;;  %v2143_v0 = vld [vmem:[#allocation18] sm:$0xff] }
 0x71e   : > { %2367 = vperm.xlu1 %4743, %v2143_v0  }
 0x763   : > { %v4715_v57 = vpop.permute.xlu2 %4714 }
 0x764   : > { %v4716_v30 = vunpack.i.l.bf16 %v4715_v57  ;;  %v4717_v39 = vunpack.i.h.bf16 %v4715_v57 }
 0x766   : > { %v2292_v31 = vsel %vm1422_vm2, %v4702_v4, %v4716_v30  ;;  %v2156_v4 = vld [vmem:[#allocation19 + $0x58] sm:$0xff] }
 0x767   : > { %2350 = vmatpush.msrb.mxu3 %v2292_v31 }
 0x76b   : > { %v4725_v32 = vpop.permute.xlu2 %4724 }
 0x76c   : > { %v4726_v34 = vunpack.i.l.bf16 %v4725_v32  ;;  %v4727_v51 = vunpack.i.h.bf16 %v4725_v32 }
 0x76e   : > { %v2256_v37 = vsel %vm1361_vm9, %v4712_v11, %v4726_v34  ;;  %v2168_v11 = vld [vmem:[#allocation19 + $0xb8] sm:$0xff] }
 0x773   : > { %v4740_v38 = vpop.permute.xlu2 %4739 }
 0x774   : > { %v4742_v46 = vunpack.i.h.bf16 %v4740_v38  ;;  %v4741_v47 = vunpack.i.l.bf16 %v4740_v38 }
 0x776   : > { %v2195_v53 = vsel %vm1361_vm9, %v4727_v51, %v4741_v47  ;;  %v2196_v54 = vsel %vm1361_vm9, %v4741_v47, %v4742_v46  ;;  %v2437_v46 = vld [vmem:[%s6570_s11] sm:$0xff] }
 0x77b   : > { %v4720_v33 = vpop.permute.xlu1 %4719 }
 0x77c   : > { %v4721_v35 = vunpack.i.l.bf16 %v4720_v33  ;;  %v4722_v48 = vunpack.i.h.bf16 %v4720_v33 }
 0x77e   : > { %v2274_v36 = vsel %vm1403_vm5, %v4707_v13, %v4721_v35  ;;  %v2167_v13 = vld [vmem:[#allocation19 + $0xb0] sm:$0xff] }
 0x77f   : > { %2351 = vmatpush.msrb.mxu3 %v2274_v36 }
 0x781   : > { %2352 = vmatpush.msrb.mxu3 %v2256_v37 }
 0x783   : > { %2353 = vmatpush.msrb.mxu3 %v5781_v58 }
 0x787   : > { %v4730_v40 = vpop.permute.xlu0 %4729  ;;  %v4735_v41 = vpop.permute.xlu1 %4734 }
 0x788   : > { %v4732_v42 = vunpack.i.h.bf16 %v4730_v40  ;;  %v4731_v43 = vunpack.i.l.bf16 %v4730_v40  ;;  %v4737_v44 = vunpack.i.h.bf16 %v4735_v41  ;;  %v4736_v45 = vunpack.i.l.bf16 %v4735_v41 }
 0x78a   : > { %v2231_v49 = vsel %vm1422_vm2, %v4717_v39, %v4731_v43  ;;  %v2232_v50 = vsel %vm1422_vm2, %v4731_v43, %v4732_v42  ;;  %v2213_v58 = vsel %vm1403_vm5, %v4722_v48, %v4736_v45  ;;  %v2214_v52 = vsel %vm1403_vm5, %v4736_v45, %v4737_v44  ;;  %v2436_v45 = vld [vmem:[%s6569_s2 + $0x8] sm:$0xff] }
 0x78b   : > { %2331 = vmatpush.msrb.mxu2 %v2231_v49  ;;  %2354 = vmatpush.msrb.mxu3 %v2232_v50  ;;  %vm6565_vm2 = vcmask 523264  }
 0x78c   : > { %vm6566_vm7 = vmmov %vm6565_vm2 }
 0x78d   : > { %2332 = vmatpush.msrb.mxu2 %v2213_v58  ;;  %2355 = vmatpush.msrb.mxu3 %v2214_v52  ;;  %vm6567_vm5 = vmmov %vm6565_vm2 }
 0x78e   : > { %vm6568_vm8 = vmmov %vm6565_vm2 }
 0x78f   : > { %2333 = vmatpush.msrb.mxu2 %v2195_v53  ;;  %2356 = vmatpush.msrb.mxu3 %v2196_v54  ;;  %vm6571_vm9 = vmmov %vm6565_vm2  ;;  %v2373_v39 = vpop.permute.xlu0 %2372 }
 0x790   : > { %v2368_v33 = vpop.permute.xlu1 %2367  ;;  %vm6572_vm13 = vmmov %vm6565_vm2 }
 0x791   : > { %2334 = vmatpush.msrb.mxu2 %v2139_v21  ;;  %2357 = vmatpush.msrb.mxu3 %v2140_v25  ;;  %v2147_v21 = vld [vmem:[#allocation19 + $0x10] sm:$0xff]  ;;  %v2162_v25 = vld [vmem:[#allocation19 + $0x88] sm:$0xff]  ;;  %vm6573_vm6 = vmmov %vm6565_vm2 }
 0x792   : > { %4418 = vmatmul.msk.f32.vlgmr.msrb.gmra.mxu2 %vm6565_vm2, %v2141_v55  ;;  %4420 = vmatmul.msk.f32.vlgmr.msrb.gmra.mxu3 %vm6566_vm7, %v2141_v55  ;;  %vm6574_vm0 = vmmov %vm6565_vm2 }
 0x793   : > { %2375 = vmatpush.msra.mxu2 %v2160_v56  ;;  %2398 = vmatpush.msra.mxu3 %v2176_v59 }
 0x795   : > { %2376 = vmatpush.msra.mxu2 %v2159_v60  ;;  %2399 = vmatpush.msra.mxu3 %v2175_v61 }
 0x797   : > { %2377 = vmatpush.msra.mxu2 %v2158_v62  ;;  %2400 = vmatpush.msra.mxu3 %v2174_v63 }
 0x799   : > { %2378 = vmatpush.msra.mxu2 %v2157_v1  ;;  %2401 = vmatpush.msra.mxu3 %v2173_v2 }
 0x79a   : > { %4419 = vmatmul.msk.f32.gmra.mxu2 %vm6567_vm5, %v2142_v3  ;;  %4421 = vmatmul.msk.f32.gmra.mxu3 %vm6568_vm8, %v2142_v3 }
 0x79b   : > { %2379 = vmatpush.msra.mxu2 %v2156_v4  ;;  %2402 = vmatpush.msra.mxu3 %v2172_v5 }
 0x79d   : > { %2380 = vmatpush.msra.mxu2 %v2155_v18  ;;  %2403 = vmatpush.msra.mxu3 %v2171_v6  ;;  %v2438_v6 = vld [vmem:[%s6570_s11 + $0x8] sm:$0xff] }
 0x79f   : > { %2381 = vmatpush.msra.mxu2 %v2154_v19  ;;  %2404 = vmatpush.msra.mxu3 %v2170_v7  ;;  %v2435_v19 = vld [vmem:[%s6569_s2] sm:$0xff]  ;;  %s6499_s2 = smov 123  }
 0x7a1   : > { %2382 = vmatpush.msra.mxu2 %v2153_v8  ;;  %2405 = vmatpush.msra.mxu3 %v2169_v10 }
 0x7a3   : > { %2383 = vmatpush.msra.mxu2 %v2152_v27  ;;  %2406 = vmatpush.msra.mxu3 %v2168_v11 }
 0x7a5   : > { %2384 = vmatpush.msra.mxu2 %v2151_v12  ;;  %2407 = vmatpush.msra.mxu3 %v2167_v13 }
 0x7a7   : > { %2385 = vmatpush.msra.mxu2 %v2150_v14  ;;  %2408 = vmatpush.msra.mxu3 %v2166_v15 }
 0x7a9   : > { %2386 = vmatpush.msra.mxu2 %v2149_v16  ;;  %2409 = vmatpush.msra.mxu3 %v2165_v17 }
 0x7ab   : > { %2387 = vmatpush.msra.mxu2 %v2148_v20  ;;  %2410 = vmatpush.msra.mxu3 %v2164_v28 }
 0x7ad   : > { %2388 = vmatpush.msra.mxu2 %v2147_v21  ;;  %2411 = vmatpush.msra.mxu3 %v2163_v22 }
 0x7af   : > { %2389 = vmatpush.msra.mxu2 %v2146_v23  ;;  %2412 = vmatpush.msra.mxu3 %v2162_v25 }
 0x7b1   : > { %2390 = vmatpush.msra.mxu2 %v2145_v24  ;;  %2413 = vmatpush.msra.mxu3 %v2161_v29 }
 0x815   : > { %v2336_v57 = vpop.f32.mrf.mxu2  ;;  %v2359_v30 = vpop.f32.mrf.mxu3 }
 0x816   : > { %2391 = vmatmul.f32.vlgmr.msra.gmra.mxu2 %v2336_v57  ;;  %2414 = vmatmul.f32.vlgmr.msra.gmra.mxu3 %v2359_v30 }
 0x81d   : > { %v2339_v31 = vpop.f32.mrf.mxu2  ;;  %v2362_v32 = vpop.f32.mrf.mxu3 }
 0x81e   : > { %2394 = vmatmul.f32.gmra.mxu2 %v2339_v31  ;;  %2417 = vmatmul.f32.gmra.mxu3 %v2362_v32 }
 0x899   : > { %v2392_v34 = vpop.f32.mrf.mxu2  ;;  %v2415_v35 = vpop.f32.mrf.mxu3 }
 0x89a   : > { %v2393_v36 = vadd.f32 %v2392_v34, %v2368_v33 }
 0x89c   : > { %v5970_v37 = vadd.f32 %v2415_v35, %v2393_v36 }
 0x89e   : > { %v2455_v38 = vsel %vm6571_vm9, %v5970_v37, 0.0  ;;  %vm6575_vm9 = vmmov %vm6574_vm0 }
 0x89f   : > { %2456 = vadd.xlane.f32.xlu0 %v2455_v38  ;;  %vm6576_vm14 = vmmov %vm6575_vm9 }
 0x8a1   : > { %v2395_v40 = vpop.f32.mrf.mxu2  ;;  %v2418_v41 = vpop.f32.mrf.mxu3 }
 0x8a2   : > { %v2396_v42 = vadd.f32 %v2395_v40, %v2373_v39 }
 0x8a4   : > { %v5974_v43 = vadd.f32 %v2418_v41, %v2396_v42 }
 0x8a6   : > { %v2489_v44 = vsel %vm6572_vm13, %v5974_v43, 0.0 }
 0x8a7   : > { %2490 = vadd.xlane.f32.xlu2 %v2489_v44 }
 0x8b3   : > { %2530 = vperm.xlu0 %4676, %v2436_v45  }
 0x8bb   : > { %2537 = vperm.xlu0 %4676, %v2437_v46  }
 0x8c3   : > { %2674 = vrot.lane.b32.xlu0 %v5950_v26, %s6492_s0 }
 0x912   : > { %v2457_v47 = vpop.xlane.xlu0 %2456 }
 0x913   : > { %v2458_v48 = vrot.slane %v2457_v47, 4 }
 0x915   : > { %v2459_v49 = vadd.f32 %v2458_v48, %v2457_v47 }
 0x917   : > { %v2460_v50 = vrot.slane %v2459_v49, 2 }
 0x919   : > { %v2461_v51 = vadd.f32 %v2460_v50, %v2459_v49 }
 0x91a   : > { %v2491_v58 = vpop.xlane.xlu2 %2490 }
 0x91b   : > { %v2462_v52 = vrot.slane %v2461_v51, 1  ;;  %v2492_v53 = vrot.slane %v2491_v58, 4 }
 0x91d   : > { %v2493_v54 = vadd.f32 %v2492_v53, %v2491_v58  ;;  %v2463_v55 = vadd.f32 %v2462_v52, %v2461_v51 }
 0x91f   : > { %v2494_v56 = vrot.slane %v2493_v54, 2  ;;  %v2464_v59 = vmul.f32 0.001953125, %v2463_v55 }
 0x921   : > { %v2495_v60 = vadd.f32 %v2494_v56, %v2493_v54  ;;  %v2465_v61 = vsub.f32 %v5970_v37, %v2464_v59 }
 0x923   : > { %v2496_v62 = vrot.slane %v2495_v60, 1  ;;  %v2466_v63 = vmul.f32 %v2465_v61, %v2465_v61 }
 0x925   : > { %v2467_v1 = vsel %vm6573_vm6, %v2466_v63, 0.0  ;;  %v2497_v2 = vadd.f32 %v2496_v62, %v2495_v60  ;;  %v2531_v30 = vpop.permute.xlu0 %2530 }
 0x926   : > { %2468 = vadd.xlane.f32.xlu2 %v2467_v1 }
 0x927   : > { %v2498_v3 = vmul.f32 0.001953125, %v2497_v2 }
 0x929   : > { %v2499_v4 = vsub.f32 %v5974_v43, %v2498_v3 }
 0x92b   : > { %v2500_v5 = vmul.f32 %v2499_v4, %v2499_v4 }
 0x92d   : > { %v2501_v18 = vsel %vm6574_vm0, %v2500_v5, 0.0  ;;  %v2538_v44 = vpop.permute.xlu0 %2537 }
 0x92e   : > { %2502 = vadd.xlane.f32.xlu1 %v2501_v18 }
 0x93e   : > { %2542 = vperm.xlu2 %4687, %v2438_v6  }
 0x946   : > { %2653 = vrot.lane.b32.xlu2 %v5950_v26, %s5268_s23 }
 0x947   : > { %2525 = vperm.xlu1 %4743, %v2435_v19  }
 0x94f   : > { %2678 = vrot.lane.b32.xlu1 %v5950_v26, %s6492_s0 }
 0x999   : > { %v2469_v7 = vpop.xlane.xlu2 %2468 }
 0x99a   : > { %v2470_v8 = vrot.slane %v2469_v7, 4 }
 0x99c   : > { %v2471_v10 = vadd.f32 %v2470_v8, %v2469_v7 }
 0x99e   : > { %v2472_v27 = vrot.slane %v2471_v10, 2 }
 0x9a0   : > { %v2473_v11 = vadd.f32 %v2472_v27, %v2471_v10 }
 0x9a1   : > { %v2503_v12 = vpop.xlane.xlu1 %2502  ;;  %v2543_v58 = vpop.permute.xlu2 %2542 }
 0x9a2   : > { %v2474_v13 = vrot.slane %v2473_v11, 1  ;;  %v2504_v14 = vrot.slane %v2503_v12, 4 }
 0x9a4   : > { %v2475_v15 = vadd.f32 %v2474_v13, %v2473_v11  ;;  %v2505_v16 = vadd.f32 %v2504_v14, %v2503_v12 }
 0x9a6   : > { %v2476_v17 = vmul.f32 0.001953125, %v2475_v15  ;;  %v2506_v20 = vrot.slane %v2505_v16, 2 }
 0x9a8   : > { %v2477_v28 = vadd.f32 1e-05, %v2476_v17  ;;  %v2507_v21 = vadd.f32 %v2506_v20, %v2505_v16 }
 0x9aa   : > { %4764 = vrsqrt.f32 %v2477_v28  ;;  %v2508_v22 = vrot.slane %v2507_v21, 1  ;;  %vm2484_vm1 = vweird.f32 %v2477_v28 }
 0x9ac   : > { %v2509_v23 = vadd.f32 %v2508_v22, %v2507_v21  ;;  %v2443_v21 = vld [vmem:[#allocation21] sm:$0xff]  ;;  %v2654_v22 = vpop.permute.xlu2 %2653 }
 0x9ae   : > { %v2510_v24 = vmul.f32 0.001953125, %v2509_v23 }
 0x9b0   : > { %v4765_v25 = vpop.eup %4764  ;;  %v2511_v29 = vadd.f32 1e-05, %v2510_v24 }
 0x9b1   : > { %v2479_v0 = vmul.f32 %v4765_v25, %v2477_v28  ;;  %vm2485_vm15 = vweird.f32 %v4765_v25  ;;  %v2444_v28 = vld [vmem:[#allocation21 + $0x8] sm:$0xff] }
 0x9b2   : > { %4766 = vrsqrt.f32 %v2511_v29  ;;  %vm2486_vm10 = vmor %vm2484_vm1, %vm2485_vm15  ;;  %vm2518_vm3 = vweird.f32 %v2511_v29 }
 0x9b3   : > { %v2480_v57 = vmul.f32 %v4765_v25, %v2479_v0  ;;  %vm6577_vm15 = vmmov %vm6575_vm9 }
 0x9b4   : > { %vm6578_vm1 = vmmov %vm6575_vm9 }
 0x9b5   : > { %v2481_v31 = vmul.f32 0.5, %v2480_v57  ;;  %v2425_v57 = vand.u32 7, %v5715_v9 }
 0x9b7   : > { %v2482_v32 = vsub.f32 1.5, %v2481_v31 }
 0x9b8   : > { %v4767_v33 = vpop.eup %4766 }
 0x9b9   : > { %v2513_v34 = vmul.f32 %v4767_v33, %v2511_v29  ;;  %v2483_v35 = vmul.f32 %v4765_v25, %v2482_v32  ;;  %v2526_v41 = vpop.permute.xlu1 %2525  ;;  %vm2519_vm11 = vweird.f32 %v4767_v33  ;;  %v2675_v29 = vpop.permute.xlu0 %2674 }
 0x9ba   : > { %vm2520_vm4 = vmor %vm2518_vm3, %vm2519_vm11  ;;  %vm6026_vm11 = vcmp.ge.s32.totalorder %v2425_v57, 1  ;;  %vm6030_vm3 = vcmp.le.s32.totalorder %v2425_v57, 6 }
 0x9bb   : > { %v2514_v36 = vmul.f32 %v4767_v33, %v2513_v34  ;;  %v2487_v38 = vsel %vm2486_vm10, %v4765_v25, %v2483_v35  ;;  %vm6579_vm10 = vmmov %vm6578_vm1 }
 0x9bc   : > { %v2488_v39 = vmul.f32 %v2487_v38, %v2465_v61 }
 0x9bd   : > { %v2515_v40 = vmul.f32 0.5, %v2514_v36 }
 0x9be   : > { %v2533_v42 = vmul.f32 %v2526_v41, %v2488_v39 }
 0x9bf   : > { %v2516_v45 = vsub.f32 1.5, %v2515_v40 }
 0x9c0   : > { %v2545_v46 = vadd.f32 %v2538_v44, %v2533_v42 }
 0x9c1   : > { %v2517_v47 = vmul.f32 %v4767_v33, %v2516_v45  ;;  %v2679_v25 = vpop.permute.xlu1 %2678 }
 0x9c2   : > { %v4422_v48 = vmul.f32 -1.442695, %v2545_v46 }
 0x9c3   : > { %v2521_v49 = vsel %vm2520_vm4, %v4767_v33, %v2517_v47  ;;  %vm6584_vm4 = vmmov %vm6578_vm1 }
 0x9c4   : > { %v2522_v50 = vmul.f32 %v2521_v49, %v2499_v4  ;;  %4768 = vpow2.f32 %v4422_v48 }
 0x9c6   : > { %v2534_v51 = vmul.f32 %v2531_v30, %v2522_v50  ;;  %v2451_v30 = vld [vmem:[%s6626_s8 + $0x10] sm:$0xff] }
 0x9c8   : > { %v2546_v52 = vadd.f32 %v2543_v58, %v2534_v51 }
 0x9ca   : > { %v4769_v53 = vpop.eup %4768  ;;  %v4423_v54 = vmul.f32 -1.442695, %v2546_v52 }
 0x9cb   : > { %v2553_v55 = vadd.f32 1.0, %v4769_v53 }
 0x9cc   : > { %4770 = vpow2.f32 %v4423_v54 }
 0x9cd   : > { %4772 = vrcp.f32 %v2553_v55  ;;  %v2566_v63 = vand.u32 2147483648, %v2553_v55  ;;  %v2564_v2 = vand.u32 2147483647, %v2553_v55  ;;  %vm2560_vm2 = vweird.f32 %v2553_v55 }
 0x9cf   : > { %v2567_v5 = vor.u32 1.1754944e-38, %v2566_v63  ;;  %vm2565_vm5 = vcmp.eq.f32.partialorder %v2564_v2, 8.507059e+37 }
 0x9d2   : > { %v4771_v56 = vpop.eup %4770 }
 0x9d3   : > { %v4773_v59 = vpop.eup %4772  ;;  %v2554_v60 = vadd.f32 1.0, %v4771_v56 }
 0x9d4   : > { %v2556_v61 = vmul.f32 %v4773_v59, %v2553_v55  ;;  %vm2561_vm12 = vweird.f32 %v4773_v59 }
 0x9d5   : > { %4774 = vrcp.f32 %v2554_v60  ;;  %vm2562_vm7 = vmor %vm2560_vm2, %vm2561_vm12  ;;  %v2581_v10 = vand.u32 2147483648, %v2554_v60  ;;  %v2579_v11 = vand.u32 2147483647, %v2554_v60  ;;  %vm2575_vm13 = vweird.f32 %v2554_v60 }
 0x9d6   : > { %v2557_v62 = vsub.f32 1.0, %v2556_v61  ;;  %vm6585_vm12 = vmmov %vm6578_vm1 }
 0x9d7   : > { %v2582_v13 = vor.u32 1.1754944e-38, %v2581_v10  ;;  %vm2580_vm0 = vcmp.eq.f32.partialorder %v2579_v11, 8.507059e+37  ;;  %vm6586_vm2 = vmmov %vm6578_vm1 }
 0x9d8   : > { %v2558_v1 = vmul.f32 %v4773_v59, %v2557_v62 }
 0x9da   : > { %v2559_v3 = vadd.f32 %v4773_v59, %v2558_v1 }
 0x9db   : > { %v4775_v4 = vpop.eup %4774 }
 0x9dc   : > { %v2571_v18 = vmul.f32 %v4775_v4, %v2554_v60  ;;  %v2563_v6 = vsel %vm2562_vm7, %v4773_v59, %v2559_v3  ;;  %vm2576_vm8 = vweird.f32 %v4775_v4  ;;  %vm6587_vm7 = vcmask 7168  }
 0x9dd   : > { %v2568_v19 = vsel %vm2565_vm5, %v2567_v5, %v2563_v6  ;;  %vm2577_vm6 = vmor %vm2575_vm13, %vm2576_vm8 }
 0x9de   : > { %v2572_v7 = vsub.f32 1.0, %v2571_v18  ;;  %v2585_v8 = vmul.f32 %v2568_v19, %v2545_v46  ;;  %vm6588_vm5 = vmmov %vm6587_vm7 }
 0x9df   : > { %vm6589_vm8 = vmmov %vm6578_vm1 }
 0x9e0   : > { %v2573_v27 = vmul.f32 %v4775_v4, %v2572_v7  ;;  %2587 = vst.msk [vmem:[#allocation4 + $0x8] sm:$0xff] %vm6575_vm9, %v2585_v8  ;;  %vm6590_vm9 = vmmov %vm6578_vm1 }
 0x9e1   : > { %vm6591_vm13 = vmmov %vm6578_vm1 }
 0x9e2   : > { %v2574_v12 = vadd.f32 %v4775_v4, %v2573_v27 }
 0x9e4   : > { %v2578_v14 = vsel %vm2577_vm6, %v4775_v4, %v2574_v12  ;;  %vm6592_vm6 = vmmov %vm6578_vm1 }
 0x9e5   : > { %v2583_v15 = vsel %vm2580_vm0, %v2582_v13, %v2578_v14  ;;  %vm2657_vm0 = vcmask 56320  }
 0x9e6   : > { %v2586_v16 = vmul.f32 %v2583_v15, %v2546_v52 }
 0x9e7   : > { %v2708_v17 = vld [vmem:[#allocation4 + $0x8] sm:$0xff] }
 0x9e8   : > { %2588 = vst.msk [vmem:[#allocation4 + $0x20] sm:$0xff] %vm6576_vm14, %v2586_v16  ;;  %2712 = vrot.lane.b32.xlu1 %v2708_v17, %s5269_s15  ;;  %2726 = vrot.lane.b32.xlu2 %v2708_v17, %s5270_s26  ;;  %vm2632_vm14 = vcmask 64512  }
 0x9e9   : > { %2698 = vrot.lane.b32.xlu0 %v2708_v17, %s6490_s7  ;;  %2692 = vst.msk [vmem:[#allocation5 + $0x40] sm:$0xff] %vm6577_vm15, %v2708_v17  ;;  %vm6593_vm15 = vmmov %vm6578_vm1 }
 0x9ef   : > { %v2723_v20 = vld [vmem:[#allocation4 + $0x20] sm:$0xff] }
 0x9f0   : > { %2676 = vrot.lane.b32.xlu1 %v2708_v17, %s6492_s0  ;;  %2651 = vrot.lane.b32.xlu2 %v2708_v17, %s5268_s23  ;;  %2693 = vst.msk [vmem:[#allocation5 + $0x48] sm:$0xff] %vm6578_vm1, %v2723_v20  ;;  %v2756_v8 = vld [vmem:[#allocation5 + $0x40] sm:$0xff] }
 0x9f1   : > { %2628 = vrot.lane.b32.xlu0 %v5950_v26, %s5271_s18 }
 0x9f7   : > { %v2757_v7 = vld [vmem:[#allocation5 + $0x48] sm:$0xff] }
 0x9f8   : > { %2728 = vrot.lane.b32.xlu1 %v2723_v20, %s5270_s26  ;;  %2624 = vrot.lane.b32.xlu2 %v5950_v26, %s5271_s18 }
 0x9f9   : > { %2714 = vrot.lane.b32.xlu0 %v2723_v20, %s5269_s15 }
 0xa00   : > { %2649 = vrot.lane.b32.xlu1 %v5950_v26, %s5268_s23  ;;  %2700 = vrot.lane.b32.xlu2 %v2723_v20, %s6490_s7 }
 0xa01   : > { %2626 = vrot.lane.b32.xlu0 %v2708_v17, %s5271_s18 }
 0xa08   : > { %2603 = vrot.lane.b32.xlu1 %v5950_v26, %s5272_s16  ;;  %2680 = vrot.lane.b32.xlu2 %v2723_v20, %s6492_s0 }
 0xa09   : > { %2655 = vrot.lane.b32.xlu0 %v2723_v20, %s5268_s23 }
 0xa10   : > { %2630 = vrot.lane.b32.xlu1 %v2723_v20, %s5271_s18  ;;  %2605 = vrot.lane.b32.xlu2 %v2723_v20, %s5272_s16 }
 0xa11   : > { %2599 = vrot.lane.b32.xlu0 %v5950_v26, %s5272_s16 }
 0xa18   : > { %2601 = vrot.lane.b32.xlu1 %v2708_v17, %s5272_s16  ;;  %2740 = vrot.lane.b32.xlu2 %v2723_v20, %s5273_s29 }
 0xa19   : > { %2738 = vrot.lane.b32.xlu0 %v2708_v17, %s5273_s29 }
 0xa20   : > { %2773 = vperm.xlu1 %4743, %v2444_v28   ;;  %2768 = vperm.xlu2 %4687, %v2443_v21  }
 0xa42   : > { %v2727_v23 = vpop.permute.xlu2 %2726 }
 0xa43   : > { %2732 = vst.msk [vmem:[#allocation5 + $0x70] sm:$0xff] %vm6579_vm10, %v2727_v23  ;;  %vm6594_vm10 = vmmov %vm6578_vm1 }
 0xa4a   : > { %v2652_v24 = vpop.permute.xlu2 %2651  ;;  %v2762_v60 = vld [vmem:[#allocation5 + $0x70] sm:$0xff] }
 0xa52   : > { %v2625_v0 = vpop.permute.xlu2 %2624 }
 0xa5a   : > { %v2713_v32 = vpop.permute.xlu1 %2712  ;;  %v2701_v33 = vpop.permute.xlu2 %2700 }
 0xa5b   : > { %v2718_v34 = vsel %vm6026_vm11, %v2713_v32, 0.0  ;;  %v2699_v35 = vpop.permute.xlu0 %2698  ;;  %v2705_v36 = vsel %vm6030_vm3, %v2701_v33, 0.0  ;;  %v2441_v32 = vld [vmem:[%s6598_s22 + $0x10] sm:$0xff]  ;;  %v2442_v33 = vld [vmem:[%s6598_s22 + $0x18] sm:$0xff] }
 0xa5c   : > { %2720 = vst.msk [vmem:[#allocation5 + $0x60] sm:$0xff] %vm6584_vm4, %v2718_v34  ;;  %v2704_v38 = vsel %vm6030_vm3, %v2699_v35, 0.0  ;;  %vm2607_vm4 = vcmask 72704  }
 0xa5d   : > { %2706 = vst.msk [vmem:[#allocation5 + $0x50] sm:$0xff] %vm6585_vm12, %v2704_v38  ;;  %vm6595_vm12 = vmmov %vm6578_vm1 }
 0xa5e   : > { %2707 = vst.msk [vmem:[#allocation5 + $0x58] sm:$0xff] %vm6586_vm2, %v2705_v36  ;;  %vm6596_vm2 = vmmov %vm6578_vm1 }
 0xa62   : > { %v2677_v39 = vpop.permute.xlu1 %2676  ;;  %v2681_v40 = vpop.permute.xlu2 %2680 }
 0xa63   : > { %v2682_v41 = vsel %vm6587_vm7, %v2675_v29, %v2677_v39  ;;  %v2629_v42 = vpop.permute.xlu0 %2628  ;;  %v2683_v44 = vsel %vm6588_vm5, %v2679_v25, %v2681_v40  ;;  %v2760_v62 = vld [vmem:[#allocation5 + $0x60] sm:$0xff]  ;;  %vm6597_vm7 = vmmov %vm6578_vm1  ;;  %v2439_v25 = vld [vmem:[%s6598_s22] sm:$0xff] }
 0xa64   : > { %v2686_v45 = vsel %vm6026_vm11, %v2682_v41, 0.0  ;;  %v2687_v46 = vsel %vm6026_vm11, %v2683_v44, 0.0  ;;  %v2758_v6 = vld [vmem:[#allocation5 + $0x50] sm:$0xff]  ;;  %vm6599_vm5 = vmmov %vm6578_vm1 }
 0xa65   : > { %2688 = vst.msk [vmem:[#allocation5 + $0x30] sm:$0xff] %vm6589_vm8, %v2686_v45  ;;  %v2759_v1 = vld [vmem:[#allocation5 + $0x58] sm:$0xff]  ;;  %vm6600_vm8 = vmmov %vm6578_vm1 }
 0xa66   : > { %2689 = vst.msk [vmem:[#allocation5 + $0x38] sm:$0xff] %vm6590_vm9, %v2687_v46  ;;  %vm6601_vm9 = vcmask 130048  }
 0xa6a   : > { %v2729_v47 = vpop.permute.xlu1 %2728  ;;  %v2606_v48 = vpop.permute.xlu2 %2605 }
 0xa6b   : > { %2733 = vst.msk [vmem:[#allocation5 + $0x78] sm:$0xff] %vm6591_vm13, %v2729_v47  ;;  %v2715_v49 = vpop.permute.xlu0 %2714  ;;  %vm6602_vm13 = vmmov %vm6601_vm9 }
 0xa6c   : > { %v2719_v50 = vsel %vm6026_vm11, %v2715_v49, 0.0  ;;  %v2754_v13 = vld [vmem:[#allocation5 + $0x30] sm:$0xff] }
 0xa6d   : > { %2721 = vst.msk [vmem:[#allocation5 + $0x68] sm:$0xff] %vm6592_vm6, %v2719_v50  ;;  %v2755_v27 = vld [vmem:[#allocation5 + $0x38] sm:$0xff]  ;;  %vm6604_vm6 = vmmov %vm6578_vm1 }
 0xa72   : > { %v2650_v51 = vpop.permute.xlu1 %2649  ;;  %v2741_v58 = vpop.permute.xlu2 %2740  ;;  %v2763_v52 = vld [vmem:[#allocation5 + $0x78] sm:$0xff] }
 0xa73   : > { %v2627_v53 = vpop.permute.xlu0 %2626  ;;  %v2658_v54 = vsel %vm2657_vm0, %v2650_v51, %v2652_v24  ;;  %v2745_v55 = vsel %vm6030_vm3, %v2741_v58, 0.0  ;;  %2782 = vmatpush.msra.mxu0 %v2763_v52 }
 0xa74   : > { %v2633_v56 = vsel %vm2632_vm14, %v2625_v0, %v2627_v53  ;;  %v2662_v59 = vsel %vm6030_vm3, %v2658_v54, 0.0  ;;  %2747 = vst.msk [vmem:[#allocation5 + $0x88] sm:$0xff] %vm6593_vm15, %v2745_v55  ;;  %v2761_v61 = vld [vmem:[#allocation5 + $0x68] sm:$0xff]  ;;  %v2440_v0 = vld [vmem:[%s6598_s22 + $0x8] sm:$0xff]  ;;  %vm6605_vm15 = vmmov %vm6578_vm1 }
 0xa75   : > { %2637 = vst.msk [vmem:[#allocation5 + $0x10] sm:$0xff] %vm6578_vm1, %v2633_v56  ;;  %2783 = vmatpush.msra.mxu0 %v2762_v60 }
 0xa76   : > { %2664 = vst.msk [vmem:[#allocation5 + $0x20] sm:$0xff] %vm6594_vm10, %v2662_v59  ;;  %vm6607_vm10 = vmmov %vm6578_vm1 }
 0xa77   : > { %2784 = vmatpush.msra.mxu0 %v2761_v61 }
 0xa79   : > { %2785 = vmatpush.msra.mxu0 %v2760_v62 }
 0xa7a   : > { %v2604_v63 = vpop.permute.xlu1 %2603  ;;  %v2769_v34 = vpop.permute.xlu2 %2768 }
 0xa7b   : > { %v2656_v2 = vpop.permute.xlu0 %2655  ;;  %v2609_v3 = vsel %vm2607_vm4, %v2604_v63, %v2606_v48  ;;  %2786 = vmatpush.msra.mxu0 %v2759_v1  ;;  %v2765_v4 = vld [vmem:[#allocation5 + $0x88] sm:$0xff]  ;;  %v2446_v48 = vld [vmem:[%s6603_s28 + $0x8] sm:$0xff] }
 0xa7c   : > { %v2659_v5 = vsel %vm2657_vm0, %v2654_v22, %v2656_v2  ;;  %v2613_v18 = vsel %vm6026_vm11, %v2609_v3, 0.0  ;;  %2819 = vmatpush.msra.mxu1 %v2765_v4  ;;  %v2750_v23 = vld [vmem:[#allocation5 + $0x10] sm:$0xff] }
 0xa7d   : > { %v2663_v19 = vsel %vm6030_vm3, %v2659_v5, 0.0  ;;  %2615 = vst.msk [vmem:[#allocation5 + $0x8] sm:$0xff] %vm6595_vm12, %v2613_v18  ;;  %2787 = vmatpush.msra.mxu0 %v2758_v6  ;;  %v2752_v15 = vld [vmem:[#allocation5 + $0x20] sm:$0xff] }
 0xa7e   : > { %2665 = vst.msk [vmem:[#allocation5 + $0x28] sm:$0xff] %vm6596_vm2, %v2663_v19 }
 0xa7f   : > { %2788 = vmatpush.msra.mxu0 %v2757_v7  ;;  %v2448_v7 = vld [vmem:[%s6606_s1 + $0x8] sm:$0xff] }
 0xa81   : > { %2789 = vmatpush.msra.mxu0 %v2756_v8  ;;  %v2447_v8 = vld [vmem:[%s6606_s1] sm:$0xff]  ;;  %s6501_s1 = smov 4  }
 0xa82   : > { %v2631_v10 = vpop.permute.xlu1 %2630 }
 0xa83   : > { %v2634_v11 = vsel %vm2632_vm14, %v2629_v42, %v2631_v10  ;;  %v2600_v12 = vpop.permute.xlu0 %2599  ;;  %2790 = vmatpush.msra.mxu0 %v2755_v27  ;;  %v2445_v10 = vld [vmem:[%s6603_s28] sm:$0xff] }
 0xa84   : > { %2638 = vst.msk [vmem:[#allocation5 + $0x18] sm:$0xff] %vm6597_vm7, %v2634_v11  ;;  %v2749_v24 = vld [vmem:[#allocation5 + $0x8] sm:$0xff] }
 0xa85   : > { %2791 = vmatpush.msra.mxu0 %v2754_v13  ;;  %v2753_v14 = vld [vmem:[#allocation5 + $0x28] sm:$0xff] }
 0xa87   : > { %2792 = vmatpush.msra.mxu0 %v2753_v14 }
 0xa89   : > { %2793 = vmatpush.msra.mxu0 %v2752_v15 }
 0xa8a   : > { %v2602_v16 = vpop.permute.xlu1 %2601 }
 0xa8b   : > { %v2608_v17 = vsel %vm2607_vm4, %v2600_v12, %v2602_v16  ;;  %v2739_v20 = vpop.permute.xlu0 %2738  ;;  %v2751_v28 = vld [vmem:[#allocation5 + $0x18] sm:$0xff] }
 0xa8c   : > { %v2612_v21 = vsel %vm6026_vm11, %v2608_v17, 0.0  ;;  %v2744_v22 = vsel %vm6030_vm3, %v2739_v20, 0.0  ;;  %2794 = vmatpush.msra.mxu0 %v2751_v28 }
 0xa8d   : > { %2614 = vst.msk [vmem:[#allocation5] sm:$0xff] %vm6599_vm5, %v2612_v21 }
 0xa8e   : > { %2746 = vst.msk [vmem:[#allocation5 + $0x80] sm:$0xff] %vm6600_vm8, %v2744_v22  ;;  %2795 = vmatpush.msra.mxu0 %v2750_v23 }
 0xa90   : > { %2796 = vmatpush.msra.mxu0 %v2749_v24 }
 0xa92   : > { %v2774_v41 = vpop.permute.xlu1 %2773 }
 0xa94   : > { %v2748_v29 = vld [vmem:[#allocation5] sm:$0xff] }
 0xa95   : > { %v2764_v57 = vld [vmem:[#allocation5 + $0x80] sm:$0xff]  ;;  %2797 = vmatpush.msra.mxu0 %v2748_v29 }
 0xa96   : > { %2820 = vmatpush.msra.mxu1 %v2764_v57  ;;  %2798 = vmatmul.f32.vlgmr.msra.gmra.mxu0 %v2439_v25 }
 0xa97   : > { %4424 = vmatmul.msk.f32.vlgmr.msra.gmra.mxu1 %vm6601_vm9, %v2440_v0 }
 0xa9e   : > { %2801 = vmatmul.f32.gmra.mxu0 %v2441_v32 }
 0xa9f   : > { %4425 = vmatmul.msk.f32.gmra.mxu1 %vm6602_vm13, %v2442_v33 }
 0xb13   : > { %v2799_v35 = vpop.f32.mrf.mxu0 }
 0xb14   : > { %v2800_v36 = vadd.f32 %v2799_v35, %v2769_v34  ;;  %v2822_v38 = vpop.f32.mrf.mxu1 }
 0xb16   : > { %v2823_v39 = vadd.f32 %v2822_v38, %v2800_v36 }
 0xb18   : > { %v2828_v40 = vsel %vm6604_vm6, %v2823_v39, 0.0 }
 0xb19   : > { %2829 = vadd.xlane.f32.xlu1 %v2828_v40 }
 0xb1b   : > { %v2802_v42 = vpop.f32.mrf.mxu0 }
 0xb1c   : > { %v2803_v44 = vadd.f32 %v2802_v42, %v2774_v41  ;;  %v2825_v45 = vpop.f32.mrf.mxu1 }
 0xb1e   : > { %v2826_v46 = vadd.f32 %v2825_v45, %v2803_v44 }
 0xb20   : > { %v2862_v47 = vsel %vm6605_vm15, %v2826_v46, 0.0 }
 0xb21   : > { %2863 = vadd.xlane.f32.xlu0 %v2862_v47 }
 0xb32   : > { %2903 = vperm.xlu1 %4743, %v2446_v48  }
 0xb3a   : > { %3020 = vrot.lane.b32.xlu1 %v5950_v26, %s5268_s23 }
 0xb8c   : > { %v2830_v49 = vpop.xlane.xlu1 %2829 }
 0xb8d   : > { %v2831_v50 = vrot.slane %v2830_v49, 4 }
 0xb8f   : > { %v2832_v51 = vadd.f32 %v2831_v50, %v2830_v49 }
 0xb91   : > { %v2833_v58 = vrot.slane %v2832_v51, 2 }
 0xb93   : > { %v2834_v52 = vadd.f32 %v2833_v58, %v2832_v51 }
 0xb94   : > { %v2864_v53 = vpop.xlane.xlu0 %2863 }
 0xb95   : > { %v2835_v54 = vrot.slane %v2834_v52, 1  ;;  %v2865_v55 = vrot.slane %v2864_v53, 4 }
 0xb97   : > { %v2836_v56 = vadd.f32 %v2835_v54, %v2834_v52  ;;  %v2866_v59 = vadd.f32 %v2865_v55, %v2864_v53 }
 0xb99   : > { %v2837_v60 = vmul.f32 0.001953125, %v2836_v56  ;;  %v2867_v61 = vrot.slane %v2866_v59, 2 }
 0xb9b   : > { %v2868_v62 = vadd.f32 %v2867_v61, %v2866_v59  ;;  %v2838_v63 = vsub.f32 %v2823_v39, %v2837_v60 }
 0xb9d   : > { %v2869_v1 = vrot.slane %v2868_v62, 1  ;;  %v2839_v2 = vmul.f32 %v2838_v63, %v2838_v63 }
 0xb9f   : > { %v2870_v3 = vadd.f32 %v2869_v1, %v2868_v62  ;;  %v2840_v4 = vsel %vm6578_vm1, %v2839_v2, 0.0 }
 0xba0   : > { %2841 = vadd.xlane.f32.xlu0 %v2840_v4 }
 0xba1   : > { %v2871_v5 = vmul.f32 0.001953125, %v2870_v3 }
 0xba3   : > { %v2872_v18 = vsub.f32 %v2826_v46, %v2871_v5 }
 0xba4   : > { %v2904_v54 = vpop.permute.xlu1 %2903 }
 0xba5   : > { %v2873_v6 = vmul.f32 %v2872_v18, %v2872_v18 }
 0xba7   : > { %v2874_v19 = vsel %vm6607_vm10, %v2873_v6, 0.0 }
 0xba8   : > { %2875 = vadd.xlane.f32.xlu2 %v2874_v19 }
 0xbb4   : > { %2915 = vperm.xlu0 %4676, %v2448_v7  }
 0xbbc   : > { %2910 = vperm.xlu0 %4676, %v2447_v8  }
 0xbc0   : > { %2898 = vperm.xlu2 %4687, %v2445_v10  }
 0xbc4   : > { %3040 = vrot.lane.b32.xlu0 %v5950_v26, %s6492_s0 }
 0xbc8   : > { %3044 = vrot.lane.b32.xlu2 %v5950_v26, %s6492_s0 }
 0xc13   : > { %v2842_v27 = vpop.xlane.xlu0 %2841 }
 0xc14   : > { %v2843_v11 = vrot.slane %v2842_v27, 4 }
 0xc16   : > { %v2844_v12 = vadd.f32 %v2843_v11, %v2842_v27 }
 0xc18   : > { %v2845_v13 = vrot.slane %v2844_v12, 2 }
 0xc1a   : > { %v2846_v14 = vadd.f32 %v2845_v13, %v2844_v12 }
 0xc1b   : > { %v2876_v15 = vpop.xlane.xlu2 %2875 }
 0xc1c   : > { %v2847_v16 = vrot.slane %v2846_v14, 1  ;;  %v2877_v17 = vrot.slane %v2876_v15, 4 }
 0xc1e   : > { %v2848_v20 = vadd.f32 %v2847_v16, %v2846_v14  ;;  %v2878_v28 = vadd.f32 %v2877_v17, %v2876_v15 }
 0xc20   : > { %v2849_v21 = vmul.f32 0.001953125, %v2848_v20  ;;  %v2879_v22 = vrot.slane %v2878_v28, 2 }
 0xc22   : > { %v2850_v23 = vadd.f32 1e-05, %v2849_v21  ;;  %v2880_v24 = vadd.f32 %v2879_v22, %v2878_v28 }
 0xc23   : > { %v2899_v45 = vpop.permute.xlu2 %2898 }
 0xc24   : > { %4776 = vrsqrt.f32 %v2850_v23  ;;  %v2881_v25 = vrot.slane %v2880_v24, 1  ;;  %vm2857_vm2 = vweird.f32 %v2850_v23 }
 0xc26   : > { %v2882_v29 = vadd.f32 %v2881_v25, %v2880_v24  ;;  %v2916_v35 = vpop.permute.xlu0 %2915  ;;  %v6110_v24 = vld [vmem:[#allocation4] sm:$0xff]  ;;  %v2453_v25 = vld [vmem:[#allocation22] sm:$0xff] }
 0xc28   : > { %v2883_v0 = vmul.f32 0.001953125, %v2882_v29  ;;  %v2454_v29 = vld [vmem:[#allocation22 + $0x8] sm:$0xff] }
 0xc2a   : > { %v4777_v57 = vpop.eup %4776  ;;  %v2884_v26 = vadd.f32 1e-05, %v2883_v0 }
 0xc2b   : > { %v2852_v32 = vmul.f32 %v4777_v57, %v2850_v23  ;;  %vm2858_vm12 = vweird.f32 %v4777_v57  ;;  %v3045_v0 = vpop.permute.xlu2 %3044 }
 0xc2c   : > { %4778 = vrsqrt.f32 %v2884_v26  ;;  %vm2859_vm7 = vmor %vm2857_vm2, %vm2858_vm12  ;;  %vm2891_vm8 = vweird.f32 %v2884_v26  ;;  %vm6608_vm12 = vcmask 523264  }
 0xc2d   : > { %v2853_v33 = vmul.f32 %v4777_v57, %v2852_v32 }
 0xc2e   : > { %v2911_v49 = vpop.permute.xlu0 %2910 }
 0xc2f   : > { %v2854_v34 = vmul.f32 0.5, %v2853_v33 }
 0xc31   : > { %v2855_v36 = vsub.f32 1.5, %v2854_v34 }
 0xc32   : > { %v4779_v38 = vpop.eup %4778 }
 0xc33   : > { %v2886_v39 = vmul.f32 %v4779_v38, %v2884_v26  ;;  %v2856_v40 = vmul.f32 %v4777_v57, %v2855_v36  ;;  %vm2892_vm5 = vweird.f32 %v4779_v38  ;;  %v3021_v36 = vpop.permute.xlu1 %3020 }
 0xc34   : > { %vm2893_vm9 = vmor %vm2891_vm8, %vm2892_vm5 }
 0xc35   : > { %v2860_v41 = vsel %vm2859_vm7, %v4777_v57, %v2856_v40  ;;  %v2887_v42 = vmul.f32 %v4779_v38, %v2886_v39  ;;  %vm6609_vm8 = vmmov %vm6608_vm12 }
 0xc36   : > { %v2861_v44 = vmul.f32 %v2860_v41, %v2838_v63  ;;  %v3041_v32 = vpop.permute.xlu0 %3040 }
 0xc37   : > { %v2888_v46 = vmul.f32 0.5, %v2887_v42 }
 0xc38   : > { %v2906_v47 = vmul.f32 %v2899_v45, %v2861_v44 }
 0xc39   : > { %v2889_v48 = vsub.f32 1.5, %v2888_v46 }
 0xc3a   : > { %v2918_v50 = vadd.f32 %v2911_v49, %v2906_v47 }
 0xc3b   : > { %v2890_v51 = vmul.f32 %v4779_v38, %v2889_v48 }
 0xc3c   : > { %v4426_v58 = vmul.f32 -1.442695, %v2918_v50 }
 0xc3d   : > { %v2894_v52 = vsel %vm2893_vm9, %v4779_v38, %v2890_v51  ;;  %vm6610_vm9 = vmmov %vm6609_vm8 }
 0xc3e   : > { %v2895_v53 = vmul.f32 %v2894_v52, %v2872_v18  ;;  %4780 = vpow2.f32 %v4426_v58 }
 0xc40   : > { %v2907_v55 = vmul.f32 %v2904_v54, %v2895_v53 }
 0xc42   : > { %v2919_v56 = vadd.f32 %v2916_v35, %v2907_v55 }
 0xc44   : > { %v4781_v59 = vpop.eup %4780  ;;  %v4427_v60 = vmul.f32 -1.442695, %v2919_v56 }
 0xc45   : > { %v2926_v61 = vadd.f32 1.0, %v4781_v59 }
 0xc46   : > { %4782 = vpow2.f32 %v4427_v60 }
 0xc47   : > { %4784 = vrcp.f32 %v2926_v61  ;;  %v2939_v4 = vand.u32 2147483648, %v2926_v61  ;;  %v2937_v6 = vand.u32 2147483647, %v2926_v61  ;;  %vm2933_vm6 = vweird.f32 %v2926_v61 }
 0xc49   : > { %v2940_v7 = vor.u32 1.1754944e-38, %v2939_v4  ;;  %vm2938_vm1 = vcmp.eq.f32.partialorder %v2937_v6, 8.507059e+37 }
 0xc4c   : > { %v4783_v62 = vpop.eup %4782 }
 0xc4d   : > { %v4785_v63 = vpop.eup %4784  ;;  %v2927_v1 = vadd.f32 1.0, %v4783_v62 }
 0xc4e   : > { %v2929_v2 = vmul.f32 %v4785_v63, %v2926_v61  ;;  %vm2934_vm13 = vweird.f32 %v4785_v63 }
 0xc4f   : > { %4786 = vrcp.f32 %v2927_v1  ;;  %vm2935_vm15 = vmor %vm2933_vm6, %vm2934_vm13  ;;  %v2954_v13 = vand.u32 2147483648, %v2927_v1  ;;  %v2952_v15 = vand.u32 2147483647, %v2927_v1  ;;  %vm2948_vm2 = vweird.f32 %v2927_v1 }
 0xc50   : > { %v2930_v3 = vsub.f32 1.0, %v2929_v2  ;;  %vm6611_vm13 = vmmov %vm6609_vm8 }
 0xc51   : > { %v2955_v17 = vor.u32 1.1754944e-38, %v2954_v13  ;;  %vm2953_vm5 = vcmp.eq.f32.partialorder %v2952_v15, 8.507059e+37  ;;  %vm6612_vm6 = vmmov %vm6609_vm8 }
 0xc52   : > { %v2931_v5 = vmul.f32 %v4785_v63, %v2930_v3 }
 0xc54   : > { %v2932_v18 = vadd.f32 %v4785_v63, %v2931_v5 }
 0xc55   : > { %v4787_v19 = vpop.eup %4786 }
 0xc56   : > { %v2944_v8 = vmul.f32 %v4787_v19, %v2927_v1  ;;  %v2936_v10 = vsel %vm2935_vm15, %v4785_v63, %v2932_v18  ;;  %vm2949_vm10 = vweird.f32 %v4787_v19  ;;  %vm6613_vm15 = vcmask 7168  }
 0xc57   : > { %v2941_v27 = vsel %vm2938_vm1, %v2940_v7, %v2936_v10  ;;  %vm2950_vm7 = vmor %vm2948_vm2, %vm2949_vm10 }
 0xc58   : > { %v2945_v11 = vsub.f32 1.0, %v2944_v8  ;;  %v2958_v12 = vmul.f32 %v2941_v27, %v2918_v50  ;;  %vm6614_vm1 = vmmov %vm6612_vm6 }
 0xc59   : > { %vm6615_vm10 = vmmov %vm6614_vm1 }
 0xc5a   : > { %v2946_v14 = vmul.f32 %v4787_v19, %v2945_v11  ;;  %2960 = vst.msk [vmem:[#allocation4 + $0x8] sm:$0xff] %vm6608_vm12, %v2958_v12  ;;  %vm6616_vm12 = vmmov %vm6614_vm1 }
 0xc5b   : > { %vm6617_vm2 = vmmov %vm6614_vm1 }
 0xc5c   : > { %v2947_v16 = vadd.f32 %v4787_v19, %v2946_v14 }
 0xc5e   : > { %v2951_v20 = vsel %vm2950_vm7, %v4787_v19, %v2947_v16  ;;  %vm6618_vm7 = vmmov %vm6614_vm1 }
 0xc5f   : > { %v2956_v28 = vsel %vm2953_vm5, %v2955_v17, %v2951_v20  ;;  %vm6619_vm5 = vmmov %vm6614_vm1 }
 0xc60   : > { %v2959_v21 = vmul.f32 %v2956_v28, %v2919_v56 }
 0xc61   : > { %v3088_v22 = vld [vmem:[#allocation4 + $0x8] sm:$0xff] }
 0xc62   : > { %2961 = vst.msk [vmem:[#allocation4 + $0x20] sm:$0xff] %vm6609_vm8, %v2959_v21  ;;  %3092 = vrot.lane.b32.xlu1 %v3088_v22, %s5270_s26  ;;  %3078 = vrot.lane.b32.xlu2 %v3088_v22, %s5269_s15  ;;  %vm6620_vm8 = vmmov %vm6614_vm1 }
 0xc63   : > { %3064 = vrot.lane.b32.xlu0 %v3088_v22, %s6490_s7  ;;  %3058 = vst.msk [vmem:[#allocation5 + $0x40] sm:$0xff] %vm6610_vm9, %v3088_v22  ;;  %vm6621_vm9 = vmmov %vm6614_vm1 }
 0xc69   : > { %v3089_v23 = vld [vmem:[#allocation4 + $0x20] sm:$0xff] }
 0xc6a   : > { %3042 = vrot.lane.b32.xlu2 %v3088_v22, %s6492_s0  ;;  %3018 = vrot.lane.b32.xlu1 %v3088_v22, %s5268_s23  ;;  %3059 = vst.msk [vmem:[#allocation5 + $0x48] sm:$0xff] %vm6611_vm13, %v3089_v23  ;;  %vm6622_vm13 = vmmov %vm6614_vm1  ;;  %v3122_v8 = vld [vmem:[#allocation5 + $0x40] sm:$0xff] }
 0xc6b   : > { %2998 = vrot.lane.b32.xlu0 %v6110_v24, %s5271_s18 }
 0xc71   : > { %v3123_v7 = vld [vmem:[#allocation5 + $0x48] sm:$0xff] }
 0xc72   : > { %3104 = vrot.lane.b32.xlu1 %v3088_v22, %s5273_s29  ;;  %3094 = vrot.lane.b32.xlu2 %v3089_v23, %s5270_s26 }
 0xc73   : > { %3080 = vrot.lane.b32.xlu0 %v3089_v23, %s5269_s15  ;;  %s6651_s15 = sld [smem:[#allocation47_spill]] }
 0xc7a   : > { %3016 = vrot.lane.b32.xlu2 %v6110_v24, %s5268_s23  ;;  %3066 = vrot.lane.b32.xlu1 %v3089_v23, %s6490_s7 }
 0xc7b   : > { %2994 = vrot.lane.b32.xlu0 %v6110_v24, %s5271_s18 }
 0xc82   : > { %2996 = vrot.lane.b32.xlu2 %v3088_v22, %s5271_s18  ;;  %3046 = vrot.lane.b32.xlu1 %v3089_v23, %s6492_s0 }
 0xc83   : > { %3022 = vrot.lane.b32.xlu0 %v3089_v23, %s5268_s23  ;;  %s6644_s23 = sld [smem:[#allocation46_spill]] }
 0xc8a   : > { %3106 = vrot.lane.b32.xlu1 %v3089_v23, %s5273_s29  ;;  %3000 = vrot.lane.b32.xlu2 %v3089_v23, %s5271_s18  ;;  %s6503_s18 = smov 3  }
 0xc8b   : > { %2974 = vrot.lane.b32.xlu0 %v6110_v24, %s5272_s16 }
 0xc92   : > { %2970 = vrot.lane.b32.xlu1 %v6110_v24, %s5272_s16  ;;  %2976 = vrot.lane.b32.xlu2 %v3089_v23, %s5272_s16 }
 0xc93   : > { %2972 = vrot.lane.b32.xlu0 %v3088_v22, %s5272_s16  ;;  %s6495_s16 = smov 124  }
 0xc9a   : > { %3134 = vperm.xlu1 %4743, %v2453_v25   ;;  %3139 = vperm.xlu2 %4687, %v2454_v29   ;;  %v2450_v25 = vld [vmem:[%s6626_s8 + $0x8] sm:$0xff] }
 0xcbc   : > { %v3079_v57 = vpop.permute.xlu2 %3078 }
 0xcbd   : > { %v3084_v26 = vsel %vm6026_vm11, %v3079_v57, 0.0 }
 0xcbe   : > { %3086 = vst.msk [vmem:[#allocation5 + $0x60] sm:$0xff] %vm6612_vm6, %v3084_v26  ;;  %vm6623_vm6 = vmmov %vm6614_vm1 }
 0xcc4   : > { %v3043_v33 = vpop.permute.xlu2 %3042 }
 0xcc5   : > { %v3048_v34 = vsel %vm6613_vm15, %v3041_v32, %v3043_v33  ;;  %v3126_v63 = vld [vmem:[#allocation5 + $0x60] sm:$0xff]  ;;  %v2449_v32 = vld [vmem:[%s6626_s8] sm:$0xff]  ;;  %v2452_v33 = vld [vmem:[%s6626_s8 + $0x18] sm:$0xff] }
 0xcc6   : > { %v3052_v35 = vsel %vm6026_vm11, %v3048_v34, 0.0 }
 0xcc7   : > { %3054 = vst.msk [vmem:[#allocation5 + $0x30] sm:$0xff] %vm6614_vm1, %v3052_v35 }
 0xccc   : > { %v3095_v38 = vpop.permute.xlu2 %3094 }
 0xccd   : > { %3099 = vst.msk [vmem:[#allocation5 + $0x78] sm:$0xff] %vm6615_vm10, %v3095_v38 }
 0xcce   : > { %v3120_v16 = vld [vmem:[#allocation5 + $0x30] sm:$0xff] }
 0xcd4   : > { %v3017_v39 = vpop.permute.xlu2 %3016  ;;  %v3093_v40 = vpop.permute.xlu1 %3092  ;;  %v3129_v41 = vld [vmem:[#allocation5 + $0x78] sm:$0xff] }
 0xcd5   : > { %v3065_v42 = vpop.permute.xlu0 %3064  ;;  %3098 = vst.msk [vmem:[#allocation5 + $0x70] sm:$0xff] %vm6616_vm12, %v3093_v40  ;;  %3148 = vmatpush.msrb.mxu1 %v3129_v41  ;;  %vm6629_vm12 = vcmask 130048  }
 0xcd6   : > { %v3070_v44 = vsel %vm6030_vm3, %v3065_v42, 0.0 }
 0xcd7   : > { %3072 = vst.msk [vmem:[#allocation5 + $0x50] sm:$0xff] %vm6617_vm2, %v3070_v44 }
 0xcdc   : > { %v2997_v45 = vpop.permute.xlu2 %2996  ;;  %v3019_v46 = vpop.permute.xlu1 %3018  ;;  %v3128_v47 = vld [vmem:[#allocation5 + $0x70] sm:$0xff] }
 0xcdd   : > { %v2999_v48 = vpop.permute.xlu0 %2998  ;;  %v3024_v49 = vsel %vm2657_vm0, %v3017_v39, %v3019_v46  ;;  %3149 = vmatpush.msrb.mxu1 %v3128_v47 }
 0xcde   : > { %v3028_v50 = vsel %vm6030_vm3, %v3024_v49, 0.0  ;;  %v3124_v19 = vld [vmem:[#allocation5 + $0x50] sm:$0xff] }
 0xcdf   : > { %3030 = vst.msk [vmem:[#allocation5 + $0x20] sm:$0xff] %vm6618_vm7, %v3028_v50 }
 0xce4   : > { %v3001_v51 = vpop.permute.xlu2 %3000  ;;  %v3105_v58 = vpop.permute.xlu1 %3104 }
 0xce5   : > { %v3081_v52 = vpop.permute.xlu0 %3080  ;;  %v3003_v53 = vsel %vm2632_vm14, %v2999_v48, %v3001_v51  ;;  %v3110_v54 = vsel %vm6030_vm3, %v3105_v58, 0.0 }
 0xce6   : > { %v3085_v55 = vsel %vm6026_vm11, %v3081_v52, 0.0  ;;  %3007 = vst.msk [vmem:[#allocation5 + $0x18] sm:$0xff] %vm6619_vm5, %v3003_v53  ;;  %v3118_v28 = vld [vmem:[#allocation5 + $0x20] sm:$0xff] }
 0xce7   : > { %3087 = vst.msk [vmem:[#allocation5 + $0x68] sm:$0xff] %vm6620_vm8, %v3085_v55 }
 0xce8   : > { %3112 = vst.msk [vmem:[#allocation5 + $0x80] sm:$0xff] %vm6621_vm9, %v3110_v54 }
 0xcec   : > { %v3067_v56 = vpop.permute.xlu1 %3066  ;;  %v2977_v27 = vpop.permute.xlu2 %2976 }
 0xced   : > { %v2995_v59 = vpop.permute.xlu0 %2994  ;;  %v3071_v60 = vsel %vm6030_vm3, %v3067_v56, 0.0  ;;  %v3117_v23 = vld [vmem:[#allocation5 + $0x18] sm:$0xff] }
 0xcee   : > { %v3002_v61 = vsel %vm2632_vm14, %v2995_v59, %v2997_v45  ;;  %3073 = vst.msk [vmem:[#allocation5 + $0x58] sm:$0xff] %vm6622_vm13, %v3071_v60  ;;  %v3127_v62 = vld [vmem:[#allocation5 + $0x68] sm:$0xff]  ;;  %vm6624_vm14 = vmmov %vm6614_vm1 }
 0xcef   : > { %3006 = vst.msk [vmem:[#allocation5 + $0x10] sm:$0xff] %vm6623_vm6, %v3002_v61  ;;  %3150 = vmatpush.msrb.mxu1 %v3127_v62 }
 0xcf1   : > { %3151 = vmatpush.msrb.mxu1 %v3126_v63 }
 0xcf4   : > { %v3047_v1 = vpop.permute.xlu1 %3046  ;;  %v3140_v42 = vpop.permute.xlu2 %3139 }
 0xcf5   : > { %v3023_v2 = vpop.permute.xlu0 %3022  ;;  %v3049_v3 = vsel %vm6613_vm15, %v3045_v0, %v3047_v1  ;;  %v3125_v4 = vld [vmem:[#allocation5 + $0x58] sm:$0xff]  ;;  %v3130_v0 = vld [vmem:[#allocation5 + $0x80] sm:$0xff] }
 0xcf6   : > { %v3025_v5 = vsel %vm2657_vm0, %v3021_v36, %v3023_v2  ;;  %v3053_v6 = vsel %vm6026_vm11, %v3049_v3, 0.0  ;;  %3152 = vmatpush.msrb.mxu1 %v3125_v4  ;;  %vm6625_vm0 = vmmov %vm6614_vm1  ;;  %v3116_v57 = vld [vmem:[#allocation5 + $0x10] sm:$0xff] }
 0xcf7   : > { %v3029_v18 = vsel %vm6030_vm3, %v3025_v5, 0.0  ;;  %3055 = vst.msk [vmem:[#allocation5 + $0x38] sm:$0xff] %vm6624_vm14, %v3053_v6  ;;  %vm6627_vm10 = vmmov %vm6625_vm0  ;;  %v3207_v6 = vld [vmem:[%s6644_s23 + $0x38] sm:$0xff] }
 0xcf8   : > { %3031 = vst.msk [vmem:[#allocation5 + $0x28] sm:$0xff] %vm6614_vm1, %v3029_v18  ;;  %3153 = vmatpush.msrb.mxu1 %v3124_v19  ;;  %vm6632_vm2 = vmmov %vm6625_vm0  ;;  %v3206_v18 = vld [vmem:[%s6644_s23 + $0x30] sm:$0xff]  ;;  %3355 = vmatpush.msrb.mxu0 %v3207_v6 }
 0xcf9   : > { %vm6633_vm7 = vmmov %vm6625_vm0 }
 0xcfa   : > { %3154 = vmatpush.msrb.mxu1 %v3123_v7  ;;  %vm6634_vm5 = vmmov %vm6625_vm0  ;;  %v3205_v7 = vld [vmem:[%s6644_s23 + $0x28] sm:$0xff]  ;;  %3356 = vmatpush.msrb.mxu0 %v3206_v18 }
 0xcfb   : > { %vm6635_vm8 = vmmov %vm6625_vm0 }
 0xcfc   : > { %3155 = vmatpush.msrb.mxu1 %v3122_v8  ;;  %v3107_v10 = vpop.permute.xlu1 %3106  ;;  %vm6636_vm9 = vmmov %vm6625_vm0  ;;  %3357 = vmatpush.msrb.mxu0 %v3205_v7 }
 0xcfd   : > { %v2975_v11 = vpop.permute.xlu0 %2974  ;;  %v3111_v12 = vsel %vm6030_vm3, %v3107_v10, 0.0  ;;  %vm6628_vm3 = vmmov %vm6625_vm0  ;;  %v3204_v10 = vld [vmem:[%s6644_s23 + $0x20] sm:$0xff] }
 0xcfe   : > { %v2979_v13 = vsel %vm2607_vm4, %v2975_v11, %v2977_v27  ;;  %3113 = vst.msk [vmem:[#allocation5 + $0x88] sm:$0xff] %vm6625_vm0, %v3111_v12  ;;  %v3121_v14 = vld [vmem:[#allocation5 + $0x38] sm:$0xff]  ;;  %vm6637_vm13 = vmmov %vm6625_vm0  ;;  %3358 = vmatpush.msrb.mxu0 %v3204_v10 }
 0xcff   : > { %v2983_v15 = vsel %vm6026_vm11, %v2979_v13, 0.0  ;;  %3156 = vmatpush.msrb.mxu1 %v3121_v14  ;;  %v3119_v17 = vld [vmem:[#allocation5 + $0x28] sm:$0xff]  ;;  %vm6638_vm6 = vmmov %vm6625_vm0 }
 0xd00   : > { %2985 = vst.msk [vmem:[#allocation5 + $0x8] sm:$0xff] %vm6627_vm10, %v2983_v15  ;;  %vm6639_vm15 = vmmov %vm6625_vm0  ;;  %v3203_v13 = vld [vmem:[%s6644_s23 + $0x18] sm:$0xff]  ;;  %v3202_v15 = vld [vmem:[%s6644_s23 + $0x10] sm:$0xff] }
 0xd01   : > { %3157 = vmatpush.msrb.mxu1 %v3120_v16  ;;  %vm6640_vm14 = vmmov %vm6625_vm0  ;;  %3359 = vmatpush.msrb.mxu0 %v3203_v13 }
 0xd02   : > { %vm6641_vm1 = vmmov %vm6625_vm0 }
 0xd03   : > { %3158 = vmatpush.msrb.mxu1 %v3119_v17  ;;  %vm6642_vm10 = vmmov %vm6625_vm0  ;;  %v3201_v17 = vld [vmem:[%s6644_s23 + $0x8] sm:$0xff]  ;;  %3360 = vmatpush.msrb.mxu0 %v3202_v15 }
 0xd04   : > { %v2971_v20 = vpop.permute.xlu1 %2970 }
 0xd05   : > { %v2973_v31 = vpop.permute.xlu0 %2972  ;;  %3159 = vmatpush.msrb.mxu1 %v3118_v28  ;;  %v3131_v21 = vld [vmem:[#allocation5 + $0x88] sm:$0xff]  ;;  %3361 = vmatpush.msrb.mxu0 %v3201_v17 }
 0xd06   : > { %v2978_v22 = vsel %vm2607_vm4, %v2971_v20, %v2973_v31  ;;  %3185 = vmatpush.msrb.mxu2 %v3131_v21  ;;  %vm6630_vm4 = vmmov %vm6629_vm12 }
 0xd07   : > { %v2982_v29 = vsel %vm6026_vm11, %v2978_v22, 0.0  ;;  %3160 = vmatpush.msrb.mxu1 %v3117_v23  ;;  %v3115_v26 = vld [vmem:[#allocation5 + $0x8] sm:$0xff]  ;;  %vm6631_vm11 = vmmov %vm6625_vm0  ;;  %v3196_v23 = vld [vmem:[#allocation24] sm:$0xff] }
 0xd08   : > { %2984 = vst.msk [vmem:[#allocation5] sm:$0xff] %vm6628_vm3, %v2982_v29  ;;  %3186 = vmatpush.msrb.mxu2 %v3130_v0  ;;  %vm6643_vm3 = vmmov %vm6625_vm0  ;;  %v3197_v29 = vld [vmem:[#allocation24 + $0x8] sm:$0xff]  ;;  %v3200_v0 = vld [vmem:[%s6644_s23] sm:$0xff] }
 0xd09   : > { %3161 = vmatpush.msrb.mxu1 %v3116_v57  ;;  %4428 = vmatmul.msk.f32.vlgmr.msrb.gmra.mxu2 %vm6629_vm12, %v2450_v25  ;;  %vm6645_vm12 = vmmov %vm6625_vm0 }
 0xd0a   : > { %3362 = vmatpush.msrb.mxu0 %v3200_v0 }
 0xd0b   : > { %3162 = vmatpush.msrb.mxu1 %v3115_v26 }
 0xd0c   : > { %v3135_v36 = vpop.permute.xlu1 %3134 }
 0xd0f   : > { %v3114_v34 = vld [vmem:[#allocation5] sm:$0xff] }
 0xd10   : > { %3163 = vmatpush.msrb.mxu1 %v3114_v34 }
 0xd11   : > { %3164 = vmatmul.f32.vlgmr.msrb.gmra.mxu1 %v2449_v32  ;;  %4429 = vmatmul.msk.f32.gmra.mxu2 %vm6630_vm4, %v2452_v33  ;;  %vm6646_vm4 = vmmov %vm6625_vm0 }
 0xd19   : > { %3167 = vmatmul.f32.gmra.mxu1 %v2451_v30 }
 0xd8c   : > { %v3188_v35 = vpop.f32.mrf.mxu2 }
 0xd8e   : > { %v3165_v38 = vpop.f32.mrf.mxu1 }
 0xd8f   : > { %v3166_v39 = vadd.f32 %v3165_v38, %v3135_v36 }
 0xd91   : > { %v3189_v40 = vadd.f32 %v3188_v35, %v3166_v39 }
 0xd93   : > { %v3194_v41 = vadd.f32 %v3189_v40, %v5970_v37  ;;  %v3385_v40 = vld [vmem:[%s6651_s15 + $0x8] sm:$0xff] }
 0xd94   : > { %v3191_v45 = vpop.f32.mrf.mxu2 }
 0xd95   : > { %3208 = vst.msk [vmem:[#allocation4 + $0x8] sm:$0xff] %vm6631_vm11, %v3194_v41  ;;  %vm6647_vm11 = vmmov %vm6625_vm0 }
 0xd96   : > { %v3168_v44 = vpop.f32.mrf.mxu1 }
 0xd97   : > { %v3169_v46 = vadd.f32 %v3168_v44, %v3140_v42 }
 0xd99   : > { %v3192_v47 = vadd.f32 %v3191_v45, %v3169_v46 }
 0xd9b   : > { %v3195_v48 = vadd.f32 %v3192_v47, %v5974_v43 }
 0xd9c   : > { %v3210_v49 = vld [vmem:[#allocation4 + $0x8] sm:$0xff] }
 0xd9d   : > { %3209 = vst.msk [vmem:[#allocation4 + $0x20] sm:$0xff] %vm6632_vm2, %v3195_v48  ;;  %vm6648_vm2 = vmmov %vm6625_vm0 }
 0xd9e   : > { %3250 = vst.msk [vmem:[#allocation4 + $0x8] sm:$0xff] %vm6633_vm7, %v5970_v37  ;;  %v3198_v37 = vld [vmem:[#allocation25] sm:$0xff]  ;;  %vm6649_vm7 = vmmov %vm6625_vm0 }
 0xd9f   : > { %3212 = vst.msk [vmem:[#allocation5] sm:$0xff] %vm6634_vm5, %v3210_v49  ;;  %vm6650_vm5 = vmmov %vm6625_vm0 }
 0xda4   : > { %v3211_v50 = vld [vmem:[#allocation4 + $0x20] sm:$0xff] }
 0xda5   : > { %v3280_v51 = vld [vmem:[#allocation4 + $0x8] sm:$0xff]  ;;  %3251 = vst.msk [vmem:[#allocation4 + $0x20] sm:$0xff] %vm6635_vm8, %v5974_v43  ;;  %v3199_v43 = vld [vmem:[#allocation25 + $0x8] sm:$0xff]  ;;  %vm6652_vm8 = vmmov %vm6625_vm0 }
 0xda6   : > { %3284 = vrot.lane.b32.xlu2 %v3280_v51, %s5273_s29  ;;  %3213 = vst.msk [vmem:[#allocation5 + $0x8] sm:$0xff] %vm6636_vm9, %v3211_v50  ;;  %v3292_v25 = vld [vmem:[#allocation5] sm:$0xff]  ;;  %vm6654_vm9 = vmmov %vm6625_vm0 }
 0xda7   : > { %3254 = vst.msk [vmem:[#allocation5 + $0x40] sm:$0xff] %vm6637_vm13, %v3280_v51  ;;  %vm6655_vm13 = vcmask 130048  }
 0xdac   : > { %v3281_v58 = vld [vmem:[#allocation4 + $0x20] sm:$0xff] }
 0xdad   : > { %3286 = vrot.lane.b32.xlu0 %v3281_v58, %s5273_s29  ;;  %3274 = vrot.lane.b32.xlu1 %v3281_v58, %s5270_s26  ;;  %3255 = vst.msk [vmem:[#allocation5 + $0x48] sm:$0xff] %vm6638_vm6, %v3281_v58  ;;  %v3293_v22 = vld [vmem:[#allocation5 + $0x8] sm:$0xff]  ;;  %vm6656_vm6 = vmmov %vm6655_vm13 }
 0xdae   : > { %3262 = vrot.lane.b32.xlu2 %v3281_v58, %s6490_s7  ;;  %v3300_v12 = vld [vmem:[#allocation5 + $0x40] sm:$0xff] }
 0xdb4   : > { %v3301_v8 = vld [vmem:[#allocation5 + $0x48] sm:$0xff] }
 0xdb5   : > { %3272 = vrot.lane.b32.xlu0 %v3280_v51, %s5270_s26  ;;  %3260 = vrot.lane.b32.xlu1 %v3280_v51, %s6490_s7 }
 0xdb6   : > { %3242 = vrot.lane.b32.xlu2 %v3210_v49, %s5273_s29 }
 0xdbd   : > { %3244 = vrot.lane.b32.xlu0 %v3211_v50, %s5273_s29  ;;  %3232 = vrot.lane.b32.xlu1 %v3211_v50, %s5270_s26  ;;  %s6488_s29 = smov 125  }
 0xdbe   : > { %3220 = vrot.lane.b32.xlu2 %v3211_v50, %s6490_s7 }
 0xdc5   : > { %3230 = vrot.lane.b32.xlu0 %v3210_v49, %s5270_s26  ;;  %3218 = vrot.lane.b32.xlu1 %v3210_v49, %s6490_s7  ;;  %s6653_s26 = sld [smem:[#allocation48_spill]] }
 0xdc6   : > { %3333 = vperm.xlu2 %4687, %v3198_v37  }
 0xdcb   : > { %v3386_v41 = vld [vmem:[%s6653_s26] sm:$0xff] }
 0xdcd   : > { %3338 = vperm.xlu0 %4676, %v3199_v43  }
 0xe00   : > { %v3285_v52 = vpop.permute.xlu2 %3284 }
 0xe01   : > { %3290 = vst.msk [vmem:[#allocation5 + $0x70] sm:$0xff] %vm6639_vm15, %v3285_v52  ;;  %vm6657_vm15 = vmmov %vm6656_vm6 }
 0xe08   : > { %v3263_v53 = vpop.permute.xlu2 %3262  ;;  %v3306_v63 = vld [vmem:[#allocation5 + $0x70] sm:$0xff] }
 0xe09   : > { %3267 = vst.msk [vmem:[#allocation5 + $0x58] sm:$0xff] %vm6640_vm14, %v3263_v53  ;;  %vm6658_vm14 = vmmov %vm6656_vm6 }
 0xe10   : > { %v3243_v54 = vpop.permute.xlu2 %3242  ;;  %v3303_v5 = vld [vmem:[#allocation5 + $0x58] sm:$0xff] }
 0xe11   : > { %3248 = vst.msk [vmem:[#allocation5 + $0x30] sm:$0xff] %vm6641_vm1, %v3243_v54  ;;  %vm1214_vm1 = vcmask 1047680  }
 0xe12   : > { %1215 = vst.msk [vmem:[#allocation6 + $0x8] sm:$0xff] %vm1214_vm1, %v6110_v24 }
 0xe13   : > { %1218 = vst.msk [vmem:[#allocation6 + $0x20] sm:$0xff] %vm1214_vm1, %v6110_v24 }
 0xe18   : > { %v3221_v55 = vpop.permute.xlu2 %3220  ;;  %v3298_v16 = vld [vmem:[#allocation5 + $0x30] sm:$0xff] }
 0xe19   : > { %3225 = vst.msk [vmem:[#allocation5 + $0x18] sm:$0xff] %vm6625_vm0, %v3221_v55 }
 0xe1f   : > { %v3287_v56 = vpop.permute.xlu0 %3286  ;;  %v3275_v59 = vpop.permute.xlu1 %3274 }
 0xe20   : > { %3291 = vst.msk [vmem:[#allocation5 + $0x78] sm:$0xff] %vm6642_vm10, %v3287_v56  ;;  %v3295_v31 = vld [vmem:[#allocation5 + $0x18] sm:$0xff]  ;;  %v3334_v32 = vpop.permute.xlu2 %3333 }
 0xe21   : > { %3279 = vst.msk [vmem:[#allocation5 + $0x68] sm:$0xff] %vm6643_vm3, %v3275_v59 }
 0xe27   : > { %v3273_v60 = vpop.permute.xlu0 %3272  ;;  %v3261_v61 = vpop.permute.xlu1 %3260  ;;  %v3307_v62 = vld [vmem:[#allocation5 + $0x78] sm:$0xff] }
 0xe28   : > { %3278 = vst.msk [vmem:[#allocation5 + $0x60] sm:$0xff] %vm6645_vm12, %v3273_v60  ;;  %3308 = vmatpush.msrb.mxu3 %v3307_v62  ;;  %v3305_v1 = vld [vmem:[#allocation5 + $0x68] sm:$0xff] }
 0xe29   : > { %3266 = vst.msk [vmem:[#allocation5 + $0x50] sm:$0xff] %vm6646_vm4, %v3261_v61 }
 0xe2a   : > { %3309 = vmatpush.msrb.mxu3 %v3306_v63 }
 0xe2c   : > { %3310 = vmatpush.msrb.mxu3 %v3305_v1  ;;  %v3387_v1 = vld [vmem:[%s6653_s26 + $0x8] sm:$0xff] }
 0xe2f   : > { %v3245_v2 = vpop.permute.xlu0 %3244  ;;  %v3233_v3 = vpop.permute.xlu1 %3232  ;;  %v3304_v4 = vld [vmem:[#allocation5 + $0x60] sm:$0xff] }
 0xe30   : > { %3249 = vst.msk [vmem:[#allocation5 + $0x38] sm:$0xff] %vm6647_vm11, %v3245_v2  ;;  %3311 = vmatpush.msrb.mxu3 %v3304_v4  ;;  %v3302_v19 = vld [vmem:[#allocation5 + $0x50] sm:$0xff] }
 0xe31   : > { %3237 = vst.msk [vmem:[#allocation5 + $0x28] sm:$0xff] %vm6648_vm2, %v3233_v3  ;;  %v3384_v2 = vld [vmem:[%s6651_s15] sm:$0xff] }
 0xe32   : > { %3312 = vmatpush.msrb.mxu3 %v3303_v5 }
 0xe34   : > { %3313 = vmatpush.msrb.mxu3 %v3302_v19 }
 0xe36   : > { %3314 = vmatpush.msrb.mxu3 %v3301_v8 }
 0xe37   : > { %v3231_v27 = vpop.permute.xlu0 %3230  ;;  %v3219_v11 = vpop.permute.xlu1 %3218  ;;  %v3299_v14 = vld [vmem:[#allocation5 + $0x38] sm:$0xff] }
 0xe38   : > { %3236 = vst.msk [vmem:[#allocation5 + $0x20] sm:$0xff] %vm6649_vm7, %v3231_v27  ;;  %3315 = vmatpush.msrb.mxu3 %v3300_v12  ;;  %v3297_v20 = vld [vmem:[#allocation5 + $0x28] sm:$0xff] }
 0xe39   : > { %3224 = vst.msk [vmem:[#allocation5 + $0x10] sm:$0xff] %vm6650_vm5, %v3219_v11 }
 0xe3a   : > { %3316 = vmatpush.msrb.mxu3 %v3299_v14 }
 0xe3c   : > { %3317 = vmatpush.msrb.mxu3 %v3298_v16 }
 0xe3e   : > { %3318 = vmatpush.msrb.mxu3 %v3297_v20 }
 0xe3f   : > { %v3296_v28 = vld [vmem:[#allocation5 + $0x20] sm:$0xff]  ;;  %v3339_v35 = vpop.permute.xlu0 %3338 }
 0xe40   : > { %3319 = vmatpush.msrb.mxu3 %v3296_v28  ;;  %v3294_v21 = vld [vmem:[#allocation5 + $0x10] sm:$0xff] }
 0xe42   : > { %3320 = vmatpush.msrb.mxu3 %v3295_v31 }
 0xe44   : > { %3321 = vmatpush.msrb.mxu3 %v3294_v21 }
 0xe46   : > { %3322 = vmatpush.msrb.mxu3 %v3293_v22 }
 0xe48   : > { %3323 = vmatpush.msrb.mxu3 %v3292_v25 }
 0xe49   : > { %3324 = vmatmul.f32.vlgmr.msrb.gmra.mxu3 %v3196_v23 }
 0xe51   : > { %3327 = vmatmul.f32.gmra.mxu3 %v3197_v29 }
 0xecc   : > { %v3325_v57 = vpop.f32.mrf.mxu3 }
 0xecd   : > { %4430 = vmatmul.msk.f32.vlgmr.msrb.gmra.mxu0 %vm6652_vm8, %v3325_v57 }
 0xed4   : > { %v3328_v26 = vpop.f32.mrf.mxu3 }
 0xed5   : > { %4431 = vmatmul.msk.f32.gmra.mxu0 %vm6654_vm9, %v3328_v26  ;;  %vm6659_vm9 = vmmov %vm6656_vm6 }
 0xed6   : > { %vm6660_vm1 = vmmov %vm6659_vm9 }
 0xf4a   : > { %v3364_v33 = vpop.f32.mrf.mxu0 }
 0xf4b   : > { %v6233_v34 = vadd.f32 %v3364_v33, %v3334_v32 }
 0xf4d   : > { %v3404_v30 = vsel %vm6655_vm13, %v6233_v34, 0.0 }
 0xf4e   : > { %3405 = vadd.xlane.f32.xlu0 %v3404_v30 }
 0xf52   : > { %v3367_v36 = vpop.f32.mrf.mxu0 }
 0xf53   : > { %v6237_v38 = vadd.f32 %v3367_v36, %v3339_v35 }
 0xf55   : > { %v3438_v39 = vsel %vm6656_vm6, %v6237_v38, 0.0 }
 0xf56   : > { %3439 = vadd.xlane.f32.xlu1 %v3438_v39 }
 0xf62   : > { %3479 = vperm.xlu0 %4676, %v3385_v40  }
 0xf6a   : > { %3486 = vperm.xlu0 %4676, %v3386_v41  }
 0xf72   : > { %3623 = vrot.lane.b32.xlu0 %v6110_v24, %s6492_s0 }
 0xfc1   : > { %v3406_v42 = vpop.xlane.xlu0 %3405 }
 0xfc2   : > { %v3407_v44 = vrot.slane %v3406_v42, 4 }
 0xfc4   : > { %v3408_v45 = vadd.f32 %v3407_v44, %v3406_v42 }
 0xfc6   : > { %v3409_v46 = vrot.slane %v3408_v45, 2 }
 0xfc8   : > { %v3410_v47 = vadd.f32 %v3409_v46, %v3408_v45 }
 0xfc9   : > { %v3440_v48 = vpop.xlane.xlu1 %3439 }
 0xfca   : > { %v3411_v49 = vrot.slane %v3410_v47, 1  ;;  %v3441_v50 = vrot.slane %v3440_v48, 4 }
 0xfcc   : > { %v3412_v51 = vadd.f32 %v3411_v49, %v3410_v47  ;;  %v3442_v58 = vadd.f32 %v3441_v50, %v3440_v48 }
 0xfce   : > { %v3413_v37 = vmul.f32 0.0078125, %v3412_v51  ;;  %v3443_v43 = vrot.slane %v3442_v58, 2 }
 0xfd0   : > { %v3444_v52 = vadd.f32 %v3443_v43, %v3442_v58  ;;  %v3414_v53 = vsub.f32 %v6233_v34, %v3413_v37 }
 0xfd2   : > { %v3445_v54 = vrot.slane %v3444_v52, 1  ;;  %v3415_v55 = vmul.f32 %v3414_v53, %v3414_v53 }
 0xfd4   : > { %v3446_v56 = vadd.f32 %v3445_v54, %v3444_v52  ;;  %v3416_v59 = vsel %vm6657_vm15, %v3415_v55, 0.0  ;;  %v3480_v22 = vpop.permute.xlu0 %3479 }
 0xfd5   : > { %3417 = vadd.xlane.f32.xlu1 %v3416_v59 }
 0xfd6   : > { %v3447_v60 = vmul.f32 0.0078125, %v3446_v56 }
 0xfd8   : > { %v3448_v61 = vsub.f32 %v6237_v38, %v3447_v60 }
 0xfda   : > { %v3449_v62 = vmul.f32 %v3448_v61, %v3448_v61 }
 0xfdc   : > { %v3450_v63 = vsel %vm6658_vm14, %v3449_v62, 0.0  ;;  %v3487_v39 = vpop.permute.xlu0 %3486 }
 0xfdd   : > { %3451 = vadd.xlane.f32.xlu2 %v3450_v63 }
 0xfee   : > { %3491 = vperm.xlu1 %4743, %v3387_v1  }
 0xff5   : > { %3474 = vperm.xlu2 %4687, %v3384_v2  }
 0xff6   : > { %3602 = vrot.lane.b32.xlu1 %v6110_v24, %s6503_s18 }
 0xffd   : > { %3627 = vrot.lane.b32.xlu2 %v6110_v24, %s6492_s0 }
0x1048   : > { %v3418_v3 = vpop.xlane.xlu1 %3417 }
0x1049   : > { %v3419_v4 = vrot.slane %v3418_v3, 4 }
0x104b   : > { %v3420_v5 = vadd.f32 %v3419_v4, %v3418_v3 }
0x104d   : > { %v3421_v6 = vrot.slane %v3420_v5, 2 }
0x104f   : > { %v3422_v18 = vadd.f32 %v3421_v6, %v3420_v5 }
0x1050   : > { %v3452_v19 = vpop.xlane.xlu2 %3451 }
0x1051   : > { %v3423_v7 = vrot.slane %v3422_v18, 1  ;;  %v3453_v8 = vrot.slane %v3452_v19, 4 }
0x1053   : > { %v3424_v10 = vadd.f32 %v3423_v7, %v3422_v18  ;;  %v3454_v27 = vadd.f32 %v3453_v8, %v3452_v19 }
0x1055   : > { %v3425_v11 = vmul.f32 0.0078125, %v3424_v10  ;;  %v3455_v12 = vrot.slane %v3454_v27, 2 }
0x1057   : > { %v3426_v13 = vadd.f32 1e-05, %v3425_v11  ;;  %v3456_v14 = vadd.f32 %v3455_v12, %v3454_v27 }
0x1058   : > { %v3475_v30 = vpop.permute.xlu2 %3474 }
0x1059   : > { %4788 = vrsqrt.f32 %v3426_v13  ;;  %v3457_v15 = vrot.slane %v3456_v14, 1  ;;  %vm3433_vm10 = vweird.f32 %v3426_v13 }
0x105b   : > { %v3458_v16 = vadd.f32 %v3457_v15, %v3456_v14 }
0x105d   : > { %v3459_v17 = vmul.f32 0.0078125, %v3458_v16  ;;  %v3374_v16 = vand.u32 3, %v5715_v9 }
0x105f   : > { %v4789_v20 = vpop.eup %4788  ;;  %v3460_v28 = vadd.f32 1e-05, %v3459_v17  ;;  %v3398_v17 = vld [vmem:[%s5438_s17] sm:$0xff] }
0x1060   : > { %v3428_v31 = vmul.f32 %v4789_v20, %v3426_v13  ;;  %vm3434_vm0 = vweird.f32 %v4789_v20  ;;  %v3492_v48 = vpop.permute.xlu1 %3491  ;;  %v3628_v15 = vpop.permute.xlu2 %3627 }
0x1061   : > { %4790 = vrsqrt.f32 %v3460_v28  ;;  %vm3435_vm3 = vmor %vm3433_vm10, %vm3434_vm0  ;;  %vm3467_vm4 = vweird.f32 %v3460_v28 }
0x1062   : > { %v3429_v21 = vmul.f32 %v4789_v20, %v3428_v31  ;;  %vm6661_vm0 = vmmov %vm6660_vm1 }
0x1063   : > { %vm6662_vm10 = vmmov %vm6661_vm0 }
0x1064   : > { %v3430_v23 = vmul.f32 0.5, %v3429_v21 }
0x1066   : > { %v3431_v25 = vsub.f32 1.5, %v3430_v23 }
0x1067   : > { %v4791_v29 = vpop.eup %4790 }
0x1068   : > { %v3462_v0 = vmul.f32 %v4791_v29, %v3460_v28  ;;  %v3432_v57 = vmul.f32 %v4789_v20, %v3431_v25  ;;  %vm3468_vm12 = vweird.f32 %v4791_v29  ;;  %v3603_v9 = vpop.permute.xlu1 %3602 }
0x1069   : > { %vm3469_vm11 = vmor %vm3467_vm4, %vm3468_vm12  ;;  %vm6670_vm4 = vcmask 7168  }
0x106a   : > { %v3436_v26 = vsel %vm3435_vm3, %v4789_v20, %v3432_v57  ;;  %v3463_v32 = vmul.f32 %v4791_v29, %v3462_v0  ;;  %vm6290_vm3 = vcmp.ge.s32.totalorder %v3374_v16, 1  ;;  %vm6669_vm12 = vmmov %vm6661_vm0 }
0x106b   : > { %v3437_v33 = vmul.f32 %v3436_v26, %v3414_v53 }
0x106c   : > { %v3464_v35 = vmul.f32 0.5, %v3463_v32 }
0x106d   : > { %v3482_v36 = vmul.f32 %v3475_v30, %v3437_v33 }
0x106e   : > { %v3465_v40 = vsub.f32 1.5, %v3464_v35 }
0x106f   : > { %v3494_v41 = vadd.f32 %v3487_v39, %v3482_v36 }
0x1070   : > { %v3466_v42 = vmul.f32 %v4791_v29, %v3465_v40 }
0x1071   : > { %v4432_v44 = vmul.f32 -1.442695, %v3494_v41 }
0x1072   : > { %v3470_v45 = vsel %vm3469_vm11, %v4791_v29, %v3466_v42  ;;  %vm6671_vm11 = vmmov %vm6661_vm0 }
0x1073   : > { %4792 = vpow2.f32 %v4432_v44  ;;  %v3471_v46 = vmul.f32 %v3470_v45, %v3448_v61 }
0x1075   : > { %v3483_v47 = vmul.f32 %v3480_v22, %v3471_v46 }
0x1077   : > { %v3495_v49 = vadd.f32 %v3492_v48, %v3483_v47 }
0x1079   : > { %v4793_v50 = vpop.eup %4792  ;;  %v4433_v51 = vmul.f32 -1.442695, %v3495_v49 }
0x107a   : > { %v3502_v58 = vadd.f32 1.0, %v4793_v50 }
0x107b   : > { %4794 = vpow2.f32 %v4433_v51 }
0x107c   : > { %4796 = vrcp.f32 %v3502_v58  ;;  %v3515_v55 = vand.u32 2147483648, %v3502_v58  ;;  %v3513_v59 = vand.u32 2147483647, %v3502_v58  ;;  %vm3509_vm7 = vweird.f32 %v3502_v58 }
0x107e   : > { %v3516_v62 = vor.u32 1.1754944e-38, %v3515_v55  ;;  %vm3514_vm8 = vcmp.eq.f32.partialorder %v3513_v59, 8.507059e+37 }
0x1081   : > { %v4795_v37 = vpop.eup %4794 }
0x1082   : > { %v4797_v43 = vpop.eup %4796  ;;  %v3503_v52 = vadd.f32 1.0, %v4795_v37 }
0x1083   : > { %v3505_v53 = vmul.f32 %v4797_v43, %v3502_v58  ;;  %vm3510_vm2 = vweird.f32 %v4797_v43 }
0x1084   : > { %4798 = vrcp.f32 %v3503_v52  ;;  %vm3511_vm5 = vmor %vm3509_vm7, %vm3510_vm2  ;;  %v3530_v5 = vand.u32 2147483648, %v3503_v52  ;;  %v3528_v18 = vand.u32 2147483647, %v3503_v52  ;;  %vm3524_vm6 = vweird.f32 %v3503_v52 }
0x1085   : > { %v3506_v54 = vsub.f32 1.0, %v3505_v53  ;;  %vm6672_vm2 = vmmov %vm6661_vm0  ;;  %vm6302_vm7 = vcmp.le.s32.totalorder %v3374_v16, 2 }
0x1086   : > { %v3531_v7 = vor.u32 1.1754944e-38, %v3530_v5  ;;  %vm3529_vm14 = vcmp.eq.f32.partialorder %v3528_v18, 8.507059e+37 }
0x1087   : > { %v3507_v56 = vmul.f32 %v4797_v43, %v3506_v54 }
0x1089   : > { %v3508_v60 = vadd.f32 %v4797_v43, %v3507_v56 }
0x108a   : > { %v4799_v61 = vpop.eup %4798 }
0x108b   : > { %v3512_v63 = vsel %vm3511_vm5, %v4797_v43, %v3508_v60  ;;  %v3520_v1 = vmul.f32 %v4799_v61, %v3503_v52  ;;  %vm3525_vm13 = vweird.f32 %v4799_v61  ;;  %vm6675_vm5 = vmmov %vm6661_vm0 }
0x108c   : > { %v3517_v2 = vsel %vm3514_vm8, %v3516_v62, %v3512_v63  ;;  %vm3526_vm15 = vmor %vm3524_vm6, %vm3525_vm13  ;;  %vm3581_vm6 = vcmask 31744  }
0x108d   : > { %v3534_v3 = vmul.f32 %v3517_v2, %v3494_v41  ;;  %v3521_v4 = vsub.f32 1.0, %v3520_v1  ;;  %vm6676_vm8 = vmmov %vm6661_vm0 }
0x108e   : > { %vm6677_vm13 = vmmov %vm6661_vm0 }
0x108f   : > { %3536 = vst.msk [vmem:[#allocation6 + $0x8] sm:$0xff] %vm6659_vm9, %v3534_v3  ;;  %v3522_v6 = vmul.f32 %v4799_v61, %v3521_v4  ;;  %vm3606_vm9 = vcmask 23552  }
0x1091   : > { %v3523_v19 = vadd.f32 %v4799_v61, %v3522_v6 }
0x1093   : > { %v3527_v8 = vsel %vm3526_vm15, %v4799_v61, %v3523_v19  ;;  %vm6678_vm15 = vmmov %vm6661_vm0 }
0x1094   : > { %v3532_v10 = vsel %vm3529_vm14, %v3531_v7, %v3527_v8  ;;  %vm6679_vm14 = vmmov %vm6661_vm0 }
0x1095   : > { %v3535_v27 = vmul.f32 %v3532_v10, %v3495_v49 }
0x1096   : > { %v3671_v11 = vld [vmem:[#allocation6 + $0x8] sm:$0xff] }
0x1097   : > { %3537 = vst.msk [vmem:[#allocation6 + $0x20] sm:$0xff] %vm6660_vm1, %v3535_v27  ;;  %3675 = vrot.lane.b32.xlu1 %v3671_v11, %s6495_s16  ;;  %3661 = vrot.lane.b32.xlu2 %v3671_v11, %s6488_s29  ;;  %s6663_s29 = sld [smem:[#allocation50_spill]]  ;;  %vm6680_vm1 = vmmov %vm6661_vm0 }
0x1098   : > { %3647 = vrot.lane.b32.xlu0 %v3671_v11, %s6490_s7  ;;  %3641 = vst.msk [vmem:[#allocation7 + $0x40] sm:$0xff] %vm6661_vm0, %v3671_v11  ;;  %s6664_s7 = smov 125  }
0x109d   : > { %v3392_v13 = vld [vmem:[%s6663_s29] sm:$0xff]  ;;  %v3393_v14 = vld [vmem:[%s6663_s29 + $0x8] sm:$0xff] }
0x109e   : > { %v3672_v12 = vld [vmem:[#allocation6 + $0x20] sm:$0xff] }
0x109f   : > { %3625 = vrot.lane.b32.xlu2 %v3671_v11, %s6492_s0  ;;  %3600 = vrot.lane.b32.xlu1 %v3671_v11, %s6503_s18  ;;  %3642 = vst.msk [vmem:[#allocation7 + $0x48] sm:$0xff] %vm6662_vm10, %v3672_v12  ;;  %s6665_s0 = smov 127   ;;  %vm6681_vm10 = vmmov %vm6661_vm0  ;;  %v3705_v62 = vld [vmem:[#allocation7 + $0x40] sm:$0xff] }
0x10a0   : > { %3577 = vrot.lane.b32.xlu0 %v6110_v24, %s6501_s1 }
0x10a6   : > { %v3706_v61 = vld [vmem:[#allocation7 + $0x48] sm:$0xff] }
0x10a7   : > { %3687 = vrot.lane.b32.xlu1 %v3671_v11, %s6499_s2  ;;  %3677 = vrot.lane.b32.xlu2 %v3672_v12, %s6495_s16  ;;  %s6497_s16 = smov 5  }
0x10a8   : > { %3663 = vrot.lane.b32.xlu0 %v3672_v12, %s6664_s7 }
0x10af   : > { %3598 = vrot.lane.b32.xlu2 %v6110_v24, %s6503_s18  ;;  %3649 = vrot.lane.b32.xlu1 %v3672_v12, %s6665_s0 }
0x10b0   : > { %3573 = vrot.lane.b32.xlu0 %v6110_v24, %s6501_s1 }
0x10b7   : > { %3575 = vrot.lane.b32.xlu2 %v3671_v11, %s6501_s1  ;;  %3629 = vrot.lane.b32.xlu1 %v3672_v12, %s6666_s4 }
0x10b8   : > { %3604 = vrot.lane.b32.xlu0 %v3672_v12, %s6503_s18 }
0x10bf   : > { %3689 = vrot.lane.b32.xlu1 %v3672_v12, %s6499_s2  ;;  %3579 = vrot.lane.b32.xlu2 %v3672_v12, %s6501_s1  ;;  %s6691_s2 = sld [smem:[#allocation51_spill]] }
0x10c0   : > { %3552 = vrot.lane.b32.xlu0 %v6110_v24, %s6497_s16  ;;  %s6692_s1 = sld [smem:[#allocation52_spill]] }
0x10c7   : > { %3548 = vrot.lane.b32.xlu1 %v6110_v24, %s6497_s16  ;;  %3554 = vrot.lane.b32.xlu2 %v3672_v12, %s6497_s16  ;;  %v3624_v24 = vpop.permute.xlu0 %3623 }
0x10c8   : > { %3550 = vrot.lane.b32.xlu0 %v3671_v11, %s6497_s16  ;;  %s6686_s16 = sld [smem:[#allocation49_spill]] }
0x10cf   : > { %3717 = vperm.xlu1 %4743, %v3392_v13   ;;  %3722 = vperm.xlu2 %4687, %v3393_v14   ;;  %v3389_v13 = vld [vmem:[%s6686_s16 + $0x8] sm:$0xff] }
0x10f1   : > { %v3662_v20 = vpop.permute.xlu2 %3661 }
0x10f2   : > { %v3667_v28 = vsel %vm6290_vm3, %v3662_v20, 0.0 }
0x10f3   : > { %3669 = vst.msk [vmem:[#allocation7 + $0x60] sm:$0xff] %vm6669_vm12, %v3667_v28  ;;  %vm6682_vm12 = vmmov %vm6670_vm4  ;;  %v3388_v28 = vld [vmem:[%s6686_s16] sm:$0xff] }
0x10f9   : > { %v3626_v31 = vpop.permute.xlu2 %3625 }
0x10fa   : > { %v3631_v21 = vsel %vm6670_vm4, %v3624_v24, %v3626_v31  ;;  %v3709_v37 = vld [vmem:[#allocation7 + $0x60] sm:$0xff]  ;;  %vm6683_vm4 = vmmov %vm6661_vm0  ;;  %v3391_v24 = vld [vmem:[%s6686_s16 + $0x18] sm:$0xff] }
0x10fb   : > { %v3635_v22 = vsel %vm6290_vm3, %v3631_v21, 0.0  ;;  %v3390_v21 = vld [vmem:[%s6686_s16 + $0x10] sm:$0xff] }
0x10fc   : > { %3637 = vst.msk [vmem:[#allocation7 + $0x30] sm:$0xff] %vm6671_vm11, %v3635_v22  ;;  %vm6684_vm11 = vmmov %vm6661_vm0 }
0x1101   : > { %v3678_v23 = vpop.permute.xlu2 %3677 }
0x1102   : > { %3682 = vst.msk [vmem:[#allocation7 + $0x78] sm:$0xff] %vm6672_vm2, %v3678_v23  ;;  %vm3556_vm2 = vcmask 39936  }
0x1103   : > { %v3703_v18 = vld [vmem:[#allocation7 + $0x30] sm:$0xff] }
0x1109   : > { %v3599_v29 = vpop.permute.xlu2 %3598  ;;  %v3676_v0 = vpop.permute.xlu1 %3675  ;;  %v3712_v57 = vld [vmem:[#allocation7 + $0x78] sm:$0xff] }
0x110a   : > { %v3648_v26 = vpop.permute.xlu0 %3647  ;;  %3681 = vst.msk [vmem:[#allocation7 + $0x70] sm:$0xff] %vm6675_vm5, %v3676_v0  ;;  %3731 = vmatpush.msra.mxu1 %v3712_v57  ;;  %vm6685_vm5 = vmmov %vm6661_vm0 }
0x110b   : > { %v3653_v32 = vsel %vm6302_vm7, %v3648_v26, 0.0 }
0x110c   : > { %3655 = vst.msk [vmem:[#allocation7 + $0x50] sm:$0xff] %vm6676_vm8, %v3653_v32  ;;  %vm6687_vm8 = vmmov %vm6661_vm0 }
0x1111   : > { %v3576_v33 = vpop.permute.xlu2 %3575  ;;  %v3601_v30 = vpop.permute.xlu1 %3600  ;;  %v3711_v35 = vld [vmem:[#allocation7 + $0x70] sm:$0xff] }
0x1112   : > { %v3578_v36 = vpop.permute.xlu0 %3577  ;;  %v3607_v39 = vsel %vm3606_vm9, %v3599_v29, %v3601_v30  ;;  %3732 = vmatpush.msra.mxu1 %v3711_v35 }
0x1113   : > { %v3611_v40 = vsel %vm6302_vm7, %v3607_v39, 0.0  ;;  %v3707_v60 = vld [vmem:[#allocation7 + $0x50] sm:$0xff]  ;;  %v3395_v39 = vld [vmem:[%s6691_s2 + $0x8] sm:$0xff] }
0x1114   : > { %3613 = vst.msk [vmem:[#allocation7 + $0x20] sm:$0xff] %vm6677_vm13, %v3611_v40  ;;  %vm6688_vm13 = vmmov %vm6661_vm0  ;;  %v3396_v40 = vld [vmem:[%s6692_s1] sm:$0xff] }
0x1119   : > { %v3580_v41 = vpop.permute.xlu2 %3579  ;;  %v3688_v42 = vpop.permute.xlu1 %3687 }
0x111a   : > { %v3664_v44 = vpop.permute.xlu0 %3663  ;;  %v3583_v45 = vsel %vm3581_vm6, %v3578_v36, %v3580_v41  ;;  %v3693_v46 = vsel %vm6302_vm7, %v3688_v42, 0.0  ;;  %v6356_v41 = vld [vmem:[#allocation4] sm:$0xff] }
0x111b   : > { %v3668_v47 = vsel %vm6290_vm3, %v3664_v44, 0.0  ;;  %3587 = vst.msk [vmem:[#allocation7 + $0x18] sm:$0xff] %vm6678_vm15, %v3583_v45  ;;  %v3701_v8 = vld [vmem:[#allocation7 + $0x20] sm:$0xff]  ;;  %vm6689_vm15 = vmmov %vm6661_vm0 }
0x111c   : > { %3670 = vst.msk [vmem:[#allocation7 + $0x68] sm:$0xff] %vm6679_vm14, %v3668_v47  ;;  %vm6690_vm14 = vmmov %vm6661_vm0 }
0x111d   : > { %3695 = vst.msk [vmem:[#allocation7 + $0x80] sm:$0xff] %vm6680_vm1, %v3693_v46  ;;  %vm6693_vm1 = vmmov %vm6661_vm0 }
0x1121   : > { %v3650_v48 = vpop.permute.xlu1 %3649  ;;  %v3555_v1 = vpop.permute.xlu2 %3554 }
0x1122   : > { %v3574_v49 = vpop.permute.xlu0 %3573  ;;  %v3654_v50 = vsel %vm6302_vm7, %v3650_v48, 0.0  ;;  %v3700_v12 = vld [vmem:[#allocation7 + $0x18] sm:$0xff] }
0x1123   : > { %v3582_v51 = vsel %vm3581_vm6, %v3574_v49, %v3576_v33  ;;  %3656 = vst.msk [vmem:[#allocation7 + $0x58] sm:$0xff] %vm6661_vm0, %v3654_v50  ;;  %v3710_v58 = vld [vmem:[#allocation7 + $0x68] sm:$0xff] }
0x1124   : > { %3586 = vst.msk [vmem:[#allocation7 + $0x10] sm:$0xff] %vm6681_vm10, %v3582_v51  ;;  %3733 = vmatpush.msra.mxu1 %v3710_v58  ;;  %vm6694_vm10 = vmmov %vm6661_vm0 }
0x1126   : > { %3734 = vmatpush.msra.mxu1 %v3709_v37 }
0x1129   : > { %v3630_v43 = vpop.permute.xlu1 %3629  ;;  %v3723_v26 = vpop.permute.xlu2 %3722 }
0x112a   : > { %v3605_v52 = vpop.permute.xlu0 %3604  ;;  %v3632_v53 = vsel %vm6682_vm12, %v3628_v15, %v3630_v43  ;;  %v3708_v54 = vld [vmem:[#allocation7 + $0x58] sm:$0xff]  ;;  %v3713_v15 = vld [vmem:[#allocation7 + $0x80] sm:$0xff]  ;;  %vm6695_vm12 = vmmov %vm6661_vm0 }
0x112b   : > { %v3608_v55 = vsel %vm3606_vm9, %v3603_v9, %v3605_v52  ;;  %v3636_v56 = vsel %vm6290_vm3, %v3632_v53, 0.0  ;;  %3735 = vmatpush.msra.mxu1 %v3708_v54  ;;  %v3699_v16 = vld [vmem:[#allocation7 + $0x10] sm:$0xff] }
0x112c   : > { %v3612_v59 = vsel %vm6302_vm7, %v3608_v55, 0.0  ;;  %3638 = vst.msk [vmem:[#allocation7 + $0x38] sm:$0xff] %vm6683_vm4, %v3636_v56 }
0x112d   : > { %3614 = vst.msk [vmem:[#allocation7 + $0x28] sm:$0xff] %vm6684_vm11, %v3612_v59  ;;  %3736 = vmatpush.msra.mxu1 %v3707_v60 }
0x112f   : > { %3737 = vmatpush.msra.mxu1 %v3706_v61 }
0x1131   : > { %3738 = vmatpush.msra.mxu1 %v3705_v62  ;;  %v3690_v63 = vpop.permute.xlu1 %3689 }
0x1132   : > { %v3553_v2 = vpop.permute.xlu0 %3552  ;;  %v3694_v3 = vsel %vm6302_vm7, %v3690_v63, 0.0 }
0x1133   : > { %v3558_v4 = vsel %vm3556_vm2, %v3553_v2, %v3555_v1  ;;  %3696 = vst.msk [vmem:[#allocation7 + $0x88] sm:$0xff] %vm6685_vm5, %v3694_v3  ;;  %v3704_v5 = vld [vmem:[#allocation7 + $0x38] sm:$0xff]  ;;  %v3394_v2 = vld [vmem:[%s6691_s2] sm:$0xff]  ;;  %s6702_s2 = smov 4  }
0x1134   : > { %v3562_v6 = vsel %vm6290_vm3, %v3558_v4, 0.0  ;;  %3739 = vmatpush.msra.mxu1 %v3704_v5  ;;  %v3702_v19 = vld [vmem:[#allocation7 + $0x28] sm:$0xff]  ;;  %v3397_v1 = vld [vmem:[%s6692_s1 + $0x8] sm:$0xff]  ;;  %s6700_s1 = smov 3  }
0x1135   : > { %3564 = vst.msk [vmem:[#allocation7 + $0x8] sm:$0xff] %vm6687_vm8, %v3562_v6 }
0x1136   : > { %3740 = vmatpush.msra.mxu1 %v3703_v18 }
0x1138   : > { %3741 = vmatpush.msra.mxu1 %v3702_v19 }
0x1139   : > { %v3549_v7 = vpop.permute.xlu1 %3548 }
0x113a   : > { %v3551_v10 = vpop.permute.xlu0 %3550  ;;  %3742 = vmatpush.msra.mxu1 %v3701_v8  ;;  %v3714_v27 = vld [vmem:[#allocation7 + $0x88] sm:$0xff] }
0x113b   : > { %v3557_v11 = vsel %vm3556_vm2, %v3549_v7, %v3551_v10  ;;  %3768 = vmatpush.msra.mxu2 %v3714_v27 }
0x113c   : > { %v3561_v14 = vsel %vm6290_vm3, %v3557_v11, 0.0  ;;  %3743 = vmatpush.msra.mxu1 %v3700_v12  ;;  %v3698_v20 = vld [vmem:[#allocation7 + $0x8] sm:$0xff] }
0x113d   : > { %3563 = vst.msk [vmem:[#allocation7] sm:$0xff] %vm6688_vm13, %v3561_v14  ;;  %3769 = vmatpush.msra.mxu2 %v3713_v15 }
0x113e   : > { %3744 = vmatpush.msra.mxu1 %v3699_v16  ;;  %4434 = vmatmul.msk.f32.vlgmr.msra.gmra.mxu2 %vm6689_vm15, %v3389_v13 }
0x1140   : > { %3745 = vmatpush.msra.mxu1 %v3698_v20 }
0x1141   : > { %v3718_v9 = vpop.permute.xlu1 %3717 }
0x1144   : > { %v3697_v31 = vld [vmem:[#allocation7] sm:$0xff] }
0x1145   : > { %3746 = vmatpush.msra.mxu1 %v3697_v31 }
0x1146   : > { %3747 = vmatmul.f32.vlgmr.msra.gmra.mxu1 %v3388_v28  ;;  %4435 = vmatmul.msk.f32.gmra.mxu2 %vm6690_vm14, %v3391_v24 }
0x114e   : > { %3750 = vmatmul.f32.gmra.mxu1 %v3390_v21 }
0x11c1   : > { %v3771_v22 = vpop.f32.mrf.mxu2 }
0x11c3   : > { %v3748_v23 = vpop.f32.mrf.mxu1 }
0x11c4   : > { %v3749_v29 = vadd.f32 %v3748_v23, %v3718_v9 }
0x11c6   : > { %v3772_v0 = vadd.f32 %v3771_v22, %v3749_v29 }
0x11c8   : > { %v3777_v57 = vsel %vm6693_vm1, %v3772_v0, 0.0 }
0x11c9   : > { %3778 = vadd.xlane.f32.xlu2 %v3777_v57  ;;  %v3774_v33 = vpop.f32.mrf.mxu2 }
0x11cb   : > { %v3751_v32 = vpop.f32.mrf.mxu1 }
0x11cc   : > { %v3752_v30 = vadd.f32 %v3751_v32, %v3723_v26 }
0x11ce   : > { %v3775_v35 = vadd.f32 %v3774_v33, %v3752_v30 }
0x11d0   : > { %v3811_v36 = vsel %vm6661_vm0, %v3775_v35, 0.0 }
0x11d1   : > { %3812 = vadd.xlane.f32.xlu0 %v3811_v36 }
0x11e1   : > { %3852 = vperm.xlu2 %4687, %v3395_v39  }
0x11e9   : > { %3859 = vperm.xlu2 %4687, %v3396_v40  }
0x11f1   : > { %3989 = vrot.lane.b32.xlu2 %v6356_v41, %s6666_s4 }
0x123c   : > { %v3779_v42 = vpop.xlane.xlu2 %3778 }
0x123d   : > { %v3780_v44 = vrot.slane %v3779_v42, 4 }
0x123f   : > { %v3781_v45 = vadd.f32 %v3780_v44, %v3779_v42 }
0x1241   : > { %v3782_v46 = vrot.slane %v3781_v45, 2 }
0x1243   : > { %v3783_v47 = vadd.f32 %v3782_v46, %v3781_v45 }
0x1244   : > { %v3813_v48 = vpop.xlane.xlu0 %3812  ;;  %v3853_v22 = vpop.permute.xlu2 %3852 }
0x1245   : > { %v3784_v49 = vrot.slane %v3783_v47, 1  ;;  %v3814_v50 = vrot.slane %v3813_v48, 4 }
0x1247   : > { %v3785_v51 = vadd.f32 %v3784_v49, %v3783_v47  ;;  %v3815_v58 = vadd.f32 %v3814_v50, %v3813_v48 }
0x1249   : > { %v3786_v37 = vmul.f32 0.0078125, %v3785_v51  ;;  %v3816_v43 = vrot.slane %v3815_v58, 2 }
0x124b   : > { %v3817_v52 = vadd.f32 %v3816_v43, %v3815_v58  ;;  %v3787_v53 = vsub.f32 %v3772_v0, %v3786_v37 }
0x124c   : > { %v3860_v39 = vpop.permute.xlu2 %3859 }
0x124d   : > { %v3818_v54 = vrot.slane %v3817_v52, 1  ;;  %v3788_v55 = vmul.f32 %v3787_v53, %v3787_v53 }
0x124f   : > { %v3819_v56 = vadd.f32 %v3818_v54, %v3817_v52  ;;  %v3789_v59 = vsel %vm6694_vm10, %v3788_v55, 0.0 }
0x1250   : > { %3790 = vadd.xlane.f32.xlu0 %v3789_v59 }
0x1251   : > { %v3820_v60 = vmul.f32 0.0078125, %v3819_v56 }
0x1253   : > { %v3821_v61 = vsub.f32 %v3775_v35, %v3820_v60 }
0x1255   : > { %v3822_v62 = vmul.f32 %v3821_v61, %v3821_v61 }
0x1257   : > { %v3823_v63 = vsel %vm6695_vm12, %v3822_v62, 0.0 }
0x1258   : > { %3824 = vadd.xlane.f32.xlu1 %v3823_v63 }
0x1264   : > { %3864 = vperm.xlu0 %4676, %v3397_v1  }
0x126c   : > { %3993 = vrot.lane.b32.xlu0 %v6356_v41, %s6666_s4 }
0x1271   : > { %3847 = vperm.xlu1 %4743, %v3394_v2  }
0x1279   : > { %3969 = vrot.lane.b32.xlu1 %v6356_v41, %s6503_s18  ;;  %s6698_s18 = smov 124  }
0x12c3   : > { %v3791_v3 = vpop.xlane.xlu0 %3790 }
0x12c4   : > { %v3792_v4 = vrot.slane %v3791_v3, 4 }
0x12c6   : > { %v3793_v5 = vadd.f32 %v3792_v4, %v3791_v3 }
0x12c8   : > { %v3794_v6 = vrot.slane %v3793_v5, 2 }
0x12ca   : > { %v3795_v18 = vadd.f32 %v3794_v6, %v3793_v5 }
0x12cb   : > { %v3825_v19 = vpop.xlane.xlu1 %3824 }
0x12cc   : > { %v3796_v7 = vrot.slane %v3795_v18, 1  ;;  %v3826_v8 = vrot.slane %v3825_v19, 4 }
0x12ce   : > { %v3797_v10 = vadd.f32 %v3796_v7, %v3795_v18  ;;  %v3827_v27 = vadd.f32 %v3826_v8, %v3825_v19 }
0x12d0   : > { %v3798_v11 = vmul.f32 0.0078125, %v3797_v10  ;;  %v3828_v12 = vrot.slane %v3827_v27, 2 }
0x12d2   : > { %v3799_v13 = vadd.f32 1e-05, %v3798_v11  ;;  %v3829_v14 = vadd.f32 %v3828_v12, %v3827_v27 }
0x12d4   : > { %4800 = vrsqrt.f32 %v3799_v13  ;;  %v3830_v15 = vrot.slane %v3829_v14, 1  ;;  %vm3806_vm11 = vweird.f32 %v3799_v13 }
0x12d6   : > { %v3831_v16 = vadd.f32 %v3830_v15, %v3829_v14  ;;  %v3865_v49 = vpop.permute.xlu0 %3864  ;;  %v3402_v14 = vld [vmem:[%s5443_s20] sm:$0xff]  ;;  %v3403_v15 = vld [vmem:[%s5443_s20 + $0x8] sm:$0xff] }
0x12d8   : > { %v3832_v20 = vmul.f32 0.0078125, %v3831_v16  ;;  %v3990_v16 = vpop.permute.xlu2 %3989 }
0x12da   : > { %v4801_v28 = vpop.eup %4800  ;;  %v3833_v24 = vadd.f32 1e-05, %v3832_v20 }
0x12db   : > { %v3801_v31 = vmul.f32 %v4801_v28, %v3799_v13  ;;  %vm3807_vm4 = vweird.f32 %v4801_v28 }
0x12dc   : > { %4802 = vrsqrt.f32 %v3833_v24  ;;  %vm3808_vm5 = vmor %vm3806_vm11, %vm3807_vm4  ;;  %vm3840_vm13 = vweird.f32 %v3833_v24  ;;  %vm6696_vm4 = vcmask 130048  }
0x12dd   : > { %v3802_v21 = vmul.f32 %v4801_v28, %v3801_v31 }
0x12de   : > { %v3994_v31 = vpop.permute.xlu0 %3993 }
0x12df   : > { %v3803_v9 = vmul.f32 0.5, %v3802_v21 }
0x12e1   : > { %v3804_v23 = vsub.f32 1.5, %v3803_v9 }
0x12e2   : > { %v4803_v29 = vpop.eup %4802 }
0x12e3   : > { %v3835_v0 = vmul.f32 %v4803_v29, %v3833_v24  ;;  %v3805_v57 = vmul.f32 %v4801_v28, %v3804_v23  ;;  %v3848_v35 = vpop.permute.xlu1 %3847  ;;  %vm3841_vm8 = vweird.f32 %v4803_v29 }
0x12e4   : > { %vm3842_vm15 = vmor %vm3840_vm13, %vm3841_vm8 }
0x12e5   : > { %v3836_v26 = vmul.f32 %v4803_v29, %v3835_v0  ;;  %v3809_v32 = vsel %vm3808_vm5, %v4801_v28, %v3805_v57  ;;  %vm6697_vm13 = vmmov %vm6696_vm4 }
0x12e6   : > { %v3810_v33 = vmul.f32 %v3809_v32, %v3787_v53 }
0x12e7   : > { %v3837_v30 = vmul.f32 0.5, %v3836_v26 }
0x12e8   : > { %v3855_v36 = vmul.f32 %v3848_v35, %v3810_v33 }
0x12e9   : > { %v3838_v40 = vsub.f32 1.5, %v3837_v30 }
0x12ea   : > { %v3867_v42 = vadd.f32 %v3860_v39, %v3855_v36 }
0x12eb   : > { %v3839_v44 = vmul.f32 %v4803_v29, %v3838_v40  ;;  %v3970_v21 = vpop.permute.xlu1 %3969 }
0x12ec   : > { %v4436_v45 = vmul.f32 -1.442695, %v3867_v42 }
0x12ed   : > { %v3843_v46 = vsel %vm3842_vm15, %v4803_v29, %v3839_v44  ;;  %vm6699_vm15 = vmmov %vm6696_vm4 }
0x12ee   : > { %v3844_v47 = vmul.f32 %v3843_v46, %v3821_v61  ;;  %4804 = vpow2.f32 %v4436_v45 }
0x12f0   : > { %v3856_v48 = vmul.f32 %v3853_v22, %v3844_v47 }
0x12f2   : > { %v3868_v50 = vadd.f32 %v3865_v49, %v3856_v48 }
0x12f4   : > { %v4805_v51 = vpop.eup %4804  ;;  %v4437_v58 = vmul.f32 -1.442695, %v3868_v50 }
0x12f5   : > { %v3875_v37 = vadd.f32 1.0, %v4805_v51 }
0x12f6   : > { %4806 = vpow2.f32 %v4437_v58 }
0x12f7   : > { %4808 = vrcp.f32 %v3875_v37  ;;  %v3888_v56 = vand.u32 2147483648, %v3875_v37  ;;  %v3886_v60 = vand.u32 2147483647, %v3875_v37  ;;  %vm3882_vm1 = vweird.f32 %v3875_v37 }
0x12f9   : > { %v3889_v63 = vor.u32 1.1754944e-38, %v3888_v56  ;;  %vm3887_vm10 = vcmp.eq.f32.partialorder %v3886_v60, 8.507059e+37 }
0x12fc   : > { %v4807_v43 = vpop.eup %4806 }
0x12fd   : > { %v4809_v52 = vpop.eup %4808  ;;  %v3876_v53 = vadd.f32 1.0, %v4807_v43 }
0x12fe   : > { %v3878_v54 = vmul.f32 %v4809_v52, %v3875_v37  ;;  %vm3883_vm14 = vweird.f32 %v4809_v52 }
0x12ff   : > { %4810 = vrcp.f32 %v3876_v53  ;;  %vm3884_vm0 = vmor %vm3882_vm1, %vm3883_vm14  ;;  %v3903_v6 = vand.u32 2147483648, %v3876_v53  ;;  %v3901_v19 = vand.u32 2147483647, %v3876_v53  ;;  %vm3897_vm11 = vweird.f32 %v3876_v53 }
0x1300   : > { %v3879_v55 = vsub.f32 1.0, %v3878_v54  ;;  %vm6701_vm14 = vmmov %vm6696_vm4 }
0x1301   : > { %v3904_v8 = vor.u32 1.1754944e-38, %v3903_v6  ;;  %vm3902_vm8 = vcmp.eq.f32.partialorder %v3901_v19, 8.507059e+37  ;;  %vm6705_vm1 = vmmov %vm6696_vm4 }
0x1302   : > { %v3880_v59 = vmul.f32 %v4809_v52, %v3879_v55 }
0x1304   : > { %v3881_v61 = vadd.f32 %v4809_v52, %v3880_v59 }
0x1305   : > { %v4811_v62 = vpop.eup %4810 }
0x1306   : > { %v3893_v1 = vmul.f32 %v4811_v62, %v3876_v53  ;;  %v3885_v2 = vsel %vm3884_vm0, %v4809_v52, %v3881_v61  ;;  %vm3898_vm12 = vweird.f32 %v4811_v62  ;;  %vm6706_vm0 = vmmov %vm6705_vm1 }
0x1307   : > { %v3890_v3 = vsel %vm3887_vm10, %v3889_v63, %v3885_v2  ;;  %vm3899_vm5 = vmor %vm3897_vm11, %vm3898_vm12 }
0x1308   : > { %v3894_v4 = vsub.f32 1.0, %v3893_v1  ;;  %v3907_v5 = vmul.f32 %v3890_v3, %v3867_v42  ;;  %vm6707_vm10 = vmmov %vm6706_vm0 }
0x1309   : > { %vm6708_vm12 = vmmov %vm6706_vm0 }
0x130a   : > { %v3895_v18 = vmul.f32 %v4811_v62, %v3894_v4  ;;  %3909 = vst.msk [vmem:[#allocation6 + $0x8] sm:$0xff] %vm6696_vm4, %v3907_v5  ;;  %vm6709_vm4 = vcmask 7168   ;;  %vm6710_vm11 = vmmov %vm6706_vm0 }
0x130c   : > { %v3896_v7 = vadd.f32 %v4811_v62, %v3895_v18 }
0x130e   : > { %v3900_v10 = vsel %vm3899_vm5, %v4811_v62, %v3896_v7  ;;  %vm6711_vm5 = vmmov %vm6706_vm0 }
0x130f   : > { %v3905_v27 = vsel %vm3902_vm8, %v3904_v8, %v3900_v10  ;;  %vm6712_vm8 = vmmov %vm6706_vm0 }
0x1310   : > { %v3908_v11 = vmul.f32 %v3905_v27, %v3868_v50 }
0x1311   : > { %v4037_v12 = vld [vmem:[#allocation6 + $0x8] sm:$0xff] }
0x1312   : > { %3910 = vst.msk [vmem:[#allocation6 + $0x20] sm:$0xff] %vm6697_vm13, %v3908_v11  ;;  %4041 = vrot.lane.b32.xlu1 %v4037_v12, %s6698_s18  ;;  %4027 = vrot.lane.b32.xlu0 %v4037_v12, %s6664_s7  ;;  %vm6713_vm13 = vmmov %vm6706_vm0 }
0x1313   : > { %4013 = vrot.lane.b32.xlu2 %v4037_v12, %s6665_s0  ;;  %4007 = vst.msk [vmem:[#allocation7 + $0x40] sm:$0xff] %vm6699_vm15, %v4037_v12  ;;  %vm6714_vm15 = vmmov %vm6706_vm0 }
0x1319   : > { %v4024_v13 = vld [vmem:[#allocation6 + $0x20] sm:$0xff] }
0x131a   : > { %3991 = vrot.lane.b32.xlu0 %v4037_v12, %s6666_s4  ;;  %3967 = vrot.lane.b32.xlu1 %v4037_v12, %s6700_s1  ;;  %4008 = vst.msk [vmem:[#allocation7 + $0x48] sm:$0xff] %vm6701_vm14, %v4024_v13  ;;  %vm6715_vm14 = vmmov %vm6706_vm0  ;;  %v4071_v61 = vld [vmem:[#allocation7 + $0x40] sm:$0xff] }
0x131b   : > { %3947 = vrot.lane.b32.xlu2 %v6356_v41, %s6702_s2 }
0x1321   : > { %v4072_v60 = vld [vmem:[#allocation7 + $0x48] sm:$0xff] }
0x1322   : > { %4043 = vrot.lane.b32.xlu0 %v4024_v13, %s6698_s18  ;;  %4053 = vrot.lane.b32.xlu1 %v4037_v12, %s6703_s5  ;;  %s6704_s18 = smov 5  }
0x1323   : > { %4029 = vrot.lane.b32.xlu2 %v4024_v13, %s6664_s7 }
0x132a   : > { %3965 = vrot.lane.b32.xlu0 %v6356_v41, %s6700_s1  ;;  %4015 = vrot.lane.b32.xlu1 %v4024_v13, %s6665_s0 }
0x132b   : > { %3943 = vrot.lane.b32.xlu2 %v6356_v41, %s6702_s2 }
0x1332   : > { %3995 = vrot.lane.b32.xlu1 %v4024_v13, %s6666_s4  ;;  %3945 = vrot.lane.b32.xlu0 %v4037_v12, %s6702_s2  ;;  %s4407_s4 = sshll.u32 %s6728_s10, 2 }
0x1333   : > { %3971 = vrot.lane.b32.xlu2 %v4024_v13, %s6700_s1 }
0x133a   : > { %4055 = vrot.lane.b32.xlu1 %v4024_v13, %s6703_s5  ;;  %3949 = vrot.lane.b32.xlu0 %v4024_v13, %s6702_s2  ;;  %s6724_s5 = sld [smem:[#allocation53_spill]] }
0x133b   : > { %3923 = vrot.lane.b32.xlu2 %v6356_v41, %s6704_s18 }
0x1340   : > { %s1201_s7 = scalar_lea.vmem %s6724_s5, %s4407_s4 }
0x1342   : > { %3919 = vrot.lane.b32.xlu1 %v6356_v41, %s6704_s18  ;;  %3925 = vrot.lane.b32.xlu0 %v4024_v13, %s6704_s18  ;;  %v3399_v13 = vld [vmem:[%s5438_s17 + $0x8] sm:$0xff] }
0x1343   : > { %3921 = vrot.lane.b32.xlu2 %v4037_v12, %s6704_s18 }
0x134a   : > { %4083 = vperm.xlu1 %4743, %v3402_v14   ;;  %4088 = vperm.xlu0 %4676, %v3403_v15  }
0x136d   : > { %v4014_v20 = vpop.permute.xlu2 %4013 }
0x136e   : > { %v4019_v28 = vsel %vm6302_vm7, %v4014_v20, 0.0  ;;  %v3401_v20 = vld [vmem:[%s5438_s17 + $0x18] sm:$0xff] }
0x136f   : > { %4021 = vst.msk [vmem:[#allocation7 + $0x50] sm:$0xff] %vm6705_vm1, %v4019_v28  ;;  %vm6717_vm1 = vmmov %vm6706_vm0 }
0x1375   : > { %v3948_v24 = vpop.permute.xlu2 %3947 }
0x1376   : > { %v4073_v56 = vld [vmem:[#allocation7 + $0x50] sm:$0xff] }
0x137d   : > { %v4030_v22 = vpop.permute.xlu2 %4029 }
0x137e   : > { %v4034_v41 = vsel %vm6290_vm3, %v4030_v22, 0.0 }
0x137f   : > { %4036 = vst.msk [vmem:[#allocation7 + $0x68] sm:$0xff] %vm6706_vm0, %v4034_v41 }
0x1384   : > { %v4028_v9 = vpop.permute.xlu0 %4027  ;;  %v4042_v23 = vpop.permute.xlu1 %4041 }
0x1385   : > { %v4033_v29 = vsel %vm6290_vm3, %v4028_v9, 0.0  ;;  %v3944_v0 = vpop.permute.xlu2 %3943  ;;  %4047 = vst.msk [vmem:[#allocation7 + $0x70] sm:$0xff] %vm6707_vm10, %v4042_v23  ;;  %vm6718_vm10 = vmmov %vm6706_vm0 }
0x1386   : > { %4035 = vst.msk [vmem:[#allocation7 + $0x60] sm:$0xff] %vm6708_vm12, %v4033_v29  ;;  %v4076_v51 = vld [vmem:[#allocation7 + $0x68] sm:$0xff]  ;;  %vm6719_vm12 = vmmov %vm6706_vm0 }
0x138c   : > { %v3992_v57 = vpop.permute.xlu0 %3991  ;;  %v3968_v26 = vpop.permute.xlu1 %3967  ;;  %v4077_v50 = vld [vmem:[#allocation7 + $0x70] sm:$0xff] }
0x138d   : > { %v3972_v32 = vpop.permute.xlu2 %3971  ;;  %v3997_v33 = vsel %vm6709_vm4, %v3990_v16, %v3992_v57  ;;  %v4075_v58 = vld [vmem:[#allocation7 + $0x60] sm:$0xff] }
0x138e   : > { %v3974_v30 = vsel %vm3606_vm9, %v3970_v21, %v3972_v32  ;;  %v4001_v35 = vsel %vm6290_vm3, %v3997_v33, 0.0 }
0x138f   : > { %v3978_v36 = vsel %vm6302_vm7, %v3974_v30, 0.0  ;;  %4003 = vst.msk [vmem:[#allocation7 + $0x30] sm:$0xff] %vm6710_vm11, %v4001_v35  ;;  %vm4171_vm11 = vcmask 125952  }
0x1390   : > { %3980 = vst.msk [vmem:[#allocation7 + $0x28] sm:$0xff] %vm6711_vm5, %v3978_v36  ;;  %v4147_v36 = vld [vmem:[%s5448_s3] sm:$0xf] }
0x1394   : > { %v4044_v39 = vpop.permute.xlu0 %4043  ;;  %v4054_v40 = vpop.permute.xlu1 %4053 }
0x1395   : > { %4048 = vst.msk [vmem:[#allocation7 + $0x78] sm:$0xff] %vm6712_vm8, %v4044_v39  ;;  %v4059_v42 = vsel %vm6302_vm7, %v4054_v40, 0.0  ;;  %v3924_v59 = vpop.permute.xlu2 %3923 }
0x1396   : > { %4061 = vst.msk [vmem:[#allocation7 + $0x80] sm:$0xff] %vm6713_vm13, %v4059_v42  ;;  %v4069_v4 = vld [vmem:[#allocation7 + $0x30] sm:$0xff] }
0x1397   : > { %v4068_v5 = vld [vmem:[#allocation7 + $0x28] sm:$0xff] }
0x139c   : > { %v3966_v44 = vpop.permute.xlu0 %3965  ;;  %v4016_v45 = vpop.permute.xlu1 %4015  ;;  %v4078_v46 = vld [vmem:[#allocation7 + $0x78] sm:$0xff] }
0x139d   : > { %v3973_v47 = vsel %vm3606_vm9, %v3966_v44, %v3968_v26  ;;  %v4020_v48 = vsel %vm6302_vm7, %v4016_v45, 0.0  ;;  %4097 = vmatpush.msra.mxu0 %v4078_v46  ;;  %vm6716_vm9 = vmmov %vm6709_vm4  ;;  %v3922_v6 = vpop.permute.xlu2 %3921  ;;  %v4079_v14 = vld [vmem:[#allocation7 + $0x80] sm:$0xff] }
0x139e   : > { %v3977_v49 = vsel %vm6302_vm7, %v3973_v47, 0.0  ;;  %4022 = vst.msk [vmem:[#allocation7 + $0x58] sm:$0xff] %vm6714_vm15, %v4020_v48  ;;  %vm6725_vm4 = vmmov %vm6706_vm0 }
0x139f   : > { %3979 = vst.msk [vmem:[#allocation7 + $0x20] sm:$0xff] %vm6715_vm14, %v3977_v49  ;;  %4098 = vmatpush.msra.mxu0 %v4077_v50 }
0x13a1   : > { %4099 = vmatpush.msra.mxu0 %v4076_v51 }
0x13a3   : > { %4100 = vmatpush.msra.mxu0 %v4075_v58 }
0x13a4   : > { %v3946_v37 = vpop.permute.xlu0 %3945  ;;  %v3996_v43 = vpop.permute.xlu1 %3995 }
0x13a5   : > { %v3951_v52 = vsel %vm3581_vm6, %v3944_v0, %v3946_v37  ;;  %v3998_v53 = vsel %vm6716_vm9, %v3994_v31, %v3996_v43  ;;  %v4074_v54 = vld [vmem:[#allocation7 + $0x58] sm:$0xff] }
0x13a6   : > { %3955 = vst.msk [vmem:[#allocation7 + $0x10] sm:$0xff] %vm6717_vm1, %v3951_v52  ;;  %v4002_v55 = vsel %vm6290_vm3, %v3998_v53, 0.0  ;;  %4101 = vmatpush.msra.mxu0 %v4074_v54  ;;  %v4067_v7 = vld [vmem:[#allocation7 + $0x20] sm:$0xff] }
0x13a7   : > { %4004 = vst.msk [vmem:[#allocation7 + $0x38] sm:$0xff] %vm6706_vm0, %v4002_v55 }
0x13a8   : > { %4102 = vmatpush.msra.mxu0 %v4073_v56 }
0x13aa   : > { %4103 = vmatpush.msra.mxu0 %v4072_v60 }
0x13ac   : > { %v3950_v62 = vpop.permute.xlu0 %3949  ;;  %4104 = vmatpush.msra.mxu0 %v4071_v61  ;;  %v4056_v63 = vpop.permute.xlu1 %4055 }
0x13ad   : > { %v3952_v1 = vsel %vm3581_vm6, %v3948_v24, %v3950_v62  ;;  %v4060_v2 = vsel %vm6302_vm7, %v4056_v63, 0.0  ;;  %vm6720_vm7 = vmmov %vm6706_vm0  ;;  %v4065_v15 = vld [vmem:[#allocation7 + $0x10] sm:$0xff]  ;;  %v3400_v24 = vld [vmem:[%s5438_s17 + $0x10] sm:$0xff] }
0x13ae   : > { %3956 = vst.msk [vmem:[#allocation7 + $0x18] sm:$0xff] %vm6718_vm10, %v3952_v1  ;;  %v4070_v3 = vld [vmem:[#allocation7 + $0x38] sm:$0xff]  ;;  %vm6721_vm6 = vmmov %vm6706_vm0 }
0x13af   : > { %4062 = vst.msk [vmem:[#allocation7 + $0x88] sm:$0xff] %vm6719_vm12, %v4060_v2  ;;  %4105 = vmatpush.msra.mxu0 %v4070_v3 }
0x13b1   : > { %4106 = vmatpush.msra.mxu0 %v4069_v4 }
0x13b3   : > { %4107 = vmatpush.msra.mxu0 %v4068_v5 }
0x13b4   : > { %v3926_v18 = vpop.permute.xlu0 %3925  ;;  %v3920_v19 = vpop.permute.xlu1 %3919 }
0x13b5   : > { %v3928_v8 = vsel %vm3556_vm2, %v3924_v59, %v3926_v18  ;;  %v3927_v25 = vsel %vm3556_vm2, %v3920_v19, %v3922_v6  ;;  %4108 = vmatpush.msra.mxu0 %v4067_v7  ;;  %v4066_v10 = vld [vmem:[#allocation7 + $0x18] sm:$0xff]  ;;  %vm6722_vm2 = vmmov %vm6706_vm0 }
0x13b6   : > { %v3932_v27 = vsel %vm6290_vm3, %v3928_v8, 0.0  ;;  %v3931_v11 = vsel %vm6290_vm3, %v3927_v25, 0.0  ;;  %v4080_v12 = vld [vmem:[#allocation7 + $0x88] sm:$0xff]  ;;  %vm6723_vm3 = vmmov %vm6706_vm0 }
0x13b7   : > { %3934 = vst.msk [vmem:[#allocation7 + $0x8] sm:$0xff] %vm6720_vm7, %v3932_v27  ;;  %4134 = vmatpush.msrb.mxu2 %v4080_v12  ;;  %4109 = vmatpush.msra.mxu0 %v4066_v10 }
0x13b8   : > { %3933 = vst.msk [vmem:[#allocation7] sm:$0xff] %vm6721_vm6, %v3931_v11 }
0x13b9   : > { %4135 = vmatpush.msrb.mxu2 %v4079_v14  ;;  %4110 = vmatpush.msra.mxu0 %v4065_v15 }
0x13ba   : > { %4438 = vmatmul.msk.f32.vlgmr.msrb.gmra.mxu2 %vm6722_vm2, %v3399_v13 }
0x13bc   : > { %v4084_v22 = vpop.permute.xlu1 %4083  ;;  %v4089_v9 = vpop.permute.xlu0 %4088 }
0x13be   : > { %v4064_v16 = vld [vmem:[#allocation7 + $0x8] sm:$0xff] }
0x13bf   : > { %4111 = vmatpush.msra.mxu0 %v4064_v16  ;;  %v4063_v28 = vld [vmem:[#allocation7] sm:$0xff] }
0x13c1   : > { %4112 = vmatpush.msra.mxu0 %v4063_v28 }
0x13c2   : > { %4113 = vmatmul.f32.vlgmr.msra.gmra.mxu0 %v3398_v17  ;;  %4439 = vmatmul.msk.f32.gmra.mxu2 %vm6723_vm3, %v3401_v20 }
0x13ca   : > { %4116 = vmatmul.f32.gmra.mxu0 %v3400_v24 }
0x143d   : > { %v4137_v31 = vpop.f32.mrf.mxu2 }
0x143f   : > { %v4114_v21 = vpop.f32.mrf.mxu0 }
0x1440   : > { %v4115_v41 = vadd.f32 %v4114_v21, %v4084_v22 }
0x1442   : > { %v4138_v0 = vadd.f32 %v4137_v31, %v4115_v41 }
0x1444   : > { %v4143_v32 = vadd.f32 %v4138_v0, %v6233_v34 }
0x1445   : > { %v4140_v29 = vpop.f32.mrf.mxu2 }
0x1446   : > { %v4145_v35 = vadd.f32 %v4143_v32, %v6233_v34 }
0x1447   : > { %v4117_v23 = vpop.f32.mrf.mxu0 }
0x1448   : > { %v4118_v57 = vadd.f32 %v4117_v23, %v4089_v9 }
0x144a   : > { %v4141_v26 = vadd.f32 %v4140_v29, %v4118_v57 }
0x144c   : > { %v4144_v33 = vadd.f32 %v4141_v26, %v6237_v38 }
0x144e   : > { %v4146_v30 = vadd.f32 %v4144_v33, %v6237_v38 }
0x1450   : > { %4165 = vmatpush.msra.mxu3 %v4146_v30 }
0x1452   : > { %4166 = vmatpush.msra.mxu3 %v4145_v35 }
0x1453   : > { %4440 = vmatmul.msk.f32.vlgmr.msra.gmra.mxu3 %vm6725_vm4, %v4147_v36 }
0x14d6   : > { %v4168_v39 = vpop.f32.mrf.mxu3 }
0x14d7   : > { %4172 = vst.msk [vmem:[%s1201_s7] sm:$0xf] %vm4171_vm11, %v4168_v39 }
0x14d8 PF: > { %s6726_s0 = sld [smem:[#allocation54_spill]] }
0x14de   : > { %s84_s7 = sadd.s32 1, %s6726_s0  }
0x14df   : > { %p81_p2 = scmp.ge.s32.totalorder %s84_s7, 4  }
0x14e1   :  { %83 = sbr.rel (!%p81_p2) target bundleno = 70 (0x46), region = 264 }
0x14e6   :  { %4192 = vsyncpa [#allocation9], 1 }
0x14e7   :  { %4194 = vsyncpa [#allocation9 + $0x1], 1 }
0x14e8   :  { %4195 = vsyncpa [#allocation11], 1 }
0x14e9   :  { %4196 = vsyncpa [#allocation14], 1 }
0x14ea   :  { %4197 = vsyncpa [#allocation17], 1 }
0x14eb   :  { %4198 = vsyncpa [#allocation20], 1 }
0x14ec   :  { %4199 = vsyncpa [#allocation23], 1 }
0x14ed   :  { %4200 = vsyncpa [#allocation26], 1 }

</bundles_post_ra>
